<compile_context>
chip_gen: v5e
topology: v5e:2x2
jax: 0.10.0
libtpu: 0.0.40
codegen_flags: <defaults>
</compile_context>

<pallas_src>
import math

import jax
import jax.numpy as jnp
from jax.experimental import pallas as pl
from jax.experimental.pallas import tpu as pltpu


def _round_up(x, m):
    return ((x + m - 1) // m) * m


# ---------------------------------------------------------------------------
# Kernel
# ---------------------------------------------------------------------------

def hybrid_fusion_kernel(
    audio_ref, video_ref,
    a_w1, a_b1, a_w2, a_b2,          # audio embed (BN + 1/T_a folded into w1/b1)
    v_w1, v_b1, v_w2, v_b2,          # video embed (BN + 1/T_v folded into w1/b1)
    h_w1a, h_w1v, h_b1, h_w2, h_b2,  # merged heads (audio/video/fusion; /3 folded into h_w2/h_b2)
    out_ref,
):
    bf16, f32 = jnp.bfloat16, jnp.float32

    def dot(x, w_ref):
        # Native bf16 x bf16 -> f32 MXU matmul; no in-kernel weight upcast.
        return jnp.dot(x.astype(bf16), w_ref[...], preferred_element_type=f32)

    def pooled(ref):
        x = ref[...]
        if x.ndim == 3:
            # Fallback path (large T*dim): temporal sum accumulates in f32, back to bf16 for MXU.
            x = jnp.sum(x.astype(f32), axis=1).astype(bf16)
        return x  # [TB, K] bf16 (folded path: temporal sum already folded into w1's K dim)

    a_x = pooled(audio_ref)
    v_x = pooled(video_ref)

    # audio embed: (Linear + BN + 1/T folded) -> ReLU -> (Dropout = id) -> Linear
    h = jnp.maximum(dot(a_x, a_w1) + a_b1[...], 0.0)
    a_emb = dot(h, a_w2) + a_b2[...]                                    # [TB, 128] f32

    # video embed
    h = jnp.maximum(dot(v_x, v_w1) + v_b1[...], 0.0)
    v_emb = dot(h, v_w2) + v_b2[...]                                    # [TB, 128] f32

    # merged heads, no lane-axis concat: hh = relu(a_emb @ W1a + v_emb @ W1v + b1)
    hh = jnp.maximum(dot(a_emb, h_w1a) + dot(v_emb, h_w1v) + h_b1[...], 0.0)   # [TB, 256]

    # dense [256, cp] second head layer; the /3 averaging and bias sum are folded in offline.
    out_ref[...] = dot(hh, h_w2) + h_b2[...]


# ---------------------------------------------------------------------------
# Parameter construction (synthetic "PyTorch-like" raw params) and offline prep.
# ---------------------------------------------------------------------------

def make_params(key, audio_dim, video_dim, num_classes, dtype=jnp.float32):
    """Deterministic synthetic parameters. Linear weights stored as [in, out]."""
    ks = iter(jax.random.split(key, 32))

    def lin(k, fan_in, fan_out):
        bound = 1.0 / math.sqrt(fan_in)
        w = jax.random.uniform(k, (fan_in, fan_out), dtype, -bound, bound)
        b = jax.random.uniform(jax.random.fold_in(k, 1), (1, fan_out), dtype, -bound, bound)
        return w, b

    def bn_stats(k):
        k1, k2, k3, k4 = jax.random.split(k, 4)
        return dict(
            gamma=jax.random.uniform(k1, (1, 512), dtype, 0.5, 1.5),
            beta=jax.random.uniform(k2, (1, 512), dtype, -0.5, 0.5),
            rmean=jax.random.uniform(k3, (1, 512), dtype, -0.1, 0.1),
            rvar=jax.random.uniform(k4, (1, 512), dtype, 0.5, 1.5),
        )

    p = {}
    p["a_w1"], p["a_b1"] = lin(next(ks), audio_dim, 512)
    bn = bn_stats(next(ks))
    p["a_gamma"], p["a_beta"], p["a_rmean"], p["a_rvar"] = bn["gamma"], bn["beta"], bn["rmean"], bn["rvar"]
    p["a_w2"], p["a_b2"] = lin(next(ks), 512, 128)
    p["v_w1"], p["v_b1"] = lin(next(ks), video_dim, 512)
    bn = bn_stats(next(ks))
    p["v_gamma"], p["v_beta"], p["v_rmean"], p["v_rvar"] = bn["gamma"], bn["beta"], bn["rmean"], bn["rvar"]
    p["v_w2"], p["v_b2"] = lin(next(ks), 512, 128)
    p["ao_w1"], p["ao_b1"] = lin(next(ks), 128, 64)
    p["ao_w2"], p["ao_b2"] = lin(next(ks), 64, num_classes)
    p["vo_w1"], p["vo_b1"] = lin(next(ks), 128, 64)
    p["vo_w2"], p["vo_b2"] = lin(next(ks), 64, num_classes)
    p["f_w1"], p["f_b1"] = lin(next(ks), 256, 128)       # input order = cat(audio_emb, video_emb)
    p["f_w2"], p["f_b2"] = lin(next(ks), 128, num_classes)
    return p


PREP_ORDER = [
    "a_w1", "a_b1", "a_w2", "a_b2",
    "v_w1", "v_b1", "v_w2", "v_b2",
    "h_w1a", "h_w1v", "h_b1", "h_w2", "h_b2",
]


def prepare_params(p, t_audio, t_video, num_classes, weight_dtype=jnp.bfloat16,
                   eps=1e-5, fold_max_k=4096):
    """Fold BN (eval) + 1/T into the first Linear (optionally tiling it over T so the temporal sum
    becomes part of the matmul K dim), merge the three heads, cast weights to bf16."""
    f32 = jnp.float32
    cp = _round_up(max(num_classes, 1), 128)   # lane-dense padded class dim

    a_scale = p["a_gamma"] / jnp.sqrt(p["a_rvar"] + eps)
    a_shift = p["a_beta"] - p["a_rmean"] * a_scale
    v_scale = p["v_gamma"] / jnp.sqrt(p["v_rvar"] + eps)
    v_shift = p["v_beta"] - p["v_rmean"] * v_scale

    audio_dim = p["a_w1"].shape[0]
    video_dim = p["v_w1"].shape[0]
    fold_audio = t_audio * audio_dim <= fold_max_k
    fold_video = t_video * video_dim <= fold_max_k

    a_w1_eff = p["a_w1"] * a_scale / float(t_audio)       # [A, 512], BN + 1/T folded
    v_w1_eff = p["v_w1"] * v_scale / float(t_video)       # [V, 512]

    prep = {"_fold_audio": fold_audio, "_fold_video": fold_video}
    prep["a_w1"] = (jnp.tile(a_w1_eff, (t_audio, 1)) if fold_audio else a_w1_eff).astype(weight_dtype)
    prep["a_b1"] = (p["a_b1"] * a_scale + a_shift).astype(f32)
    prep["a_w2"] = p["a_w2"].astype(weight_dtype)
    prep["a_b2"] = p["a_b2"].astype(f32)
    prep["v_w1"] = (jnp.tile(v_w1_eff, (t_video, 1)) if fold_video else v_w1_eff).astype(weight_dtype)
    prep["v_b1"] = (p["v_b1"] * v_scale + v_shift).astype(f32)
    prep["v_w2"] = p["v_w2"].astype(weight_dtype)
    prep["v_b2"] = p["v_b2"].astype(f32)

    # Merged head, first layer, split by embedding (no concat in the kernel):
    #   cols 0:64 -> audio head hidden, 64:128 -> video head hidden, 128:256 -> fusion hidden.
    zeros64 = jnp.zeros((128, 64), f32)
    h_w1a = jnp.concatenate([p["ao_w1"], zeros64, p["f_w1"][0:128]], axis=1)     # [128, 256]
    h_w1v = jnp.concatenate([zeros64, p["vo_w1"], p["f_w1"][128:256]], axis=1)   # [128, 256]
    h_b1 = jnp.concatenate([p["ao_b1"], p["vo_b1"], p["f_b1"]], axis=1)          # [1, 256]

    # Merged head, second layer: dense [256, cp] (the three heads sum into the same columns),
    # with the /3 averaging folded in.
    w_h2 = jnp.zeros((256, cp), f32)
    w_h2 = w_h2.at[0:64, 0:num_classes].set(p["ao_w2"])
    w_h2 = w_h2.at[64:128, 0:num_classes].set(p["vo_w2"])
    w_h2 = w_h2.at[128:256, 0:num_classes].set(p["f_w2"])
    w_h2 = w_h2 / 3.0
    b_h2 = jnp.zeros((1, cp), f32)
    b_h2 = b_h2.at[:, 0:num_classes].set((p["ao_b2"] + p["vo_b2"] + p["f_b2"]) / 3.0)

    prep["h_w1a"] = h_w1a.astype(weight_dtype)
    prep["h_w1v"] = h_w1v.astype(weight_dtype)
    prep["h_b1"] = h_b1.astype(f32)
    prep["h_w2"] = w_h2.astype(weight_dtype)
    prep["h_b2"] = b_h2
    return prep


# ---------------------------------------------------------------------------
# Wrapper
# ---------------------------------------------------------------------------

def hybrid_fusion(audio_feat, video_feat, prep, num_classes, *,
                  input_dtype=jnp.bfloat16, max_batch_tile=512,
                  tile_vmem_budget_bytes=24 * 1024 * 1024):
    B, t_a, a_dim = audio_feat.shape
    _, t_v, v_dim = video_feat.shape
    cp = prep["h_b2"].shape[1]

    # Inputs dominate HBM traffic for realistic T -> ship them bf16; accumulation stays f32.
    audio_feat = audio_feat.astype(input_dtype)
    video_feat = video_feat.astype(input_dtype)

    # Temporal-sum fold: present lane-dense [B, T*dim] slabs to the kernel (free reshape).
    audio_in = audio_feat.reshape(B, t_a * a_dim) if prep["_fold_audio"] else audio_feat
    video_in = video_feat.reshape(B, t_v * v_dim) if prep["_fold_video"] else video_feat

    flat = [prep[k] for k in PREP_ORDER]
    weight_bytes = sum(int(w.size) * w.dtype.itemsize for w in flat)

    # --- batch tile from a VMEM budget ---
    in_itemsize = jnp.dtype(input_dtype).itemsize
    per_row = (2 * (t_a * a_dim + t_v * v_dim) * in_itemsize     # double-buffered input tiles
               + 2 * cp * 4                                       # double-buffered f32 output tile
               + (512 + 512 + 128 + 128 + 256 + cp) * 4           # f32 activations / temps
               + 512)                                             # slack
    avail = max(tile_vmem_budget_bytes - 2 * weight_bytes, 8 * per_row)
    tb_cap = max(8, min(max_batch_tile, (avail // per_row) // 8 * 8))

    # Split B evenly across tiles (minimal padding); keep >=2 grid steps for large B so both
    # v7x TensorCores get work under dimension_semantics=("parallel",).
    n_tiles = (B + tb_cap - 1) // tb_cap
    if n_tiles == 1 and B >= 128:
        n_tiles = 2
    tb = _round_up((B + n_tiles - 1) // n_tiles, 8)
    bp = tb * n_tiles

    if bp != B:
        pad = bp - B
        audio_in = jnp.pad(audio_in, ((0, pad),) + ((0, 0),) * (audio_in.ndim - 1))
        video_in = jnp.pad(video_in, ((0, pad),) + ((0, 0),) * (video_in.ndim - 1))

    def batch_spec(x):
        if x.ndim == 2:
            return pl.BlockSpec((tb, x.shape[1]), lambda i: (i, 0))
        return pl.BlockSpec((tb, x.shape[1], x.shape[2]), lambda i: (i, 0, 0))

    in_specs = [batch_spec(audio_in), batch_spec(video_in)] + [
        # Weights / biases: full block, constant index map -> VMEM-resident across the grid.
        pl.BlockSpec(w.shape, lambda i: (0, 0)) for w in flat
    ]
    out_spec = pl.BlockSpec((tb, cp), lambda i: (i, 0))

    ka = prep["a_w1"].shape[0]
    kv = prep["v_w1"].shape[0]
    flops = 2 * bp * (ka * 512 + 512 * 128 + kv * 512 + 512 * 128 + 2 * 128 * 256 + 256 * cp)
    bytes_accessed = int(audio_in.size * in_itemsize + video_in.size * in_itemsize
                         + weight_bytes + bp * cp * 4)

    out = pl.pallas_call(
        hybrid_fusion_kernel,
        out_shape=jax.ShapeDtypeStruct((bp, cp), jnp.float32),
        grid=(bp // tb,),
        in_specs=in_specs,
        out_specs=out_spec,
        compiler_params=pltpu.CompilerParams(
            # Batch axis is embarrassingly parallel -> shards across v7x's 2 TensorCores.
            dimension_semantics=("parallel",),
            # Tile budget is ~24 MiB; 48 MiB limit leaves headroom and fits v7x's 64 MiB VMEM.
            vmem_limit_bytes=48 * 1024 * 1024,
        ),
        cost_estimate=pl.CostEstimate(
            flops=flops, transcendentals=0, bytes_accessed=bytes_accessed),
    )(audio_in, video_in, *flat)

    return out[:B, :num_classes]


# ---------------------------------------------------------------------------
# Pure-JAX references for correctness checks
# ---------------------------------------------------------------------------

def hybrid_fusion_ref(audio_feat, video_feat, p, eps=1e-5):
    """Full-precision reference matching the PyTorch module (eval mode)."""
    def bn(x, g, b, rm, rv):
        return (x - rm) / jnp.sqrt(rv + eps) * g + b

    a = jnp.mean(audio_feat, axis=1)
    v = jnp.mean(video_feat, axis=1)
    h = jnp.maximum(bn(a @ p["a_w1"] + p["a_b1"], p["a_gamma"], p["a_beta"],
                       p["a_rmean"], p["a_rvar"]), 0.0)
    a_emb = h @ p["a_w2"] + p["a_b2"]
    h = jnp.maximum(bn(v @ p["v_w1"] + p["v_b1"], p["v_gamma"], p["v_beta"],
                       p["v_rmean"], p["v_rvar"]), 0.0)
    v_emb = h @ p["v_w2"] + p["v_b2"]
    a_out = jnp.maximum(a_emb @ p["ao_w1"] + p["ao_b1"], 0.0) @ p["ao_w2"] + p["ao_b2"]
    v_out = jnp.maximum(v_emb @ p["vo_w1"] + p["vo_b1"], 0.0) @ p["vo_w2"] + p["vo_b2"]
    emb = jnp.concatenate([a_emb, v_emb], axis=1)
    f_out = jnp.maximum(emb @ p["f_w1"] + p["f_b1"], 0.0) @ p["f_w2"] + p["f_b2"]
    return (a_out + v_out + f_out) / 3.0


def hybrid_fusion_prep_ref(audio_feat, video_feat, prep, num_classes):
    """Reference using the prepared params and the same bf16-dot math path as the kernel."""
    bf16, f32 = jnp.bfloat16, jnp.float32
    B = audio_feat.shape[0]

    def dot(x, w):
        return jnp.dot(x.astype(bf16), w, preferred_element_type=f32)

    a = audio_feat.astype(bf16)
    v = video_feat.astype(bf16)
    a_x = a.reshape(B, -1) if prep["_fold_audio"] else jnp.sum(a.astype(f32), axis=1).astype(bf16)
    v_x = v.reshape(B, -1) if prep["_fold_video"] else jnp.sum(v.astype(f32), axis=1).astype(bf16)

    h = jnp.maximum(dot(a_x, prep["a_w1"]) + prep["a_b1"], 0.0)
    a_emb = dot(h, prep["a_w2"]) + prep["a_b2"]
    h = jnp.maximum(dot(v_x, prep["v_w1"]) + prep["v_b1"], 0.0)
    v_emb = dot(h, prep["v_w2"]) + prep["v_b2"]
    hh = jnp.maximum(dot(a_emb, prep["h_w1a"]) + dot(v_emb, prep["h_w1v"]) + prep["h_b1"], 0.0)
    out = dot(hh, prep["h_w2"]) + prep["h_b2"]
    return out[:, :num_classes]


if __name__ == "__main__":
    B, T_A, T_V = 8, 8, 6
    AUDIO_DIM, VIDEO_DIM, NUM_CLASSES = 64, 128, 10

    key = jax.random.PRNGKey(0)
    k_a, k_v, k_p = jax.random.split(key, 3)
    audio_feat = jax.random.normal(k_a, (B, T_A, AUDIO_DIM), jnp.float32)
    video_feat = jax.random.normal(k_v, (B, T_V, VIDEO_DIM), jnp.float32)

    raw_params = make_params(k_p, AUDIO_DIM, VIDEO_DIM, NUM_CLASSES)
    prep_params = prepare_params(raw_params, T_A, T_V, NUM_CLASSES)

    out = hybrid_fusion(audio_feat, video_feat, prep_params, NUM_CLASSES)
    out = jax.block_until_ready(out)
    assert out.shape == (B, NUM_CLASSES)

    # Tight check vs identical (bf16 input/weight) math.
    ref_p = jax.block_until_ready(
        hybrid_fusion_prep_ref(audio_feat, video_feat, prep_params, NUM_CLASSES))
    assert jnp.allclose(out, ref_p, atol=2e-2, rtol=2e-2), "mismatch vs prepared-param reference"

    # Semantic check vs the full-precision PyTorch-equivalent reference (bf16 => looser tol).
    ref_f = jax.block_until_ready(hybrid_fusion_ref(audio_feat, video_feat, raw_params))
    assert jnp.allclose(out, ref_f, atol=1e-1, rtol=1e-1), "mismatch vs full-precision reference"

    print("KERNEL_OK")
</pallas_src>

<mosaic_0001>
module attributes {stable_mosaic.version = 11 : i64} {
  func.func @hybrid_fusion_kernel(%arg0: i32, %arg1: memref<8x512xbf16, #tpu.memory_space<vmem>>, %arg2: memref<8x768xbf16, #tpu.memory_space<vmem>>, %arg3: memref<512x512xbf16, #tpu.memory_space<vmem>>, %arg4: memref<1x512xf32, #tpu.memory_space<vmem>>, %arg5: memref<512x128xbf16, #tpu.memory_space<vmem>>, %arg6: memref<1x128xf32, #tpu.memory_space<vmem>>, %arg7: memref<768x512xbf16, #tpu.memory_space<vmem>>, %arg8: memref<1x512xf32, #tpu.memory_space<vmem>>, %arg9: memref<512x128xbf16, #tpu.memory_space<vmem>>, %arg10: memref<1x128xf32, #tpu.memory_space<vmem>>, %arg11: memref<128x256xbf16, #tpu.memory_space<vmem>>, %arg12: memref<128x256xbf16, #tpu.memory_space<vmem>>, %arg13: memref<1x256xf32, #tpu.memory_space<vmem>>, %arg14: memref<256x128xbf16, #tpu.memory_space<vmem>>, %arg15: memref<1x128xf32, #tpu.memory_space<vmem>>, %arg16: memref<8x128xf32, #tpu.memory_space<vmem>>) attributes {dimension_semantics = [#tpu.dimension_semantics<parallel>], iteration_bounds = array<i64: 1>, scalar_prefetch = 0 : i64, scratch_operands = 0 : i64, tpu.core_type = #tpu.core_type<tc>, window_params = [{transform_indices = @transform_0, window_bounds = array<i64: 8, 512>}, {transform_indices = @transform_1, window_bounds = array<i64: 8, 768>}, {pipeline_mode = #tpu.pipeline_mode<synchronous>, transform_indices = @transform_2, window_bounds = array<i64: 512, 512>}, {pipeline_mode = #tpu.pipeline_mode<synchronous>, transform_indices = @transform_3, window_bounds = array<i64: 1, 512>}, {pipeline_mode = #tpu.pipeline_mode<synchronous>, transform_indices = @transform_4, window_bounds = array<i64: 512, 128>}, {pipeline_mode = #tpu.pipeline_mode<synchronous>, transform_indices = @transform_5, window_bounds = array<i64: 1, 128>}, {pipeline_mode = #tpu.pipeline_mode<synchronous>, transform_indices = @transform_6, window_bounds = array<i64: 768, 512>}, {pipeline_mode = #tpu.pipeline_mode<synchronous>, transform_indices = @transform_7, window_bounds = array<i64: 1, 512>}, {pipeline_mode = #tpu.pipeline_mode<synchronous>, transform_indices = @transform_8, window_bounds = array<i64: 512, 128>}, {pipeline_mode = #tpu.pipeline_mode<synchronous>, transform_indices = @transform_9, window_bounds = array<i64: 1, 128>}, {pipeline_mode = #tpu.pipeline_mode<synchronous>, transform_indices = @transform_10, window_bounds = array<i64: 128, 256>}, {pipeline_mode = #tpu.pipeline_mode<synchronous>, transform_indices = @transform_11, window_bounds = array<i64: 128, 256>}, {pipeline_mode = #tpu.pipeline_mode<synchronous>, transform_indices = @transform_12, window_bounds = array<i64: 1, 256>}, {pipeline_mode = #tpu.pipeline_mode<synchronous>, transform_indices = @transform_13, window_bounds = array<i64: 256, 128>}, {pipeline_mode = #tpu.pipeline_mode<synchronous>, transform_indices = @transform_14, window_bounds = array<i64: 1, 128>}, {transform_indices = @transform_15, window_bounds = array<i64: 8, 128>}]} {
    %c0 = arith.constant 0 : index
    %c0_0 = arith.constant 0 : index
    %0 = vector.load %arg1[%c0, %c0_0] : memref<8x512xbf16, #tpu.memory_space<vmem>>, vector<8x512xbf16>
    %c0_1 = arith.constant 0 : index
    %c0_2 = arith.constant 0 : index
    %1 = vector.load %arg2[%c0_1, %c0_2] : memref<8x768xbf16, #tpu.memory_space<vmem>>, vector<8x768xbf16>
    %c0_3 = arith.constant 0 : index
    %c0_4 = arith.constant 0 : index
    %2 = vector.load %arg3[%c0_3, %c0_4] : memref<512x512xbf16, #tpu.memory_space<vmem>>, vector<512x512xbf16>
    %cst = arith.constant dense<0.000000e+00> : vector<8x512xf32>
    %3 = tpu.matmul %0, %2, %cst {dimension_numbers = #tpu.dot_dimension_numbers<[1], [0], [0], [1], [0, 0, 1, 1], [], []>} : vector<8x512xbf16>, vector<512x512xbf16>, vector<8x512xf32> -> vector<8x512xf32>
    %c0_5 = arith.constant 0 : index
    %c0_6 = arith.constant 0 : index
    %4 = vector.load %arg4[%c0_5, %c0_6] : memref<1x512xf32, #tpu.memory_space<vmem>>, vector<1x512xf32>
    %5 = vector.broadcast %4 : vector<1x512xf32> to vector<8x512xf32>
    %6 = arith.addf %3, %5 : vector<8x512xf32>
    %cst_7 = arith.constant 0.000000e+00 : f32
    %7 = vector.broadcast %cst_7 : f32 to vector<8x512xf32>
    %8 = arith.maximumf %6, %7 : vector<8x512xf32>
    %9 = arith.truncf %8 : vector<8x512xf32> to vector<8x512xbf16>
    %c0_8 = arith.constant 0 : index
    %c0_9 = arith.constant 0 : index
    %10 = vector.load %arg5[%c0_8, %c0_9] : memref<512x128xbf16, #tpu.memory_space<vmem>>, vector<512x128xbf16>
    %cst_10 = arith.constant dense<0.000000e+00> : vector<8x128xf32>
    %11 = tpu.matmul %9, %10, %cst_10 {dimension_numbers = #tpu.dot_dimension_numbers<[1], [0], [0], [1], [0, 0, 1, 1], [], []>} : vector<8x512xbf16>, vector<512x128xbf16>, vector<8x128xf32> -> vector<8x128xf32>
    %c0_11 = arith.constant 0 : index
    %c0_12 = arith.constant 0 : index
    %12 = vector.load %arg6[%c0_11, %c0_12] : memref<1x128xf32, #tpu.memory_space<vmem>>, vector<1x128xf32>
    %13 = vector.broadcast %12 : vector<1x128xf32> to vector<8x128xf32>
    %14 = arith.addf %11, %13 : vector<8x128xf32>
    %c0_13 = arith.constant 0 : index
    %c0_14 = arith.constant 0 : index
    %15 = vector.load %arg7[%c0_13, %c0_14] : memref<768x512xbf16, #tpu.memory_space<vmem>>, vector<768x512xbf16>
    %cst_15 = arith.constant dense<0.000000e+00> : vector<8x512xf32>
    %16 = tpu.matmul %1, %15, %cst_15 {dimension_numbers = #tpu.dot_dimension_numbers<[1], [0], [0], [1], [0, 0, 1, 1], [], []>} : vector<8x768xbf16>, vector<768x512xbf16>, vector<8x512xf32> -> vector<8x512xf32>
    %c0_16 = arith.constant 0 : index
    %c0_17 = arith.constant 0 : index
    %17 = vector.load %arg8[%c0_16, %c0_17] : memref<1x512xf32, #tpu.memory_space<vmem>>, vector<1x512xf32>
    %18 = vector.broadcast %17 : vector<1x512xf32> to vector<8x512xf32>
    %19 = arith.addf %16, %18 : vector<8x512xf32>
    %cst_18 = arith.constant 0.000000e+00 : f32
    %20 = vector.broadcast %cst_18 : f32 to vector<8x512xf32>
    %21 = arith.maximumf %19, %20 : vector<8x512xf32>
    %22 = arith.truncf %21 : vector<8x512xf32> to vector<8x512xbf16>
    %c0_19 = arith.constant 0 : index
    %c0_20 = arith.constant 0 : index
    %23 = vector.load %arg9[%c0_19, %c0_20] : memref<512x128xbf16, #tpu.memory_space<vmem>>, vector<512x128xbf16>
    %cst_21 = arith.constant dense<0.000000e+00> : vector<8x128xf32>
    %24 = tpu.matmul %22, %23, %cst_21 {dimension_numbers = #tpu.dot_dimension_numbers<[1], [0], [0], [1], [0, 0, 1, 1], [], []>} : vector<8x512xbf16>, vector<512x128xbf16>, vector<8x128xf32> -> vector<8x128xf32>
    %c0_22 = arith.constant 0 : index
    %c0_23 = arith.constant 0 : index
    %25 = vector.load %arg10[%c0_22, %c0_23] : memref<1x128xf32, #tpu.memory_space<vmem>>, vector<1x128xf32>
    %26 = vector.broadcast %25 : vector<1x128xf32> to vector<8x128xf32>
    %27 = arith.addf %24, %26 : vector<8x128xf32>
    %28 = arith.truncf %14 : vector<8x128xf32> to vector<8x128xbf16>
    %c0_24 = arith.constant 0 : index
    %c0_25 = arith.constant 0 : index
    %29 = vector.load %arg11[%c0_24, %c0_25] : memref<128x256xbf16, #tpu.memory_space<vmem>>, vector<128x256xbf16>
    %cst_26 = arith.constant dense<0.000000e+00> : vector<8x256xf32>
    %30 = tpu.matmul %28, %29, %cst_26 {dimension_numbers = #tpu.dot_dimension_numbers<[1], [0], [0], [1], [0, 0, 1, 1], [], []>} : vector<8x128xbf16>, vector<128x256xbf16>, vector<8x256xf32> -> vector<8x256xf32>
    %31 = arith.truncf %27 : vector<8x128xf32> to vector<8x128xbf16>
    %c0_27 = arith.constant 0 : index
    %c0_28 = arith.constant 0 : index
    %32 = vector.load %arg12[%c0_27, %c0_28] : memref<128x256xbf16, #tpu.memory_space<vmem>>, vector<128x256xbf16>
    %cst_29 = arith.constant dense<0.000000e+00> : vector<8x256xf32>
    %33 = tpu.matmul %31, %32, %cst_29 {dimension_numbers = #tpu.dot_dimension_numbers<[1], [0], [0], [1], [0, 0, 1, 1], [], []>} : vector<8x128xbf16>, vector<128x256xbf16>, vector<8x256xf32> -> vector<8x256xf32>
    %34 = arith.addf %30, %33 : vector<8x256xf32>
    %c0_30 = arith.constant 0 : index
    %c0_31 = arith.constant 0 : index
    %35 = vector.load %arg13[%c0_30, %c0_31] : memref<1x256xf32, #tpu.memory_space<vmem>>, vector<1x256xf32>
    %36 = vector.broadcast %35 : vector<1x256xf32> to vector<8x256xf32>
    %37 = arith.addf %34, %36 : vector<8x256xf32>
    %cst_32 = arith.constant 0.000000e+00 : f32
    %38 = vector.broadcast %cst_32 : f32 to vector<8x256xf32>
    %39 = arith.maximumf %37, %38 : vector<8x256xf32>
    %40 = arith.truncf %39 : vector<8x256xf32> to vector<8x256xbf16>
    %c0_33 = arith.constant 0 : index
    %c0_34 = arith.constant 0 : index
    %41 = vector.load %arg14[%c0_33, %c0_34] : memref<256x128xbf16, #tpu.memory_space<vmem>>, vector<256x128xbf16>
    %cst_35 = arith.constant dense<0.000000e+00> : vector<8x128xf32>
    %42 = tpu.matmul %40, %41, %cst_35 {dimension_numbers = #tpu.dot_dimension_numbers<[1], [0], [0], [1], [0, 0, 1, 1], [], []>} : vector<8x256xbf16>, vector<256x128xbf16>, vector<8x128xf32> -> vector<8x128xf32>
    %c0_36 = arith.constant 0 : index
    %c0_37 = arith.constant 0 : index
    %43 = vector.load %arg15[%c0_36, %c0_37] : memref<1x128xf32, #tpu.memory_space<vmem>>, vector<1x128xf32>
    %44 = vector.broadcast %43 : vector<1x128xf32> to vector<8x128xf32>
    %45 = arith.addf %42, %44 : vector<8x128xf32>
    %c0_38 = arith.constant 0 : index
    %c0_39 = arith.constant 0 : index
    %46 = vector.load %arg16[%c0_38, %c0_39] : memref<8x128xf32, #tpu.memory_space<vmem>>, vector<8x128xf32>
    tpu.vector_store %arg16[%c0_38, %c0_39], %45 {strides = array<i32>} : memref<8x128xf32, #tpu.memory_space<vmem>>, vector<8x128xf32>,
    return
  }
  func.func @transform_0(%arg0: i32) -> (i32, i32) {
    %c0_i32 = arith.constant 0 : i32
    %c0_i32_0 = arith.constant 0 : i32
    return %arg0, %c0_i32 : i32, i32
  }
  func.func @transform_1(%arg0: i32) -> (i32, i32) {
    %c0_i32 = arith.constant 0 : i32
    %c0_i32_0 = arith.constant 0 : i32
    return %arg0, %c0_i32 : i32, i32
  }
  func.func @transform_2(%arg0: i32) -> (i32, i32) {
    %c0_i32 = arith.constant 0 : i32
    %c0_i32_0 = arith.constant 0 : i32
    %c0_i32_1 = arith.constant 0 : i32
    return %c0_i32, %c0_i32_0 : i32, i32
  }
  func.func @transform_3(%arg0: i32) -> (i32, i32) {
    %c0_i32 = arith.constant 0 : i32
    %c0_i32_0 = arith.constant 0 : i32
    %c0_i32_1 = arith.constant 0 : i32
    return %c0_i32, %c0_i32_0 : i32, i32
  }
  func.func @transform_4(%arg0: i32) -> (i32, i32) {
    %c0_i32 = arith.constant 0 : i32
    %c0_i32_0 = arith.constant 0 : i32
    %c0_i32_1 = arith.constant 0 : i32
    return %c0_i32, %c0_i32_0 : i32, i32
  }
  func.func @transform_5(%arg0: i32) -> (i32, i32) {
    %c0_i32 = arith.constant 0 : i32
    %c0_i32_0 = arith.constant 0 : i32
    %c0_i32_1 = arith.constant 0 : i32
    return %c0_i32, %c0_i32_0 : i32, i32
  }
  func.func @transform_6(%arg0: i32) -> (i32, i32) {
    %c0_i32 = arith.constant 0 : i32
    %c0_i32_0 = arith.constant 0 : i32
    %c0_i32_1 = arith.constant 0 : i32
    return %c0_i32, %c0_i32_0 : i32, i32
  }
  func.func @transform_7(%arg0: i32) -> (i32, i32) {
    %c0_i32 = arith.constant 0 : i32
    %c0_i32_0 = arith.constant 0 : i32
    %c0_i32_1 = arith.constant 0 : i32
    return %c0_i32, %c0_i32_0 : i32, i32
  }
  func.func @transform_8(%arg0: i32) -> (i32, i32) {
    %c0_i32 = arith.constant 0 : i32
    %c0_i32_0 = arith.constant 0 : i32
    %c0_i32_1 = arith.constant 0 : i32
    return %c0_i32, %c0_i32_0 : i32, i32
  }
  func.func @transform_9(%arg0: i32) -> (i32, i32) {
    %c0_i32 = arith.constant 0 : i32
    %c0_i32_0 = arith.constant 0 : i32
    %c0_i32_1 = arith.constant 0 : i32
    return %c0_i32, %c0_i32_0 : i32, i32
  }
  func.func @transform_10(%arg0: i32) -> (i32, i32) {
    %c0_i32 = arith.constant 0 : i32
    %c0_i32_0 = arith.constant 0 : i32
    %c0_i32_1 = arith.constant 0 : i32
    return %c0_i32, %c0_i32_0 : i32, i32
  }
  func.func @transform_11(%arg0: i32) -> (i32, i32) {
    %c0_i32 = arith.constant 0 : i32
    %c0_i32_0 = arith.constant 0 : i32
    %c0_i32_1 = arith.constant 0 : i32
    return %c0_i32, %c0_i32_0 : i32, i32
  }
  func.func @transform_12(%arg0: i32) -> (i32, i32) {
    %c0_i32 = arith.constant 0 : i32
    %c0_i32_0 = arith.constant 0 : i32
    %c0_i32_1 = arith.constant 0 : i32
    return %c0_i32, %c0_i32_0 : i32, i32
  }
  func.func @transform_13(%arg0: i32) -> (i32, i32) {
    %c0_i32 = arith.constant 0 : i32
    %c0_i32_0 = arith.constant 0 : i32
    %c0_i32_1 = arith.constant 0 : i32
    return %c0_i32, %c0_i32_0 : i32, i32
  }
  func.func @transform_14(%arg0: i32) -> (i32, i32) {
    %c0_i32 = arith.constant 0 : i32
    %c0_i32_0 = arith.constant 0 : i32
    %c0_i32_1 = arith.constant 0 : i32
    return %c0_i32, %c0_i32_0 : i32, i32
  }
  func.func @transform_15(%arg0: i32) -> (i32, i32) {
    %c0_i32 = arith.constant 0 : i32
    %c0_i32_0 = arith.constant 0 : i32
    return %arg0, %c0_i32 : i32, i32
  }
}

</mosaic_0001>

<bundles_post_ra>
// kernel: tpu_custom_call.1
= control target key start
LH: loop header
LB: loop body
LE: loop exit
PB: predicated region body
PF: predicated region fallthrough
CT: control target
= control target key end

     0   :  { %20 = vsyncpa [#allocation3], 0  ;;  %s6541_s0 = inlined_call_operand.hbm [shape: bf16[8,512], index: 0, kind: input, shape index: {}]   ;;  %s6542_s1 = inlined_call_operand.hbm [shape: bf16[8,768], index: 1, kind: input, shape index: {}]   ;;  %s6543_s2 = inlined_call_operand.hbm [shape: bf16[512,512], index: 2, kind: input, shape index: {}]   ;;  %s6544_s3 = inlined_call_operand.hbm [shape: f32[1,512], index: 3, kind: input, shape index: {}]   ;;  %s6545_s4 = inlined_call_operand.hbm [shape: bf16[512,128], index: 4, kind: input, shape index: {}]   ;;  %s6546_s5 = inlined_call_operand.hbm [shape: f32[1,128], index: 5, kind: input, shape index: {}]   ;;  %s6547_s6 = inlined_call_operand.hbm [shape: bf16[768,512], index: 6, kind: input, shape index: {}]   ;;  %s6548_s7 = inlined_call_operand.vmem [shape: f32[1,512], index: 7, kind: input, shape index: {}]   ;;  %s6549_s8 = inlined_call_operand.hbm [shape: bf16[512,128], index: 8, kind: input, shape index: {}]   ;;  %s6550_s9 = inlined_call_operand.vmem [shape: f32[1,128], index: 9, kind: input, shape index: {}]   ;;  %s6551_s10 = inlined_call_operand.hbm [shape: bf16[128,256], index: 10, kind: input, shape index: {}]   ;;  %s6552_s11 = inlined_call_operand.hbm [shape: bf16[128,256], index: 11, kind: input, shape index: {}]   ;;  %s6553_s12 = inlined_call_operand.vmem [shape: f32[1,256], index: 12, kind: input, shape index: {}]   ;;  %s6554_s13 = inlined_call_operand.hbm [shape: bf16[256,128], index: 13, kind: input, shape index: {}]   ;;  %s6555_s14 = inlined_call_operand.vmem [shape: f32[1,128], index: 14, kind: input, shape index: {}]   ;;  %s6556_s15 = inlined_call_operand.hbm [shape: f32[8,128], index: 15, kind: output, shape index: {}]  }
   0x1   :  { %21 = vsyncpa [#allocation6], 0 }
   0x2   :  { %22 = vsyncpa [#allocation9], 0 }
   0x3   :  { %23 = vsyncpa [#allocation12], 0 }
   0x4   :  { %24 = vsyncpa [#allocation15], 0 }
   0x5   :  { %25 = vsyncpa [#allocation18], 0  ;;  %s43_s20 = sshll.u32 %s6542_s1, 4  ;;  %s44_s20 = int_to_ptr.hbm [resolvable:$true] %s43_s20 }
   0x6   :  { %26 = vsyncpa [#allocation4], 0  ;;  %s6276_s21 = smov [#allocation5]   ;;  %s67_s25 = sshll.u32 %s6544_s3, 4  ;;  %s68_s25 = int_to_ptr.hbm [resolvable:$true] %s67_s25 }
   0x7   :  { %s45_s22 = sshll.u32 %s6276_s21, 4  ;;  %s6277_s26 = smov [#allocation8]   ;;  %s46_s22 = int_to_ptr.vmem [resolvable:$true] %s45_s22 }
   0x8   :  { %48 = dma.hbm_to_vmem [thread:$0]  %s44_s20, 384, %s46_s22, [#allocation6]  }
   0x9   :  { %s69_s27 = sshll.u32 %s6277_s26, 4  ;;  %s91_s30 = sshll.u32 %s6546_s5, 4  ;;  %s70_s27 = int_to_ptr.vmem [resolvable:$true] %s69_s27  ;;  %s92_s30 = int_to_ptr.hbm [resolvable:$true] %s91_s30 }
   0xa   :  { %72 = dma.hbm_to_vmem [thread:$0]  %s68_s25, 64, %s70_s27, [#allocation9]  }
   0xb   :  { %s6278_s1 = smov [#allocation11]   ;;  %s116_s19 = sshll.u32 %s6549_s8, 4  ;;  %s117_s19 = int_to_ptr.hbm [resolvable:$true] %s116_s19 }
   0xc   :  { %s93_s16 = sshll.u32 %s6278_s1, 4  ;;  %s6279_s3 = smov [#allocation14]   ;;  %s94_s16 = int_to_ptr.vmem [resolvable:$true] %s93_s16 }
   0xd   :  { %96 = dma.hbm_to_vmem [thread:$0]  %s92_s30, 16, %s94_s16, [#allocation12]  }
   0xe   :  { %s118_s20 = sshll.u32 %s6279_s3, 4  ;;  %s6280_s21 = smov 64   ;;  %s119_s20 = int_to_ptr.vmem [resolvable:$true] %s118_s20 }
   0xf   :  { %s6281_s22 = smov 4   ;;  %s144_s24 = sshll.u32 %s6552_s11, 4  ;;  %s145_s24 = int_to_ptr.hbm [resolvable:$true] %s144_s24 }
  0x10   :  { %124 = dma.hbm_to_vmem [thread:$0]  %s117_s19, 4096, %s119_s20, [#allocation15], %s6280_s21, %s6280_s21, %s6281_s22  }
  0x11   :  { %s6282_s25 = smov [#allocation17]   ;;  %s32_s28 = sshll.u32 %s6541_s0, 4  ;;  %s33_s28 = int_to_ptr.hbm [resolvable:$true] %s32_s28 }
  0x12   :  { %s146_s26 = sshll.u32 %s6282_s25, 4  ;;  %s6283_s29 = smov 128   ;;  %s147_s26 = int_to_ptr.vmem [resolvable:$true] %s146_s26 }
  0x13   :  { %s6284_s30 = smov 8   ;;  %s6285_s1 = smov [#allocation2]  }
  0x14   :  { %152 = dma.hbm_to_vmem [thread:$0]  %s145_s24, 2048, %s147_s26, [#allocation18], %s6283_s29, %s6283_s29, %s6284_s30  }
  0x15   :  { %s34_s16 = sshll.u32 %s6285_s1, 4  ;;  %s53_s11 = sshll.u32 %s6543_s2, 4  ;;  %s35_s16 = int_to_ptr.vmem [resolvable:$true] %s34_s16  ;;  %s54_s11 = int_to_ptr.hbm [resolvable:$true] %s53_s11 }
  0x16   :  { %37 = dma.hbm_to_vmem [thread:$0]  %s33_s28, 256, %s35_s16, [#allocation3]  }
  0x17   :  { %s6286_s19 = smov [#allocation7]   ;;  %s77_s5 = sshll.u32 %s6545_s4, 4  ;;  %s78_s5 = int_to_ptr.hbm [resolvable:$true] %s77_s5 }
  0x18   :  { %s55_s3 = sshll.u32 %s6286_s19, 4  ;;  %s6287_s23 = smov 256   ;;  %s56_s3 = int_to_ptr.vmem [resolvable:$true] %s55_s3 }
  0x19   :  { %s6288_s25 = smov 16   ;;  %s6289_s24 = smov [#allocation10]  }
  0x1a   :  { %61 = dma.hbm_to_vmem [thread:$0]  %s54_s11, 16384, %s56_s3, [#allocation6], %s6287_s23, %s6287_s23, %s6288_s25  }
  0x1b   :  { %s79_s26 = sshll.u32 %s6289_s24, 4  ;;  %s101_s2 = sshll.u32 %s6547_s6, 4  ;;  %s80_s26 = int_to_ptr.vmem [resolvable:$true] %s79_s26  ;;  %s102_s2 = int_to_ptr.hbm [resolvable:$true] %s101_s2 }
  0x1c   :  { %85 = dma.hbm_to_vmem [thread:$0]  %s78_s5, 4096, %s80_s26, [#allocation9], %s6280_s21, %s6280_s21, %s6281_s22  }
  0x1d   :  { %s131_s4 = sshll.u32 %s6551_s10, 4  ;;  %s6290_s16 = smov [#allocation13]   ;;  %s132_s4 = int_to_ptr.hbm [resolvable:$true] %s131_s4 }
  0x1e   :  { %s103_s17 = sshll.u32 %s6290_s16, 4  ;;  %s6291_s18 = smov [#allocation16]   ;;  %s104_s17 = int_to_ptr.vmem [resolvable:$true] %s103_s17 }
  0x1f   :  { %109 = dma.hbm_to_vmem [thread:$0]  %s102_s2, 24576, %s104_s17, [#allocation12], %s6287_s23, %s6287_s23, %s6288_s25  }
  0x20   :  { %s133_s11 = sshll.u32 %s6291_s18, 4  ;;  %s159_s6 = sshll.u32 %s6554_s13, 4  ;;  %s134_s11 = int_to_ptr.vmem [resolvable:$true] %s133_s11  ;;  %s160_s6 = int_to_ptr.hbm [resolvable:$true] %s159_s6 }
  0x21   :  { %139 = dma.hbm_to_vmem [thread:$0]  %s132_s4, 2048, %s134_s11, [#allocation15], %s6283_s29, %s6283_s29, %s6284_s30  }
  0x22   :  { %s6292_s0 = smov [#allocation19]  }
  0x23   :  { %s161_s20 = sshll.u32 %s6292_s0, 4  ;;  %s162_s20 = int_to_ptr.vmem [resolvable:$true] %s161_s20 }
  0x24   :  { %167 = dma.hbm_to_vmem [thread:$0]  %s160_s6, 2048, %s162_s20, [#allocation18], %s6280_s21, %s6280_s21, %s6281_s22  }
  0x25   :  { %6262 = dma.done.wait [#allocation3], 256  }
  0x26   :  { %6263 = vsyncadd [#allocation3], 4294967040 }
  0x27   :  { %6264 = dma.done.wait [#allocation6], 16768  }
  0x28   :  { %6265 = vsyncadd [#allocation6], 4294950528 }
  0x29   :  { %6266 = dma.done.wait [#allocation9], 4160  }
  0x2a   :  { %6267 = vsyncadd [#allocation9], 4294963136 }
  0x2b   :  { %6268 = dma.done.wait [#allocation12], 24592  }
  0x2c   :  { %6269 = vsyncadd [#allocation12], 4294942704 }
  0x2d   :  { %6270 = dma.done.wait [#allocation15], 6144  }
  0x2e   :  { %6271 = vsyncadd [#allocation15], 4294961152 }
  0x2f   :  { %6272 = dma.done.wait [#allocation18], 4096  }
  0x30   :  { %6273 = vsyncadd [#allocation18], 4294963200  ;;  %v3907_v0 = vld [vmem:[#allocation7 + $0xe0] sm:$0xf]  ;;  %v5551_v1 = vld [vmem:[#allocation7 + $0xec] sm:$0xf0] }
  0x31   :  { %v4035_v2 = vld [vmem:[#allocation7 + $0x1e0] sm:$0xf]  ;;  %v3908_v3 = vor.u32 %v5551_v1, %v3907_v0  ;;  %v5583_v4 = vld [vmem:[#allocation7 + $0x1ec] sm:$0xf0]  ;;  %s3778_s24 = sshll.u32 %s6556_s15, 4  ;;  %s3779_s24 = int_to_ptr.hbm [resolvable:$true] %s3778_s24 }
  0x32   :  { %v4163_v5 = vld [vmem:[#allocation7 + $0x2e0] sm:$0xf]  ;;  %v5615_v6 = vld [vmem:[#allocation7 + $0x2ec] sm:$0xf0]  ;;  %v4036_v7 = vor.u32 %v5583_v4, %v4035_v2 }
  0x33   :  { %v4164_v8 = vor.u32 %v5615_v6, %v4163_v5  ;;  %v4291_v9 = vld [vmem:[#allocation7 + $0x3e0] sm:$0xf]  ;;  %v5647_v10 = vld [vmem:[#allocation7 + $0x3ec] sm:$0xf0]  ;;  %1011 = vmatpush.bf16.msra.mxu0 %v3908_v3 }
  0x34   :  { %v3891_v11 = vld [vmem:[#allocation7 + $0xc0] sm:$0xf]  ;;  %v4292_v12 = vor.u32 %v5647_v10, %v4291_v9  ;;  %v5547_v13 = vld [vmem:[#allocation7 + $0xcc] sm:$0xf0]  ;;  %1024 = vmatpush.bf16.msra.mxu1 %v4036_v7 }
  0x35   :  { %v4019_v14 = vld [vmem:[#allocation7 + $0x1c0] sm:$0xf]  ;;  %v5579_v15 = vld [vmem:[#allocation7 + $0x1cc] sm:$0xf0]  ;;  %1037 = vmatpush.bf16.msra.mxu2 %v4164_v8  ;;  %v3892_v16 = vor.u32 %v5547_v13, %v3891_v11 }
  0x36   :  { %v4020_v17 = vor.u32 %v5579_v15, %v4019_v14  ;;  %v4147_v18 = vld [vmem:[#allocation7 + $0x2c0] sm:$0xf]  ;;  %v5611_v19 = vld [vmem:[#allocation7 + $0x2cc] sm:$0xf0]  ;;  %1050 = vmatpush.bf16.msra.mxu3 %v4292_v12 }
  0x37   :  { %v4275_v20 = vld [vmem:[#allocation7 + $0x3c0] sm:$0xf]  ;;  %v4148_v21 = vor.u32 %v5611_v19, %v4147_v18  ;;  %v5643_v22 = vld [vmem:[#allocation7 + $0x3cc] sm:$0xf0]  ;;  %1012 = vmatpush.bf16.msra.mxu0 %v3892_v16 }
  0x38   :  { %v3875_v23 = vld [vmem:[#allocation7 + $0xa0] sm:$0xf]  ;;  %v5543_v24 = vld [vmem:[#allocation7 + $0xac] sm:$0xf0]  ;;  %v4276_v25 = vor.u32 %v5643_v22, %v4275_v20  ;;  %1025 = vmatpush.bf16.msra.mxu1 %v4020_v17 }
  0x39   :  { %v4003_v26 = vld [vmem:[#allocation7 + $0x1a0] sm:$0xf]  ;;  %v5575_v27 = vld [vmem:[#allocation7 + $0x1ac] sm:$0xf0]  ;;  %v3876_v29 = vor.u32 %v5543_v24, %v3875_v23  ;;  %1038 = vmatpush.bf16.msra.mxu2 %v4148_v21 }
  0x3a   :  { %v4131_v28 = vld [vmem:[#allocation7 + $0x2a0] sm:$0xf]  ;;  %v5607_v30 = vld [vmem:[#allocation7 + $0x2ac] sm:$0xf0]  ;;  %v4004_v33 = vor.u32 %v5575_v27, %v4003_v26  ;;  %1051 = vmatpush.bf16.msra.mxu3 %v4276_v25 }
  0x3b   :  { %v4259_v31 = vld [vmem:[#allocation7 + $0x3a0] sm:$0xf]  ;;  %v5639_v32 = vld [vmem:[#allocation7 + $0x3ac] sm:$0xf0]  ;;  %v4132_v34 = vor.u32 %v5607_v30, %v4131_v28  ;;  %1013 = vmatpush.bf16.msra.mxu0 %v3876_v29  ;;  %v5549_v28 = vld [vmem:[#allocation7 + $0xe4] sm:$0xf] }
  0x3c   :  { %v3859_v35 = vld [vmem:[#allocation7 + $0x80] sm:$0xf]  ;;  %v5539_v36 = vld [vmem:[#allocation7 + $0x8c] sm:$0xf0]  ;;  %v4260_v38 = vor.u32 %v5639_v32, %v4259_v31  ;;  %1026 = vmatpush.bf16.msra.mxu1 %v4004_v33  ;;  %v3909_v29 = vld [vmem:[#allocation7 + $0xf0] sm:$0xf0] }
  0x3d   :  { %v3987_v37 = vld [vmem:[#allocation7 + $0x180] sm:$0xf]  ;;  %v5571_v39 = vld [vmem:[#allocation7 + $0x18c] sm:$0xf0]  ;;  %v3860_v44 = vor.u32 %v5539_v36, %v3859_v35  ;;  %1039 = vmatpush.bf16.msra.mxu2 %v4132_v34  ;;  %v5581_v30 = vld [vmem:[#allocation7 + $0x1e4] sm:$0xf] }
  0x3e   :  { %v4115_v40 = vld [vmem:[#allocation7 + $0x280] sm:$0xf]  ;;  %v5603_v41 = vld [vmem:[#allocation7 + $0x28c] sm:$0xf0]  ;;  %v3988_v45 = vor.u32 %v5571_v39, %v3987_v37  ;;  %1052 = vmatpush.bf16.msra.mxu3 %v4260_v38  ;;  %v4037_v32 = vld [vmem:[#allocation7 + $0x1f0] sm:$0xf0] }
  0x3f   :  { %v4243_v42 = vld [vmem:[#allocation7 + $0x380] sm:$0xf]  ;;  %v5635_v43 = vld [vmem:[#allocation7 + $0x38c] sm:$0xf0]  ;;  %v4116_v46 = vor.u32 %v5603_v41, %v4115_v40  ;;  %1014 = vmatpush.bf16.msra.mxu0 %v3860_v44  ;;  %v5613_v33 = vld [vmem:[#allocation7 + $0x2e4] sm:$0xf]  ;;  %v3912_v40 = vor.u32 %v5549_v28, %v3909_v29  ;;  %v4040_v41 = vor.u32 %v5581_v30, %v4037_v32 }
  0x40   :  { %v3843_v47 = vld [vmem:[#allocation7 + $0x60] sm:$0xf]  ;;  %v5535_v48 = vld [vmem:[#allocation7 + $0x6c] sm:$0xf0]  ;;  %v4244_v50 = vor.u32 %v5635_v43, %v4243_v42  ;;  %1027 = vmatpush.bf16.msra.mxu1 %v3988_v45  ;;  %v4165_v34 = vld [vmem:[#allocation7 + $0x2f0] sm:$0xf0] }
  0x41   :  { %v3971_v49 = vld [vmem:[#allocation7 + $0x160] sm:$0xf]  ;;  %v5567_v51 = vld [vmem:[#allocation7 + $0x16c] sm:$0xf0]  ;;  %v3844_v56 = vor.u32 %v5535_v48, %v3843_v47  ;;  %1040 = vmatpush.bf16.msra.mxu2 %v4116_v46  ;;  %v5645_v37 = vld [vmem:[#allocation7 + $0x3e4] sm:$0xf]  ;;  %v4168_v42 = vor.u32 %v5613_v33, %v4165_v34 }
  0x42   :  { %v4099_v52 = vld [vmem:[#allocation7 + $0x260] sm:$0xf]  ;;  %v5599_v53 = vld [vmem:[#allocation7 + $0x26c] sm:$0xf0]  ;;  %v3972_v57 = vor.u32 %v5567_v51, %v3971_v49  ;;  %1053 = vmatpush.bf16.msra.mxu3 %v4244_v50  ;;  %v4293_v38 = vld [vmem:[#allocation7 + $0x3f0] sm:$0xf0] }
  0x43   :  { %v4227_v54 = vld [vmem:[#allocation7 + $0x360] sm:$0xf]  ;;  %v5631_v55 = vld [vmem:[#allocation7 + $0x36c] sm:$0xf0]  ;;  %v4100_v58 = vor.u32 %v5599_v53, %v4099_v52  ;;  %1015 = vmatpush.bf16.msra.mxu0 %v3844_v56  ;;  %v5545_v43 = vld [vmem:[#allocation7 + $0xc4] sm:$0xf]  ;;  %v4296_v46 = vor.u32 %v5645_v37, %v4293_v38 }
  0x44   :  { %v3827_v59 = vld [vmem:[#allocation7 + $0x40] sm:$0xf]  ;;  %v5531_v60 = vld [vmem:[#allocation7 + $0x4c] sm:$0xf0]  ;;  %v4228_v62 = vor.u32 %v5631_v55, %v4227_v54  ;;  %1028 = vmatpush.bf16.msra.mxu1 %v3972_v57  ;;  %v3893_v44 = vld [vmem:[#allocation7 + $0xd0] sm:$0xf0] }
  0x45   :  { %v3955_v61 = vld [vmem:[#allocation7 + $0x140] sm:$0xf]  ;;  %v5563_v63 = vld [vmem:[#allocation7 + $0x14c] sm:$0xf0]  ;;  %v3828_v4 = vor.u32 %v5531_v60, %v3827_v59  ;;  %1041 = vmatpush.bf16.msra.mxu2 %v4100_v58  ;;  %v5577_v45 = vld [vmem:[#allocation7 + $0x1c4] sm:$0xf]  ;;  %v3896_v53 = vor.u32 %v5545_v43, %v3893_v44 }
  0x46   :  { %v4083_v0 = vld [vmem:[#allocation7 + $0x240] sm:$0xf]  ;;  %v5595_v1 = vld [vmem:[#allocation7 + $0x24c] sm:$0xf0]  ;;  %v3956_v5 = vor.u32 %v5563_v63, %v3955_v61  ;;  %1054 = vmatpush.bf16.msra.mxu3 %v4228_v62  ;;  %v4021_v47 = vld [vmem:[#allocation7 + $0x1d0] sm:$0xf0] }
  0x47   :  { %v4211_v2 = vld [vmem:[#allocation7 + $0x340] sm:$0xf]  ;;  %v5627_v3 = vld [vmem:[#allocation7 + $0x34c] sm:$0xf0]  ;;  %v4084_v6 = vor.u32 %v5595_v1, %v4083_v0  ;;  %1016 = vmatpush.bf16.msra.mxu0 %v3828_v4  ;;  %v5609_v48 = vld [vmem:[#allocation7 + $0x2c4] sm:$0xf]  ;;  %v4024_v57 = vor.u32 %v5577_v45, %v4021_v47 }
  0x48   :  { %v3811_v7 = vld [vmem:[#allocation7 + $0x20] sm:$0xf]  ;;  %v5527_v8 = vld [vmem:[#allocation7 + $0x2c] sm:$0xf0]  ;;  %v4212_v10 = vor.u32 %v5627_v3, %v4211_v2  ;;  %1029 = vmatpush.bf16.msra.mxu1 %v3956_v5  ;;  %v4149_v49 = vld [vmem:[#allocation7 + $0x2d0] sm:$0xf0] }
  0x49   :  { %v3939_v9 = vld [vmem:[#allocation7 + $0x120] sm:$0xf]  ;;  %v5559_v11 = vld [vmem:[#allocation7 + $0x12c] sm:$0xf0]  ;;  %v3812_v16 = vor.u32 %v5527_v8, %v3811_v7  ;;  %1042 = vmatpush.bf16.msra.mxu2 %v4084_v6  ;;  %v5641_v50 = vld [vmem:[#allocation7 + $0x3c4] sm:$0xf]  ;;  %v4152_v58 = vor.u32 %v5609_v48, %v4149_v49 }
  0x4a   :  { %v4067_v12 = vld [vmem:[#allocation7 + $0x220] sm:$0xf]  ;;  %v5591_v13 = vld [vmem:[#allocation7 + $0x22c] sm:$0xf0]  ;;  %v3940_v19 = vor.u32 %v5559_v11, %v3939_v9  ;;  %1055 = vmatpush.bf16.msra.mxu3 %v4212_v10  ;;  %v4277_v51 = vld [vmem:[#allocation7 + $0x3d0] sm:$0xf0] }
  0x4b   :  { %v4195_v14 = vld [vmem:[#allocation7 + $0x320] sm:$0xf]  ;;  %v5623_v15 = vld [vmem:[#allocation7 + $0x32c] sm:$0xf0]  ;;  %v4068_v20 = vor.u32 %v5591_v13, %v4067_v12  ;;  %1017 = vmatpush.bf16.msra.mxu0 %v3812_v16  ;;  %v5541_v54 = vld [vmem:[#allocation7 + $0xa4] sm:$0xf]  ;;  %v4280_v62 = vor.u32 %v5641_v50, %v4277_v51 }
  0x4c   :  { %v3795_v17 = vld [vmem:[#allocation7] sm:$0xf]  ;;  %v5523_v18 = vld [vmem:[#allocation7 + $0xc] sm:$0xf0]  ;;  %v4196_v24 = vor.u32 %v5623_v15, %v4195_v14  ;;  %1030 = vmatpush.bf16.msra.mxu1 %v3940_v19  ;;  %v3877_v59 = vld [vmem:[#allocation7 + $0xb0] sm:$0xf0] }
  0x4d   :  { %v3923_v21 = vld [vmem:[#allocation7 + $0x100] sm:$0xf]  ;;  %v5555_v22 = vld [vmem:[#allocation7 + $0x10c] sm:$0xf0]  ;;  %v3796_v31 = vor.u32 %v5523_v18, %v3795_v17  ;;  %1043 = vmatpush.bf16.msra.mxu2 %v4068_v20  ;;  %v5573_v60 = vld [vmem:[#allocation7 + $0x1a4] sm:$0xf]  ;;  %v3880_v8 = vor.u32 %v5541_v54, %v3877_v59 }
  0x4e   :  { %v4051_v23 = vld [vmem:[#allocation7 + $0x200] sm:$0xf]  ;;  %v5587_v25 = vld [vmem:[#allocation7 + $0x20c] sm:$0xf0]  ;;  %v3924_v35 = vor.u32 %v5555_v22, %v3923_v21  ;;  %1056 = vmatpush.bf16.msra.mxu3 %v4196_v24  ;;  %v4005_v61 = vld [vmem:[#allocation7 + $0x1b0] sm:$0xf0] }
  0x4f   :  { %v4179_v26 = vld [vmem:[#allocation7 + $0x300] sm:$0xf]  ;;  %v5619_v27 = vld [vmem:[#allocation7 + $0x30c] sm:$0xf0]  ;;  %v4052_v36 = vor.u32 %v5587_v25, %v4051_v23  ;;  %1018 = vmatpush.bf16.msra.mxu0 %v3796_v31  ;;  %v5605_v63 = vld [vmem:[#allocation7 + $0x2a4] sm:$0xf]  ;;  %v4008_v9 = vor.u32 %v5573_v60, %v4005_v61 }
  0x50   :  { %v4180_v39 = vor.u32 %v5619_v27, %v4179_v26  ;;  %1031 = vmatpush.bf16.msra.mxu1 %v3924_v35  ;;  %v215_v52 = vld [vmem:[#allocation2 + $0x8] sm:$0xff]  ;;  %v4133_v0 = vld [vmem:[#allocation7 + $0x2b0] sm:$0xf0]  ;;  %v214_v2 = vld [vmem:[#allocation2] sm:$0xff] }
  0x51   :  { %1044 = vmatpush.bf16.msra.mxu2 %v4052_v36  ;;  %v361_v55 = vunpack.c.l.b16 %v215_v52  ;;  %v362_v56 = vunpack.c.h.b16 %v215_v52  ;;  %v5637_v3 = vld [vmem:[#allocation7 + $0x3a4] sm:$0xf]  ;;  %v4261_v4 = vld [vmem:[#allocation7 + $0x3b0] sm:$0xf0]  ;;  %v359_v5 = vunpack.c.l.b16 %v214_v2  ;;  %v360_v7 = vunpack.c.h.b16 %v214_v2 }
  0x52   :  { %1057 = vmatpush.bf16.msra.mxu3 %v4180_v39  ;;  %v4136_v10 = vor.u32 %v5605_v63, %v4133_v0  ;;  %v5537_v11 = vld [vmem:[#allocation7 + $0x84] sm:$0xf]  ;;  %v3861_v12 = vld [vmem:[#allocation7 + $0x90] sm:$0xf0]  ;;  %v4264_v16 = vor.u32 %v5637_v3, %v4261_v4 }
  0x53   :  { %1063 = vmatpush.bf16.msrb.mxu0 %v3912_v40  ;;  %v6422_v1 = vpack.c.b16 %v361_v55, %v361_v55  ;;  %v6424_v6 = vpack.c.b16 %v362_v56, %v362_v56  ;;  %v5569_v13 = vld [vmem:[#allocation7 + $0x184] sm:$0xf]  ;;  %v6427_v14 = vpack.c.b16 %v359_v5, %v359_v5  ;;  %v6429_v15 = vpack.c.b16 %v360_v7, %v360_v7  ;;  %v3989_v17 = vld [vmem:[#allocation7 + $0x190] sm:$0xf0] }
  0x54   :  { %1076 = vmatpush.bf16.msrb.mxu1 %v4040_v41  ;;  %v5601_v18 = vld [vmem:[#allocation7 + $0x284] sm:$0xf]  ;;  %v4117_v19 = vld [vmem:[#allocation7 + $0x290] sm:$0xf0]  ;;  %v3864_v22 = vor.u32 %v5537_v11, %v3861_v12  ;;  %v3992_v23 = vor.u32 %v5569_v13, %v3989_v17  ;;  %v5584_v12 = vld [vmem:[#allocation7 + $0x1f4] sm:$0xf0] }
  0x55   :  { %1089 = vmatpush.bf16.msrb.mxu2 %v4168_v42  ;;  %v5633_v20 = vld [vmem:[#allocation7 + $0x384] sm:$0xf]  ;;  %v4245_v21 = vld [vmem:[#allocation7 + $0x390] sm:$0xf0]  ;;  %1019 = vmatmul.bf16.vlgmr.msra.gmra.mxu0 %v6427_v14  ;;  %v4120_v24 = vor.u32 %v5601_v18, %v4117_v19  ;;  %v4171_v13 = vld [vmem:[#allocation7 + $0x2e8] sm:$0xf] }
  0x56   :  { %1102 = vmatpush.bf16.msrb.mxu3 %v4296_v46  ;;  %1045 = vmatmul.bf16.vlgmr.msra.gmra.mxu2 %v6422_v1  ;;  %v5533_v25 = vld [vmem:[#allocation7 + $0x64] sm:$0xf]  ;;  %v3845_v26 = vld [vmem:[#allocation7 + $0x70] sm:$0xf0]  ;;  %v4248_v28 = vor.u32 %v5633_v20, %v4245_v21  ;;  %v4299_v19 = vld [vmem:[#allocation7 + $0x3e8] sm:$0xf] }
  0x57   :  { %1064 = vmatpush.bf16.msrb.mxu0 %v3896_v53  ;;  %1058 = vmatmul.bf16.vlgmr.msra.gmra.mxu3 %v6424_v6  ;;  %v5565_v27 = vld [vmem:[#allocation7 + $0x164] sm:$0xf]  ;;  %v3973_v29 = vld [vmem:[#allocation7 + $0x170] sm:$0xf0]  ;;  %v3848_v34 = vor.u32 %v5533_v25, %v3845_v26  ;;  %v5648_v20 = vld [vmem:[#allocation7 + $0x3f4] sm:$0xf0] }
  0x58   :  { %1077 = vmatpush.bf16.msrb.mxu1 %v4024_v57  ;;  %v5597_v30 = vld [vmem:[#allocation7 + $0x264] sm:$0xf]  ;;  %v4101_v31 = vld [vmem:[#allocation7 + $0x270] sm:$0xf0]  ;;  %v3976_v35 = vor.u32 %v5565_v27, %v3973_v29  ;;  %v3899_v25 = vld [vmem:[#allocation7 + $0xc8] sm:$0xf] }
  0x59   :  { %1090 = vmatpush.bf16.msrb.mxu2 %v4152_v58  ;;  %1032 = vmatmul.bf16.vlgmr.msra.gmra.mxu1 %v6429_v15  ;;  %v5629_v32 = vld [vmem:[#allocation7 + $0x364] sm:$0xf]  ;;  %v4229_v33 = vld [vmem:[#allocation7 + $0x370] sm:$0xf0]  ;;  %v4104_v36 = vor.u32 %v5597_v30, %v4101_v31  ;;  %v5548_v26 = vld [vmem:[#allocation7 + $0xd4] sm:$0xf0] }
  0x5a   :  { %1103 = vmatpush.bf16.msrb.mxu3 %v4280_v62  ;;  %v5529_v37 = vld [vmem:[#allocation7 + $0x44] sm:$0xf]  ;;  %v3829_v38 = vld [vmem:[#allocation7 + $0x50] sm:$0xf0]  ;;  %v4232_v40 = vor.u32 %v5629_v32, %v4229_v33  ;;  %v4027_v27 = vld [vmem:[#allocation7 + $0x1c8] sm:$0xf] }
  0x5b   :  { %1065 = vmatpush.bf16.msrb.mxu0 %v3880_v8  ;;  %v5561_v39 = vld [vmem:[#allocation7 + $0x144] sm:$0xf]  ;;  %v3957_v41 = vld [vmem:[#allocation7 + $0x150] sm:$0xf0]  ;;  %v3832_v46 = vor.u32 %v5529_v37, %v3829_v38  ;;  %v3915_v8 = vld [vmem:[#allocation7 + $0xe8] sm:$0xf] }
  0x5c   :  { %1078 = vmatpush.bf16.msrb.mxu1 %v4008_v9  ;;  %v5593_v42 = vld [vmem:[#allocation7 + $0x244] sm:$0xf]  ;;  %v4085_v43 = vld [vmem:[#allocation7 + $0x250] sm:$0xf0]  ;;  %v3960_v47 = vor.u32 %v5561_v39, %v3957_v41  ;;  %v5552_v9 = vld [vmem:[#allocation7 + $0xf4] sm:$0xf0] }
  0x5d   :  { %1091 = vmatpush.bf16.msrb.mxu2 %v4136_v10  ;;  %v5625_v44 = vld [vmem:[#allocation7 + $0x344] sm:$0xf]  ;;  %v4213_v45 = vld [vmem:[#allocation7 + $0x350] sm:$0xf0]  ;;  %v4088_v48 = vor.u32 %v5593_v42, %v4085_v43  ;;  %v4043_v10 = vld [vmem:[#allocation7 + $0x1e8] sm:$0xf] }
  0x5e   :  { %1104 = vmatpush.bf16.msrb.mxu3 %v4264_v16  ;;  %v5525_v49 = vld [vmem:[#allocation7 + $0x24] sm:$0xf]  ;;  %v3813_v50 = vld [vmem:[#allocation7 + $0x30] sm:$0xf0]  ;;  %v4216_v52 = vor.u32 %v5625_v44, %v4213_v45  ;;  %v5616_v16 = vld [vmem:[#allocation7 + $0x2f4] sm:$0xf0] }
  0x5f   :  { %1066 = vmatpush.bf16.msrb.mxu0 %v3864_v22  ;;  %v5557_v51 = vld [vmem:[#allocation7 + $0x124] sm:$0xf]  ;;  %v3941_v53 = vld [vmem:[#allocation7 + $0x130] sm:$0xf0]  ;;  %v3816_v58 = vor.u32 %v5525_v49, %v3813_v50  ;;  %v3916_v22 = vor.u32 %v5552_v9, %v3915_v8  ;;  %v5580_v29 = vld [vmem:[#allocation7 + $0x1d4] sm:$0xf0] }
  0x60   :  { %1079 = vmatpush.bf16.msrb.mxu1 %v3992_v23  ;;  %v5589_v54 = vld [vmem:[#allocation7 + $0x224] sm:$0xf]  ;;  %v4069_v55 = vld [vmem:[#allocation7 + $0x230] sm:$0xf0]  ;;  %v3944_v61 = vor.u32 %v5557_v51, %v3941_v53  ;;  %v4044_v23 = vor.u32 %v5584_v12, %v4043_v10  ;;  %v4155_v30 = vld [vmem:[#allocation7 + $0x2c8] sm:$0xf] }
  0x61   :  { %1092 = vmatpush.bf16.msrb.mxu2 %v4120_v24  ;;  %v5621_v56 = vld [vmem:[#allocation7 + $0x324] sm:$0xf]  ;;  %v4197_v57 = vld [vmem:[#allocation7 + $0x330] sm:$0xf0]  ;;  %v4072_v62 = vor.u32 %v5589_v54, %v4069_v55  ;;  %v4172_v24 = vor.u32 %v5616_v16, %v4171_v13  ;;  %v5612_v31 = vld [vmem:[#allocation7 + $0x2d4] sm:$0xf0] }
  0x62   :  { %1105 = vmatpush.bf16.msrb.mxu3 %v4248_v28  ;;  %v5521_v59 = vld [vmem:[#allocation7 + $0x4] sm:$0xf]  ;;  %v3797_v60 = vld [vmem:[#allocation7 + $0x10] sm:$0xf0]  ;;  %v4200_v3 = vor.u32 %v5621_v56, %v4197_v57  ;;  %v4300_v28 = vor.u32 %v5648_v20, %v4299_v19  ;;  %v4283_v32 = vld [vmem:[#allocation7 + $0x3c8] sm:$0xf] }
  0x63   :  { %1067 = vmatpush.bf16.msrb.mxu0 %v3848_v34  ;;  %v5553_v63 = vld [vmem:[#allocation7 + $0x104] sm:$0xf]  ;;  %v3925_v0 = vld [vmem:[#allocation7 + $0x110] sm:$0xf0]  ;;  %v3800_v11 = vor.u32 %v5521_v59, %v3797_v60  ;;  %v5644_v33 = vld [vmem:[#allocation7 + $0x3d4] sm:$0xf0]  ;;  %v3900_v34 = vor.u32 %v5548_v26, %v3899_v25 }
  0x64   :  { %1080 = vmatpush.bf16.msrb.mxu1 %v3976_v35  ;;  %v5585_v2 = vld [vmem:[#allocation7 + $0x204] sm:$0xf]  ;;  %v4053_v4 = vld [vmem:[#allocation7 + $0x210] sm:$0xf0]  ;;  %v3928_v17 = vor.u32 %v5553_v63, %v3925_v0  ;;  %v4028_v35 = vor.u32 %v5580_v29, %v4027_v27  ;;  %v3883_v37 = vld [vmem:[#allocation7 + $0xa8] sm:$0xf] }
  0x65   :  { %1093 = vmatpush.bf16.msrb.mxu2 %v4104_v36  ;;  %v5617_v5 = vld [vmem:[#allocation7 + $0x304] sm:$0xf]  ;;  %v4181_v7 = vld [vmem:[#allocation7 + $0x310] sm:$0xf0]  ;;  %v4056_v18 = vor.u32 %v5585_v2, %v4053_v4  ;;  %v4156_v36 = vor.u32 %v5612_v31, %v4155_v30  ;;  %v5544_v38 = vld [vmem:[#allocation7 + $0xb4] sm:$0xf0] }
  0x66   :  { %1106 = vmatpush.bf16.msrb.mxu3 %v4232_v40  ;;  %v4184_v21 = vor.u32 %v5617_v5, %v4181_v7  ;;  %v4011_v39 = vld [vmem:[#allocation7 + $0x1a8] sm:$0xf]  ;;  %v4284_v40 = vor.u32 %v5644_v33, %v4283_v32  ;;  %v5576_v41 = vld [vmem:[#allocation7 + $0x1b4] sm:$0xf0] }
  0x67   :  { %1068 = vmatpush.bf16.msrb.mxu0 %v3832_v46  ;;  %v4139_v42 = vld [vmem:[#allocation7 + $0x2a8] sm:$0xf]  ;;  %v5608_v43 = vld [vmem:[#allocation7 + $0x2b4] sm:$0xf0]  ;;  %v3884_v46 = vor.u32 %v5544_v38, %v3883_v37 }
  0x68   :  { %1081 = vmatpush.bf16.msrb.mxu1 %v3960_v47  ;;  %v4267_v44 = vld [vmem:[#allocation7 + $0x3a8] sm:$0xf]  ;;  %v5640_v45 = vld [vmem:[#allocation7 + $0x3b4] sm:$0xf0]  ;;  %v4012_v47 = vor.u32 %v5576_v41, %v4011_v39 }
  0x69   :  { %1094 = vmatpush.bf16.msrb.mxu2 %v4088_v48  ;;  %v4140_v48 = vor.u32 %v5608_v43, %v4139_v42  ;;  %v3867_v49 = vld [vmem:[#allocation7 + $0x88] sm:$0xf]  ;;  %v5540_v50 = vld [vmem:[#allocation7 + $0x94] sm:$0xf0] }
  0x6a   :  { %1107 = vmatpush.bf16.msrb.mxu3 %v4216_v52  ;;  %v3995_v51 = vld [vmem:[#allocation7 + $0x188] sm:$0xf]  ;;  %v4268_v52 = vor.u32 %v5640_v45, %v4267_v44  ;;  %v5572_v53 = vld [vmem:[#allocation7 + $0x194] sm:$0xf0] }
  0x6b   :  { %1069 = vmatpush.bf16.msrb.mxu0 %v3816_v58  ;;  %v4123_v54 = vld [vmem:[#allocation7 + $0x288] sm:$0xf]  ;;  %v5604_v55 = vld [vmem:[#allocation7 + $0x294] sm:$0xf0]  ;;  %v3868_v58 = vor.u32 %v5540_v50, %v3867_v49  ;;  %v3996_v59 = vor.u32 %v5572_v53, %v3995_v51  ;;  %v4045_v50 = vld [vmem:[#allocation7 + $0x1f8] sm:$0xf0] }
  0x6c   :  { %1082 = vmatpush.bf16.msrb.mxu1 %v3944_v61  ;;  %v4251_v56 = vld [vmem:[#allocation7 + $0x388] sm:$0xf]  ;;  %v5636_v57 = vld [vmem:[#allocation7 + $0x394] sm:$0xf0]  ;;  %v4124_v60 = vor.u32 %v5604_v55, %v4123_v54  ;;  %v5614_v51 = vld [vmem:[#allocation7 + $0x2ec] sm:$0xf] }
  0x6d   :  { %1095 = vmatpush.bf16.msrb.mxu2 %v4072_v62  ;;  %v3851_v61 = vld [vmem:[#allocation7 + $0x68] sm:$0xf]  ;;  %v5536_v62 = vld [vmem:[#allocation7 + $0x74] sm:$0xf0]  ;;  %v4252_v0 = vor.u32 %v5636_v57, %v4251_v56  ;;  %v5646_v55 = vld [vmem:[#allocation7 + $0x3ec] sm:$0xf] }
  0x6e   :  { %1108 = vmatpush.bf16.msrb.mxu3 %v4200_v3  ;;  %v3979_v63 = vld [vmem:[#allocation7 + $0x168] sm:$0xf]  ;;  %v5568_v2 = vld [vmem:[#allocation7 + $0x174] sm:$0xf0]  ;;  %v3852_v8 = vor.u32 %v5536_v62, %v3851_v61  ;;  %v4301_v56 = vld [vmem:[#allocation7 + $0x3f8] sm:$0xf0] }
  0x6f   :  { %1070 = vmatpush.bf16.msrb.mxu0 %v3800_v11  ;;  %v4107_v3 = vld [vmem:[#allocation7 + $0x268] sm:$0xf]  ;;  %v5600_v4 = vld [vmem:[#allocation7 + $0x274] sm:$0xf0]  ;;  %v3980_v11 = vor.u32 %v5568_v2, %v3979_v63  ;;  %v5546_v61 = vld [vmem:[#allocation7 + $0xcc] sm:$0xf] }
  0x70   :  { %1083 = vmatpush.bf16.msrb.mxu1 %v3928_v17  ;;  %v4235_v5 = vld [vmem:[#allocation7 + $0x368] sm:$0xf]  ;;  %v5632_v7 = vld [vmem:[#allocation7 + $0x374] sm:$0xf0]  ;;  %v4108_v12 = vor.u32 %v5600_v4, %v4107_v3  ;;  %v3901_v62 = vld [vmem:[#allocation7 + $0xd8] sm:$0xf0] }
  0x71   :  { %1096 = vmatpush.bf16.msrb.mxu2 %v4056_v18  ;;  %v3835_v9 = vld [vmem:[#allocation7 + $0x48] sm:$0xf]  ;;  %v5532_v10 = vld [vmem:[#allocation7 + $0x54] sm:$0xf0]  ;;  %v4236_v18 = vor.u32 %v5632_v7, %v4235_v5  ;;  %v5578_v63 = vld [vmem:[#allocation7 + $0x1cc] sm:$0xf] }
  0x72   :  { %1109 = vmatpush.bf16.msrb.mxu3 %v4184_v21  ;;  %1071 = vmatmul.bf16.vlgmr.msrb.gmra.mxu0 %v6427_v14  ;;  %v3963_v13 = vld [vmem:[#allocation7 + $0x148] sm:$0xf]  ;;  %v5564_v16 = vld [vmem:[#allocation7 + $0x154] sm:$0xf0]  ;;  %v4029_v2 = vld [vmem:[#allocation7 + $0x1d8] sm:$0xf0] }
  0x73   :  { %1115 = vmatpush.bf16.msra.mxu0 %v3916_v22  ;;  %1084 = vmatmul.bf16.vlgmr.msrb.gmra.mxu1 %v6429_v15  ;;  %v4091_v17 = vld [vmem:[#allocation7 + $0x248] sm:$0xf]  ;;  %v5596_v19 = vld [vmem:[#allocation7 + $0x254] sm:$0xf0]  ;;  %v3836_v22 = vor.u32 %v5532_v10, %v3835_v9  ;;  %v5610_v3 = vld [vmem:[#allocation7 + $0x2cc] sm:$0xf]  ;;  %v4032_v9 = vor.u32 %v5578_v63, %v4029_v2 }
  0x74   :  { %1128 = vmatpush.bf16.msra.mxu1 %v4044_v23  ;;  %1097 = vmatmul.bf16.vlgmr.msrb.gmra.mxu2 %v6422_v1  ;;  %v4219_v20 = vld [vmem:[#allocation7 + $0x348] sm:$0xf]  ;;  %v5628_v21 = vld [vmem:[#allocation7 + $0x354] sm:$0xf0]  ;;  %v3964_v23 = vor.u32 %v5564_v16, %v3963_v13  ;;  %v4157_v4 = vld [vmem:[#allocation7 + $0x2d8] sm:$0xf0] }
  0x75   :  { %1141 = vmatpush.bf16.msra.mxu2 %v4172_v24  ;;  %1110 = vmatmul.bf16.vlgmr.msrb.gmra.mxu3 %v6424_v6  ;;  %v4092_v24 = vor.u32 %v5596_v19, %v4091_v17  ;;  %v3819_v25 = vld [vmem:[#allocation7 + $0x28] sm:$0xf]  ;;  %v5528_v26 = vld [vmem:[#allocation7 + $0x34] sm:$0xf0]  ;;  %v5642_v5 = vld [vmem:[#allocation7 + $0x3cc] sm:$0xf]  ;;  %v4160_v10 = vor.u32 %v5610_v3, %v4157_v4 }
  0x76   :  { %1154 = vmatpush.bf16.msra.mxu3 %v4300_v28  ;;  %v3947_v27 = vld [vmem:[#allocation7 + $0x128] sm:$0xf]  ;;  %v4220_v28 = vor.u32 %v5628_v21, %v4219_v20  ;;  %v5560_v29 = vld [vmem:[#allocation7 + $0x134] sm:$0xf0]  ;;  %v4285_v7 = vld [vmem:[#allocation7 + $0x3d8] sm:$0xf0] }
  0x77   :  { %1116 = vmatpush.bf16.msra.mxu0 %v3900_v34  ;;  %v4075_v30 = vld [vmem:[#allocation7 + $0x228] sm:$0xf]  ;;  %v5592_v31 = vld [vmem:[#allocation7 + $0x234] sm:$0xf0]  ;;  %v3820_v34 = vor.u32 %v5528_v26, %v3819_v25  ;;  %v3948_v37 = vor.u32 %v5560_v29, %v3947_v27  ;;  %v5574_v13 = vld [vmem:[#allocation7 + $0x1ac] sm:$0xf]  ;;  %v4288_v16 = vor.u32 %v5642_v5, %v4285_v7 }
  0x78   :  { %1129 = vmatpush.bf16.msra.mxu1 %v4028_v35  ;;  %v4203_v32 = vld [vmem:[#allocation7 + $0x328] sm:$0xf]  ;;  %v5624_v33 = vld [vmem:[#allocation7 + $0x334] sm:$0xf0]  ;;  %v4076_v38 = vor.u32 %v5592_v31, %v4075_v30  ;;  %v4013_v17 = vld [vmem:[#allocation7 + $0x1b8] sm:$0xf0] }
  0x79   :  { %1142 = vmatpush.bf16.msra.mxu2 %v4156_v36  ;;  %v3803_v35 = vld [vmem:[#allocation7 + $0x8] sm:$0xf]  ;;  %v5524_v36 = vld [vmem:[#allocation7 + $0x14] sm:$0xf0]  ;;  %v4204_v42 = vor.u32 %v5624_v33, %v4203_v32  ;;  %v4141_v19 = vld [vmem:[#allocation7 + $0x2b8] sm:$0xf0] }
  0x7a   :  { %1155 = vmatpush.bf16.msra.mxu3 %v4284_v40  ;;  %v3931_v39 = vld [vmem:[#allocation7 + $0x108] sm:$0xf]  ;;  %v5556_v40 = vld [vmem:[#allocation7 + $0x114] sm:$0xf0]  ;;  %v3804_v49 = vor.u32 %v5524_v36, %v3803_v35  ;;  %v5638_v20 = vld [vmem:[#allocation7 + $0x3ac] sm:$0xf] }
  0x7b   :  { %1117 = vmatpush.bf16.msra.mxu0 %v3884_v46  ;;  %v4059_v41 = vld [vmem:[#allocation7 + $0x208] sm:$0xf]  ;;  %v5588_v43 = vld [vmem:[#allocation7 + $0x214] sm:$0xf0]  ;;  %v5550_v46 = vld [vmem:[#allocation7 + $0xec] sm:$0xf]  ;;  %v3932_v53 = vor.u32 %v5556_v40, %v3931_v39 }
  0x7c   :  { %1130 = vmatpush.bf16.msra.mxu1 %v4012_v47  ;;  %v4187_v44 = vld [vmem:[#allocation7 + $0x308] sm:$0xf]  ;;  %v5620_v45 = vld [vmem:[#allocation7 + $0x314] sm:$0xf0]  ;;  %v3917_v47 = vld [vmem:[#allocation7 + $0xf8] sm:$0xf0]  ;;  %v4060_v54 = vor.u32 %v5588_v43, %v4059_v41 }
  0x7d   :  { %1143 = vmatpush.bf16.msra.mxu2 %v4140_v48  ;;  %v5582_v48 = vld [vmem:[#allocation7 + $0x1ec] sm:$0xf]  ;;  %v4188_v57 = vor.u32 %v5620_v45, %v4187_v44  ;;  %v4269_v21 = vld [vmem:[#allocation7 + $0x3b8] sm:$0xf0] }
  0x7e   :  { %1156 = vmatpush.bf16.msra.mxu3 %v4268_v52  ;;  %v4173_v52 = vld [vmem:[#allocation7 + $0x2f8] sm:$0xf0]  ;;  %v5538_v25 = vld [vmem:[#allocation7 + $0x8c] sm:$0xf] }
  0x7f   :  { %1118 = vmatpush.bf16.msra.mxu0 %v3868_v58  ;;  %v3920_v58 = vor.u32 %v5550_v46, %v3917_v47  ;;  %v3869_v26 = vld [vmem:[#allocation7 + $0x98] sm:$0xf0]  ;;  %v5570_v27 = vld [vmem:[#allocation7 + $0x18c] sm:$0xf] }
  0x80   :  { %1131 = vmatpush.bf16.msra.mxu1 %v3996_v59  ;;  %v4048_v59 = vor.u32 %v5582_v48, %v4045_v50  ;;  %v3997_v29 = vld [vmem:[#allocation7 + $0x198] sm:$0xf0]  ;;  %v5602_v30 = vld [vmem:[#allocation7 + $0x28c] sm:$0xf] }
  0x81   :  { %1144 = vmatpush.bf16.msra.mxu2 %v4124_v60  ;;  %v4176_v60 = vor.u32 %v5614_v51, %v4173_v52  ;;  %v4125_v31 = vld [vmem:[#allocation7 + $0x298] sm:$0xf0]  ;;  %v5634_v32 = vld [vmem:[#allocation7 + $0x38c] sm:$0xf]  ;;  %v4000_v35 = vor.u32 %v5570_v27, %v3997_v29 }
  0x82   :  { %1157 = vmatpush.bf16.msra.mxu3 %v4252_v0  ;;  %v4304_v0 = vor.u32 %v5646_v55, %v4301_v56  ;;  %v4253_v33 = vld [vmem:[#allocation7 + $0x398] sm:$0xf0]  ;;  %v4128_v36 = vor.u32 %v5602_v30, %v4125_v31  ;;  %v5566_v39 = vld [vmem:[#allocation7 + $0x16c] sm:$0xf]  ;;  %v5653_v30 = vld [vmem:[#allocation10 + $0x20] sm:$0xff] }
  0x83   :  { %1119 = vmatpush.bf16.msra.mxu0 %v3852_v8  ;;  %v3904_v8 = vor.u32 %v5546_v61, %v3901_v62  ;;  %v4256_v40 = vor.u32 %v5634_v32, %v4253_v33  ;;  %v3981_v41 = vld [vmem:[#allocation7 + $0x178] sm:$0xf0]  ;;  %v5630_v44 = vld [vmem:[#allocation7 + $0x36c] sm:$0xf]  ;;  %v5663_v31 = vld [vmem:[#allocation10 + $0x70] sm:$0xff] }
  0x84   :  { %1132 = vmatpush.bf16.msra.mxu1 %v3980_v11  ;;  %v5542_v11 = vld [vmem:[#allocation7 + $0xac] sm:$0xf]  ;;  %v4109_v43 = vld [vmem:[#allocation7 + $0x278] sm:$0xf0]  ;;  %v3984_v47 = vor.u32 %v5566_v39, %v3981_v41 }
  0x85   :  { %1145 = vmatpush.bf16.msra.mxu2 %v4108_v12  ;;  %v3885_v12 = vld [vmem:[#allocation7 + $0xb8] sm:$0xf0]  ;;  %v5562_v51 = vld [vmem:[#allocation7 + $0x14c] sm:$0xf] }
  0x86   :  { %1158 = vmatpush.bf16.msra.mxu3 %v4236_v18  ;;  %v5606_v18 = vld [vmem:[#allocation7 + $0x2ac] sm:$0xf]  ;;  %v4237_v45 = vld [vmem:[#allocation7 + $0x378] sm:$0xf0] }
  0x87   :  { %1120 = vmatpush.bf16.msra.mxu0 %v3836_v22  ;;  %v3888_v22 = vor.u32 %v5542_v11, %v3885_v12  ;;  %v3837_v50 = vld [vmem:[#allocation7 + $0x58] sm:$0xf0]  ;;  %v4240_v52 = vor.u32 %v5630_v44, %v4237_v45  ;;  %v5626_v56 = vld [vmem:[#allocation7 + $0x34c] sm:$0xf]  ;;  %v5671_v45 = vld [vmem:[#allocation10 + $0xb0] sm:$0xff] }
  0x88   :  { %1133 = vmatpush.bf16.msra.mxu1 %v3964_v23  ;;  %v4016_v23 = vor.u32 %v5574_v13, %v4013_v17  ;;  %v4093_v55 = vld [vmem:[#allocation7 + $0x258] sm:$0xf0]  ;;  %v5526_v61 = vld [vmem:[#allocation7 + $0x2c] sm:$0xf] }
  0x89   :  { %1146 = vmatpush.bf16.msra.mxu2 %v4092_v24  ;;  %v4144_v24 = vor.u32 %v5606_v18, %v4141_v19  ;;  %v3821_v62 = vld [vmem:[#allocation7 + $0x38] sm:$0xf0]  ;;  %v5558_v63 = vld [vmem:[#allocation7 + $0x12c] sm:$0xf] }
  0x8a   :  { %1159 = vmatpush.bf16.msra.mxu3 %v4220_v28  ;;  %v4272_v28 = vor.u32 %v5638_v20, %v4269_v21  ;;  %v3949_v2 = vld [vmem:[#allocation7 + $0x138] sm:$0xf0]  ;;  %v5590_v3 = vld [vmem:[#allocation7 + $0x22c] sm:$0xf] }
  0x8b   :  { %1121 = vmatpush.bf16.msra.mxu0 %v3820_v34  ;;  %v3872_v34 = vor.u32 %v5538_v25, %v3869_v26  ;;  %v4077_v4 = vld [vmem:[#allocation7 + $0x238] sm:$0xf0]  ;;  %v5622_v5 = vld [vmem:[#allocation7 + $0x32c] sm:$0xf] }
  0x8c   :  { %1134 = vmatpush.bf16.msra.mxu1 %v3948_v37  ;;  %v5534_v37 = vld [vmem:[#allocation7 + $0x6c] sm:$0xf]  ;;  %v4205_v7 = vld [vmem:[#allocation7 + $0x338] sm:$0xf0] }
  0x8d   :  { %1147 = vmatpush.bf16.msra.mxu2 %v4076_v38  ;;  %v3853_v38 = vld [vmem:[#allocation7 + $0x78] sm:$0xf0]  ;;  %v5522_v11 = vld [vmem:[#allocation7 + $0xc] sm:$0xf] }
  0x8e   :  { %1160 = vmatpush.bf16.msra.mxu3 %v4204_v42  ;;  %v5598_v42 = vld [vmem:[#allocation7 + $0x26c] sm:$0xf]  ;;  %v3856_v46 = vor.u32 %v5534_v37, %v3853_v38  ;;  %v3805_v12 = vld [vmem:[#allocation7 + $0x18] sm:$0xf0]  ;;  %v5659_v37 = vld [vmem:[#allocation10 + $0x50] sm:$0xff] }
  0x8f   :  { %1122 = vmatpush.bf16.msra.mxu0 %v3804_v49  ;;  %v4112_v48 = vor.u32 %v5598_v42, %v4109_v43  ;;  %v5530_v49 = vld [vmem:[#allocation7 + $0x4c] sm:$0xf]  ;;  %v3933_v17 = vld [vmem:[#allocation7 + $0x118] sm:$0xf0] }
  0x90   :  { %1135 = vmatpush.bf16.msra.mxu1 %v3932_v53  ;;  %v3965_v53 = vld [vmem:[#allocation7 + $0x158] sm:$0xf0]  ;;  %v5554_v13 = vld [vmem:[#allocation7 + $0x10c] sm:$0xf] }
  0x91   :  { %1148 = vmatpush.bf16.msra.mxu2 %v4060_v54  ;;  %v5594_v54 = vld [vmem:[#allocation7 + $0x24c] sm:$0xf]  ;;  %v4061_v19 = vld [vmem:[#allocation7 + $0x218] sm:$0xf0] }
  0x92   :  { %1161 = vmatpush.bf16.msra.mxu3 %v4188_v57  ;;  %1123 = vmatmul.bf16.vlgmr.msra.gmra.mxu0 %v6427_v14  ;;  %v4221_v57 = vld [vmem:[#allocation7 + $0x358] sm:$0xf0]  ;;  %v5586_v18 = vld [vmem:[#allocation7 + $0x20c] sm:$0xf] }
  0x93   :  { %1167 = vmatpush.bf16.msrb.mxu0 %v3920_v58  ;;  %1136 = vmatmul.bf16.vlgmr.msra.gmra.mxu1 %v6429_v15  ;;  %v3840_v58 = vor.u32 %v5530_v49, %v3837_v50  ;;  %v5618_v20 = vld [vmem:[#allocation7 + $0x30c] sm:$0xf]  ;;  %v4189_v21 = vld [vmem:[#allocation7 + $0x318] sm:$0xf0] }
  0x94   :  { %1180 = vmatpush.bf16.msrb.mxu1 %v4048_v59  ;;  %1149 = vmatmul.bf16.vlgmr.msra.gmra.mxu2 %v6422_v1  ;;  %v3968_v59 = vor.u32 %v5562_v51, %v3965_v53  ;;  %v4192_v25 = vor.u32 %v5618_v20, %v4189_v21  ;;  %v5656_v26 = vld [vmem:[#allocation10 + $0x38] sm:$0xff]  ;;  %v5654_v29 = vld [vmem:[#allocation10 + $0x28] sm:$0xff] }
  0x95   :  { %1193 = vmatpush.bf16.msrb.mxu2 %v4176_v60  ;;  %1162 = vmatmul.bf16.vlgmr.msra.gmra.mxu3 %v6424_v6  ;;  %v4096_v60 = vor.u32 %v5594_v54, %v4093_v55  ;;  %v5664_v27 = vld [vmem:[#allocation10 + $0x78] sm:$0xff]  ;;  %v5662_v33 = vld [vmem:[#allocation10 + $0x68] sm:$0xff]  ;;  %v5669_v55 = vld [vmem:[#allocation10 + $0xa0] sm:$0xff] }
  0x96   :  { %1206 = vmatpush.bf16.msrb.mxu3 %v4304_v0  ;;  %v4224_v0 = vor.u32 %v5626_v56, %v4221_v57  ;;  %v5652_v32 = vld [vmem:[#allocation10 + $0x18] sm:$0xff]  ;;  %v5658_v42 = vld [vmem:[#allocation10 + $0x48] sm:$0xff]  ;;  %v4547_v56 = vld [vmem:[#allocation13 + $0xe0] sm:$0xf] }
  0x97   :  { %1168 = vmatpush.bf16.msrb.mxu0 %v3904_v8  ;;  %v3824_v8 = vor.u32 %v5526_v61, %v3821_v62  ;;  %v5672_v38 = vld [vmem:[#allocation10 + $0xb8] sm:$0xff]  ;;  %v5670_v49 = vld [vmem:[#allocation10 + $0xa8] sm:$0xff]  ;;  %v5679_v57 = vld [vmem:[#allocation10 + $0xf0] sm:$0xff] }
  0x98   :  { %1181 = vmatpush.bf16.msrb.mxu1 %v4032_v9  ;;  %v3952_v9 = vor.u32 %v5558_v63, %v3949_v2  ;;  %v5743_v63 = vld [vmem:[#allocation13 + $0x1ec] sm:$0xf0]  ;;  %v5676_v20 = vld [vmem:[#allocation10 + $0xd8] sm:$0xff] }
  0x99   :  { %1194 = vmatpush.bf16.msrb.mxu2 %v4160_v10  ;;  %v4080_v10 = vor.u32 %v5590_v3, %v4077_v4  ;;  %v5707_v3 = vld [vmem:[#allocation13 + $0xcc] sm:$0xf0]  ;;  %v4659_v4 = vld [vmem:[#allocation13 + $0x1c0] sm:$0xf] }
  0x9a   :  { %1207 = vmatpush.bf16.msrb.mxu3 %v4288_v16  ;;  %v4208_v16 = vor.u32 %v5622_v5, %v4205_v7  ;;  %v5668_v5 = vld [vmem:[#allocation10 + $0x98] sm:$0xff]  ;;  %v5739_v7 = vld [vmem:[#allocation13 + $0x1cc] sm:$0xf0] }
  0x9b   :  { %1169 = vmatpush.bf16.msrb.mxu0 %v3888_v22  ;;  %v3808_v22 = vor.u32 %v5522_v11, %v3805_v12  ;;  %v4660_v11 = vor.u32 %v5739_v7, %v4659_v4  ;;  %v5667_v12 = vld [vmem:[#allocation10 + $0x90] sm:$0xff]  ;;  %v4755_v4 = vld [vmem:[#allocation13 + $0x280] sm:$0xf] }
  0x9c   :  { %1182 = vmatpush.bf16.msrb.mxu1 %v4016_v23  ;;  %v3936_v23 = vor.u32 %v5554_v13, %v3933_v17  ;;  %v5677_v13 = vld [vmem:[#allocation10 + $0xe0] sm:$0xff] }
  0x9d   :  { %1195 = vmatpush.bf16.msrb.mxu2 %v4144_v24  ;;  %v4064_v24 = vor.u32 %v5586_v18, %v4061_v19  ;;  %v4515_v18 = vld [vmem:[#allocation13 + $0xa0] sm:$0xf]  ;;  %v5703_v19 = vld [vmem:[#allocation13 + $0xac] sm:$0xf0] }
  0x9e   :  { %1208 = vmatpush.bf16.msrb.mxu3 %v4272_v28  ;;  %v5655_v28 = vld [vmem:[#allocation10 + $0x30] sm:$0xff]  ;;  %v4516_v21 = vor.u32 %v5703_v19, %v4515_v18  ;;  %v4579_v18 = vld [vmem:[#allocation13 + $0x120] sm:$0xf] }
  0x9f   :  { %1170 = vmatpush.bf16.msrb.mxu0 %v3872_v34  ;;  %v5651_v34 = vld [vmem:[#allocation10 + $0x10] sm:$0xff] }
  0xa0   :  { %1183 = vmatpush.bf16.msrb.mxu1 %v4000_v35  ;;  %v5650_v35 = vld [vmem:[#allocation10 + $0x8] sm:$0xff] }
  0xa1   :  { %1196 = vmatpush.bf16.msrb.mxu2 %v4128_v36 }
  0xa2   :  { %1209 = vmatpush.bf16.msrb.mxu3 %v4256_v40 }
  0xa3   :  { %1171 = vmatpush.bf16.msrb.mxu0 %v3856_v46 }
  0xa4   :  { %1184 = vmatpush.bf16.msrb.mxu1 %v3984_v47 }
  0xa5   :  { %1197 = vmatpush.bf16.msrb.mxu2 %v4112_v48  ;;  %v5657_v48 = vld [vmem:[#allocation10 + $0x40] sm:$0xff] }
  0xa6   :  { %1210 = vmatpush.bf16.msrb.mxu3 %v4240_v52  ;;  %v5680_v52 = vld [vmem:[#allocation10 + $0xf8] sm:$0xff] }
  0xa7   :  { %1172 = vmatpush.bf16.msrb.mxu0 %v3840_v58  ;;  %v5711_v58 = vld [vmem:[#allocation13 + $0xec] sm:$0xf0] }
  0xa8   :  { %1185 = vmatpush.bf16.msrb.mxu1 %v3968_v59  ;;  %v4675_v59 = vld [vmem:[#allocation13 + $0x1e0] sm:$0xf]  ;;  %v4548_v62 = vor.u32 %v5711_v58, %v4547_v56 }
  0xa9   :  { %1198 = vmatpush.bf16.msrb.mxu2 %v4096_v60  ;;  %v4676_v2 = vor.u32 %v5743_v63, %v4675_v59  ;;  %v4467_v58 = vld [vmem:[#allocation13 + $0x40] sm:$0xf]  ;;  %v5691_v59 = vld [vmem:[#allocation13 + $0x4c] sm:$0xf0] }
  0xaa   :  { %1211 = vmatpush.bf16.msrb.mxu3 %v4224_v0  ;;  %v4531_v0 = vld [vmem:[#allocation13 + $0xc0] sm:$0xf] }
  0xab   :  { %1173 = vmatpush.bf16.msrb.mxu0 %v3824_v8 }
  0xac   :  { %1186 = vmatpush.bf16.msrb.mxu1 %v3952_v9  ;;  %v5678_v9 = vld [vmem:[#allocation10 + $0xe8] sm:$0xff] }
  0xad   :  { %1199 = vmatpush.bf16.msrb.mxu2 %v4080_v10  ;;  %v4532_v10 = vor.u32 %v5707_v3, %v4531_v0  ;;  %v5723_v3 = vld [vmem:[#allocation13 + $0x14c] sm:$0xf0] }
  0xae   :  { %1212 = vmatpush.bf16.msrb.mxu3 %v4208_v16  ;;  %v5666_v16 = vld [vmem:[#allocation10 + $0x88] sm:$0xff] }
  0xaf   :  { %1174 = vmatpush.bf16.msrb.mxu0 %v3808_v22 }
  0xb0   :  { %1187 = vmatpush.bf16.msrb.mxu1 %v3936_v23  ;;  %v4643_v23 = vld [vmem:[#allocation13 + $0x1a0] sm:$0xf] }
  0xb1   :  { %1200 = vmatpush.bf16.msrb.mxu2 %v4064_v24  ;;  %v5735_v24 = vld [vmem:[#allocation13 + $0x1ac] sm:$0xf0] }
  0xb2   :  { %1213 = vmatpush.bf16.msrb.mxu3 %v4192_v25  ;;  %1175 = vmatmul.bf16.vlgmr.msrb.gmra.mxu0 %v6427_v14  ;;  %v5661_v14 = vld [vmem:[#allocation10 + $0x60] sm:$0xff] }
  0xb3   :  { %1487 = vmatpush.bf16.msra.mxu0 %v5656_v26  ;;  %1188 = vmatmul.bf16.vlgmr.msrb.gmra.mxu1 %v6429_v15  ;;  %v5649_v15 = vld [vmem:[#allocation10] sm:$0xff] }
  0xb4   :  { %1500 = vmatpush.bf16.msra.mxu1 %v5664_v27  ;;  %1201 = vmatmul.bf16.vlgmr.msrb.gmra.mxu2 %v6422_v1  ;;  %v5660_v1 = vld [vmem:[#allocation10 + $0x58] sm:$0xff]  ;;  %v5665_v27 = vld [vmem:[#allocation10 + $0x80] sm:$0xff] }
  0xb5   :  { %1214 = vmatmul.bf16.vlgmr.msrb.gmra.mxu3 %v6424_v6  ;;  %v6446_v6 = vld [vmem:[#allocation8] sm:$0xf]  ;;  %1513 = vmatpush.bf16.msra.mxu2 %v5672_v38  ;;  %v4787_v38 = vld [vmem:[#allocation13 + $0x2c0] sm:$0xf] }
  0xb6   :  { %v349_v36 = vperm.slane %v6446_v6, 0  ;;  %1526 = vmatpush.bf16.msra.mxu3 %v5680_v52  ;;  %v350_v17 = vperm.slane %v6446_v6, 1 }
  0xb7   :  { %1488 = vmatpush.bf16.msra.mxu0 %v5655_v28  ;;  %v4644_v28 = vor.u32 %v5735_v24, %v4643_v23 }
  0xb8   :  { %1501 = vmatpush.bf16.msra.mxu1 %v5663_v31 }
  0xb9   :  { %1514 = vmatpush.bf16.msra.mxu2 %v5671_v45  ;;  %v5674_v45 = vld [vmem:[#allocation10 + $0xc8] sm:$0xff] }
  0xba   :  { %1527 = vmatpush.bf16.msra.mxu3 %v5679_v57  ;;  %v5673_v57 = vld [vmem:[#allocation10 + $0xc0] sm:$0xff] }
  0xbb   :  { %1489 = vmatpush.bf16.msra.mxu0 %v5654_v29  ;;  %v4803_v29 = vld [vmem:[#allocation13 + $0x2e0] sm:$0xf] }
  0xbc   :  { %1502 = vmatpush.bf16.msra.mxu1 %v5662_v33  ;;  %v5699_v33 = vld [vmem:[#allocation13 + $0x8c] sm:$0xf0] }
  0xbd   :  { %1515 = vmatpush.bf16.msra.mxu2 %v5670_v49  ;;  %v4611_v49 = vld [vmem:[#allocation13 + $0x160] sm:$0xf] }
  0xbe   :  { %1528 = vmatpush.bf16.msra.mxu3 %v5678_v9  ;;  %v4451_v9 = vld [vmem:[#allocation13 + $0x20] sm:$0xf] }
  0xbf   :  { %1490 = vmatpush.bf16.msra.mxu0 %v5653_v30  ;;  %v5775_v30 = vld [vmem:[#allocation13 + $0x2ec] sm:$0xf0] }
  0xc0   :  { %1503 = vmatpush.bf16.msra.mxu1 %v5661_v14  ;;  %v4804_v31 = vor.u32 %v5775_v30, %v4803_v29  ;;  %v5675_v14 = vld [vmem:[#allocation10 + $0xd0] sm:$0xff]  ;;  %v5059_v30 = vld [vmem:[#allocation13 + $0x4e0] sm:$0xf] }
  0xc1   :  { %1516 = vmatpush.bf16.msra.mxu2 %v5669_v55  ;;  %v5799_v29 = vld [vmem:[#allocation13 + $0x3ac] sm:$0xf0] }
  0xc2   :  { %1529 = vmatpush.bf16.msra.mxu3 %v5677_v13 }
  0xc3   :  { %1491 = vmatpush.bf16.msra.mxu0 %v5652_v32  ;;  %v4499_v32 = vld [vmem:[#allocation13 + $0x80] sm:$0xf] }
  0xc4   :  { %1504 = vmatpush.bf16.msra.mxu1 %v5660_v1  ;;  %v4627_v1 = vld [vmem:[#allocation13 + $0x180] sm:$0xf] }
  0xc5   :  { %1517 = vmatpush.bf16.msra.mxu2 %v5668_v5 }
  0xc6   :  { %1530 = vmatpush.bf16.msra.mxu3 %v5676_v20  ;;  %v5719_v20 = vld [vmem:[#allocation13 + $0x12c] sm:$0xf0] }
  0xc7   :  { %1492 = vmatpush.bf16.msra.mxu0 %v5651_v34  ;;  %v4580_v23 = vor.u32 %v5719_v20, %v4579_v18  ;;  %v5783_v20 = vld [vmem:[#allocation13 + $0x32c] sm:$0xf0] }
  0xc8   :  { %1505 = vmatpush.bf16.msra.mxu1 %v5659_v37 }
  0xc9   :  { %1518 = vmatpush.bf16.msra.mxu2 %v5667_v12 }
  0xca   :  { %1531 = vmatpush.bf16.msra.mxu3 %v5675_v14  ;;  %v5715_v14 = vld [vmem:[#allocation13 + $0x10c] sm:$0xf0] }
  0xcb   :  { %1493 = vmatpush.bf16.msra.mxu0 %v5650_v35  ;;  %v4500_v35 = vor.u32 %v5699_v33, %v4499_v32 }
  0xcc   :  { %1506 = vmatpush.bf16.msra.mxu1 %v5658_v42 }
  0xcd   :  { %1519 = vmatpush.bf16.msra.mxu2 %v5666_v16  ;;  %v4915_v16 = vld [vmem:[#allocation13 + $0x3c0] sm:$0xf] }
  0xce   :  { %1532 = vmatpush.bf16.msra.mxu3 %v5674_v45 }
  0xcf   :  { %1494 = vmatpush.bf16.msra.mxu0 %v5649_v15  ;;  %v5731_v15 = vld [vmem:[#allocation13 + $0x18c] sm:$0xf0] }
  0xd0   :  { %1507 = vmatpush.bf16.msra.mxu1 %v5657_v48  ;;  %v4628_v37 = vor.u32 %v5731_v15, %v4627_v1  ;;  %v5755_v15 = vld [vmem:[#allocation13 + $0x24c] sm:$0xf0] }
  0xd1   :  { %1520 = vmatpush.bf16.msra.mxu2 %v5665_v27  ;;  %v4899_v27 = vld [vmem:[#allocation13 + $0x3a0] sm:$0xf] }
  0xd2   :  { %v1020_v39 = vpop.f32.mrf.mxu0  ;;  %1533 = vmatpush.bf16.msra.mxu3 %v5673_v57  ;;  %v4900_v32 = vor.u32 %v5799_v29, %v4899_v27  ;;  %v5831_v57 = vld [vmem:[#allocation13 + $0x4ac] sm:$0xf0]  ;;  %v5123_v27 = vld [vmem:[#allocation13 + $0x560] sm:$0xf] }
  0xd3   :  { %v1021_v40 = vadd.f32 %v1020_v39, %v349_v36  ;;  %2722 = vmatpush.bf16.msrb.mxu0 %v4548_v62  ;;  %v5771_v39 = vld [vmem:[#allocation13 + $0x2cc] sm:$0xf0] }
  0xd4   :  { %2735 = vmatpush.bf16.msrb.mxu1 %v4676_v2  ;;  %v4788_v42 = vor.u32 %v5771_v39, %v4787_v38  ;;  %v5807_v62 = vld [vmem:[#allocation13 + $0x3ec] sm:$0xf0]  ;;  %v4595_v2 = vld [vmem:[#allocation13 + $0x140] sm:$0xf] }
  0xd5   :  { %2748 = vmatpush.bf16.msrb.mxu2 %v4804_v31  ;;  %v4596_v7 = vor.u32 %v5723_v3, %v4595_v2  ;;  %v5839_v31 = vld [vmem:[#allocation13 + $0x4ec] sm:$0xf0] }
  0xd6   :  { %v1033_v41 = vpop.f32.mrf.mxu1  ;;  %v5060_v33 = vor.u32 %v5839_v31, %v5059_v30  ;;  %v5709_v31 = vld [vmem:[#allocation13 + $0xe4] sm:$0xf] }
  0xd7   :  { %v1034_v43 = vadd.f32 %v1033_v41, %v1021_v40  ;;  %2723 = vmatpush.bf16.msrb.mxu0 %v4532_v10  ;;  %v5687_v10 = vld [vmem:[#allocation13 + $0x2c] sm:$0xf0] }
  0xd8   :  { %2736 = vmatpush.bf16.msrb.mxu1 %v4660_v11  ;;  %v4452_v13 = vor.u32 %v5687_v10, %v4451_v9  ;;  %v5827_v10 = vld [vmem:[#allocation13 + $0x48c] sm:$0xf0] }
  0xd9   :  { %v1046_v44 = vpop.f32.mrf.mxu2  ;;  %2749 = vmatpush.bf16.msrb.mxu2 %v4788_v42  ;;  %v5043_v42 = vld [vmem:[#allocation13 + $0x4c0] sm:$0xf] }
  0xda   :  { %v1047_v46 = vadd.f32 %v1046_v44, %v1034_v43  ;;  %v1059_v47 = vpop.f32.mrf.mxu3  ;;  %v1022_v51 = vpop.f32.mrf.mxu0  ;;  %v4483_v43 = vld [vmem:[#allocation13 + $0x60] sm:$0xf]  ;;  %v5695_v44 = vld [vmem:[#allocation13 + $0x6c] sm:$0xf0] }
  0xdb   :  { %2724 = vmatpush.bf16.msrb.mxu0 %v4516_v21  ;;  %v4739_v21 = vld [vmem:[#allocation13 + $0x260] sm:$0xf] }
  0xdc   :  { %v1060_v50 = vadd.f32 %v1059_v47, %v1047_v46  ;;  %2737 = vmatpush.bf16.msrb.mxu1 %v4644_v28  ;;  %v4484_v46 = vor.u32 %v5695_v44, %v4483_v43  ;;  %v5835_v43 = vld [vmem:[#allocation13 + $0x4cc] sm:$0xf0] }
  0xdd   :  { %v5044_v45 = vor.u32 %v5835_v43, %v5043_v42  ;;  %v5705_v43 = vld [vmem:[#allocation13 + $0xc4] sm:$0xf] }
  0xde   :  { %v1219_v53 = vmax.f32 %v1060_v50, 0.0  ;;  %v1035_v54 = vpop.f32.mrf.mxu1  ;;  %v5727_v50 = vld [vmem:[#allocation13 + $0x16c] sm:$0xf0] }
  0xdf   :  { %2725 = vmatpush.bf16.msrb.mxu0 %v4500_v35  ;;  %v4612_v52 = vor.u32 %v5727_v50, %v4611_v49  ;;  %v5767_v54 = vld [vmem:[#allocation13 + $0x2ac] sm:$0xf0]  ;;  %v4723_v35 = vld [vmem:[#allocation13 + $0x240] sm:$0xf]  ;;  %v351_v49 = vperm.slane %v6446_v6, 2 }
  0xe0   :  { %v1223_v60 = vpack.c.bf16 %v1219_v53, %v1219_v53  ;;  %2738 = vmatpush.bf16.msrb.mxu1 %v4628_v37  ;;  %v4771_v53 = vld [vmem:[#allocation13 + $0x2a0] sm:$0xf]  ;;  %v5871_v37 = vld [vmem:[#allocation13 + $0x5ec] sm:$0xf0]  ;;  %v4724_v38 = vor.u32 %v5755_v15, %v4723_v35 }
  0xe1   :  { %v1048_v61 = vpop.f32.mrf.mxu2  ;;  %v4772_v56 = vor.u32 %v5767_v54, %v4771_v53  ;;  %v4867_v53 = vld [vmem:[#allocation13 + $0x360] sm:$0xf]  ;;  %v5791_v54 = vld [vmem:[#allocation13 + $0x36c] sm:$0xf0] }
  0xe2   :  { %1495 = vmatmul.bf16.vlgmr.msra.gmra.mxu0 %v1223_v60  ;;  %v1061_v8 = vpop.f32.mrf.mxu3  ;;  %v4468_v60 = vor.u32 %v5691_v59, %v4467_v58  ;;  %v4931_v61 = vld [vmem:[#allocation13 + $0x3e0] sm:$0xf]  ;;  %v5779_v35 = vld [vmem:[#allocation13 + $0x30c] sm:$0xf0] }
  0xe3   :  { %2726 = vmatpush.bf16.msrb.mxu0 %v4484_v46  ;;  %2750 = vmatpush.bf16.msrb.mxu2 %v4772_v56  ;;  %v4932_v0 = vor.u32 %v5807_v62, %v4931_v61  ;;  %v5763_v8 = vld [vmem:[#allocation13 + $0x28c] sm:$0xf0]  ;;  %v4707_v46 = vld [vmem:[#allocation13 + $0x220] sm:$0xf]  ;;  %v4868_v56 = vor.u32 %v5791_v54, %v4867_v53  ;;  %v5701_v54 = vld [vmem:[#allocation13 + $0xa4] sm:$0xf] }
  0xe4   :  { %2739 = vmatpush.bf16.msrb.mxu1 %v4612_v52  ;;  %v4756_v12 = vor.u32 %v5763_v8, %v4755_v4  ;;  %v4691_v59 = vld [vmem:[#allocation13 + $0x200] sm:$0xf]  ;;  %v5847_v53 = vld [vmem:[#allocation13 + $0x52c] sm:$0xf0] }
  0xe5   :  { %2761 = vmatpush.bf16.msrb.mxu3 %v4932_v0  ;;  %v5155_v61 = vld [vmem:[#allocation13 + $0x5a0] sm:$0xf]  ;;  %v5863_v0 = vld [vmem:[#allocation13 + $0x5ac] sm:$0xf0] }
  0xe6   :  { %v5156_v4 = vor.u32 %v5863_v0, %v5155_v61  ;;  %v5011_v8 = vld [vmem:[#allocation13 + $0x480] sm:$0xf] }
  0xe7   :  { %2727 = vmatpush.bf16.msrb.mxu0 %v4468_v60  ;;  %2751 = vmatpush.bf16.msrb.mxu2 %v4756_v12  ;;  %v5747_v60 = vld [vmem:[#allocation13 + $0x20c] sm:$0xf0]  ;;  %v5012_v12 = vor.u32 %v5827_v10, %v5011_v8  ;;  %v5697_v8 = vld [vmem:[#allocation13 + $0x84] sm:$0xf] }
  0xe8   :  { %2740 = vmatpush.bf16.msrb.mxu1 %v4596_v7  ;;  %v5787_v7 = vld [vmem:[#allocation13 + $0x34c] sm:$0xf0] }
  0xeb   :  { %2728 = vmatpush.bf16.msrb.mxu0 %v4452_v13  ;;  %v5139_v13 = vld [vmem:[#allocation13 + $0x580] sm:$0xf] }
  0xec   :  { %2741 = vmatpush.bf16.msrb.mxu1 %v4580_v23 }
  0xef   :  { %v1072_v22 = vpop.f32.mrf.mxu0 }
  0xf0   :  { %v1073_v25 = vadd.f32 %v1072_v22, %v350_v17  ;;  %v1085_v26 = vpop.f32.mrf.mxu1  ;;  %v5803_v17 = vld [vmem:[#allocation13 + $0x3cc] sm:$0xf0] }
  0xf1   :  { %v4916_v19 = vor.u32 %v5803_v17, %v4915_v16  ;;  %v5759_v22 = vld [vmem:[#allocation13 + $0x26c] sm:$0xf0] }
  0xf2   :  { %v1086_v34 = vadd.f32 %v1085_v26, %v1073_v25  ;;  %v4740_v24 = vor.u32 %v5759_v22, %v4739_v21  ;;  %v4435_v25 = vld [vmem:[#allocation13] sm:$0xf]  ;;  %v5683_v26 = vld [vmem:[#allocation13 + $0xc] sm:$0xf0] }
  0xf3   :  { %v4436_v28 = vor.u32 %v5683_v26, %v4435_v25  ;;  %2762 = vmatpush.bf16.msrb.mxu3 %v4916_v19  ;;  %v5859_v16 = vld [vmem:[#allocation13 + $0x58c] sm:$0xf0]  ;;  %v4835_v19 = vld [vmem:[#allocation13 + $0x320] sm:$0xf] }
  0xf4   :  { %2752 = vmatpush.bf16.msrb.mxu2 %v4740_v24  ;;  %v5140_v17 = vor.u32 %v5859_v16, %v5139_v13  ;;  %v4995_v21 = vld [vmem:[#allocation13 + $0x460] sm:$0xf]  ;;  %v4836_v24 = vor.u32 %v5783_v20, %v4835_v19  ;;  %v5823_v25 = vld [vmem:[#allocation13 + $0x46c] sm:$0xf0]  ;;  %v4933_v13 = vld [vmem:[#allocation13 + $0x3f0] sm:$0xf0] }
  0xf5   :  { %2729 = vmatpush.bf16.msrb.mxu0 %v4436_v28  ;;  %v4996_v26 = vor.u32 %v5823_v25, %v4995_v21  ;;  %v5855_v28 = vld [vmem:[#allocation13 + $0x56c] sm:$0xf0]  ;;  %v5693_v21 = vld [vmem:[#allocation13 + $0x64] sm:$0xf]  ;;  %v4917_v25 = vld [vmem:[#allocation13 + $0x3d0] sm:$0xf0] }
  0xf7   :  { %v1098_v36 = vpop.f32.mrf.mxu2  ;;  %v1074_v48 = vpop.f32.mrf.mxu0  ;;  %2763 = vmatpush.bf16.msrb.mxu3 %v4900_v32  ;;  %v4549_v32 = vld [vmem:[#allocation13 + $0xf0] sm:$0xf0] }
  0xf8   :  { %v1099_v40 = vadd.f32 %v1098_v36, %v1086_v34  ;;  %v1111_v41 = vpop.f32.mrf.mxu3  ;;  %v1087_v51 = vpop.f32.mrf.mxu1  ;;  %v4563_v34 = vld [vmem:[#allocation13 + $0x100] sm:$0xf]  ;;  %2753 = vmatpush.bf16.msrb.mxu2 %v4724_v38  ;;  %v4552_v38 = vor.u32 %v5709_v31, %v4549_v32  ;;  %v6458_v31 = vld [vmem:[#allocation5 + $0x8] sm:$0xff] }
  0xf9   :  { %v4564_v1 = vor.u32 %v5715_v14, %v4563_v34  ;;  %v5187_v36 = vld [vmem:[#allocation13 + $0x5e0] sm:$0xf]  ;;  %2774 = vmatpush.bf16.msra.mxu0 %v5060_v33  ;;  %v5867_v51 = vld [vmem:[#allocation13 + $0x5cc] sm:$0xf0]  ;;  %v5124_v33 = vor.u32 %v5855_v28, %v5123_v27  ;;  %v5765_v27 = vld [vmem:[#allocation13 + $0x2a4] sm:$0xf] }
  0xfa   :  { %v1112_v47 = vadd.f32 %v1111_v41, %v1099_v40  ;;  %v5188_v39 = vor.u32 %v5871_v37, %v5187_v36  ;;  %v4883_v40 = vld [vmem:[#allocation13 + $0x380] sm:$0xf]  ;;  %v5795_v41 = vld [vmem:[#allocation13 + $0x38c] sm:$0xf0]  ;;  %v4773_v28 = vld [vmem:[#allocation13 + $0x2b0] sm:$0xf0] }
  0xfb   :  { %v4884_v44 = vor.u32 %v5795_v41, %v4883_v40  ;;  %2742 = vmatpush.bf16.msrb.mxu1 %v4564_v1  ;;  %v5171_v48 = vld [vmem:[#allocation13 + $0x5c0] sm:$0xf]  ;;  %v5819_v37 = vld [vmem:[#allocation13 + $0x44c] sm:$0xf0] }
  0xfc   :  { %v1220_v55 = vmax.f32 %v1112_v47, 0.0  ;;  %v5751_v47 = vld [vmem:[#allocation13 + $0x22c] sm:$0xf0]  ;;  %v5172_v52 = vor.u32 %v5867_v51, %v5171_v48  ;;  %v4819_v14 = vld [vmem:[#allocation13 + $0x300] sm:$0xf] }
  0xfd   :  { %2764 = vmatpush.bf16.msrb.mxu3 %v4884_v44  ;;  %2775 = vmatpush.bf16.msra.mxu0 %v5044_v45  ;;  %v4708_v50 = vor.u32 %v5751_v47, %v4707_v46  ;;  %v4979_v1 = vld [vmem:[#allocation13 + $0x440] sm:$0xf]  ;;  %v4820_v36 = vor.u32 %v5779_v35, %v4819_v14  ;;  %v5851_v41 = vld [vmem:[#allocation13 + $0x54c] sm:$0xf0]  ;;  %v4533_v44 = vld [vmem:[#allocation13 + $0xd0] sm:$0xf0]  ;;  %v1746_v35 = vunpack.c.l.b16 %v6458_v31 }
  0xfe   :  { %v1224_v63 = vpack.c.bf16 %v1220_v55, %v1220_v55  ;;  %v5027_v55 = vld [vmem:[#allocation13 + $0x4a0] sm:$0xf]  ;;  %v5815_v48 = vld [vmem:[#allocation13 + $0x42c] sm:$0xf0]  ;;  %v4536_v51 = vor.u32 %v5705_v43, %v4533_v44  ;;  %v5797_v14 = vld [vmem:[#allocation13 + $0x3a4] sm:$0xf] }
  0xff   :  { %v1100_v5 = vpop.f32.mrf.mxu2  ;;  %2754 = vmatpush.bf16.msrb.mxu2 %v4708_v50  ;;  %v5028_v58 = vor.u32 %v5831_v57, %v5027_v55  ;;  %v5107_v40 = vld [vmem:[#allocation13 + $0x540] sm:$0xf]  ;;  %v4517_v55 = vld [vmem:[#allocation13 + $0xb0] sm:$0xf0] }
 0x100   :  { %1508 = vmatmul.bf16.vlgmr.msra.gmra.mxu1 %v1224_v63  ;;  %v1113_v11 = vpop.f32.mrf.mxu3  ;;  %v4692_v63 = vor.u32 %v5747_v60, %v4691_v59  ;;  %v4851_v5 = vld [vmem:[#allocation13 + $0x340] sm:$0xf]  ;;  %v5108_v45 = vor.u32 %v5851_v41, %v5107_v40  ;;  %v5811_v59 = vld [vmem:[#allocation13 + $0x40c] sm:$0xf0]  ;;  %v4520_v0 = vor.u32 %v5701_v54, %v4517_v55  ;;  %v5685_v40 = vld [vmem:[#allocation13 + $0x24] sm:$0xf] }
 0x101   :  { %2787 = vmatpush.bf16.msra.mxu1 %v5188_v39  ;;  %2765 = vmatpush.bf16.msrb.mxu3 %v4868_v56  ;;  %v4852_v9 = vor.u32 %v5787_v7, %v4851_v5  ;;  %v4980_v39 = vor.u32 %v5819_v37, %v4979_v1  ;;  %v4963_v47 = vld [vmem:[#allocation13 + $0x420] sm:$0xf]  ;;  %v5843_v5 = vld [vmem:[#allocation13 + $0x50c] sm:$0xf0]  ;;  %v6461_v37 = vpack.c.b16 %v1746_v35, %v1746_v35  ;;  %v4757_v41 = vld [vmem:[#allocation13 + $0x290] sm:$0xf0] }
 0x102   :  { %2776 = vmatpush.bf16.msra.mxu0 %v5028_v58  ;;  %v4964_v50 = vor.u32 %v5815_v48, %v4963_v47  ;;  %v216_v57 = vld [vmem:[#allocation5] sm:$0xff]  ;;  %v4453_v43 = vld [vmem:[#allocation13 + $0x30] sm:$0xf0] }
 0x103   :  { %2755 = vmatpush.bf16.msrb.mxu2 %v4692_v63  ;;  %v4947_v58 = vld [vmem:[#allocation13 + $0x400] sm:$0xf]  ;;  %v1744_v60 = vunpack.c.l.b16 %v216_v57  ;;  %v4805_v63 = vld [vmem:[#allocation13 + $0x2f0] sm:$0xf0]  ;;  %v1745_v7 = vunpack.c.h.b16 %v216_v57  ;;  %v5757_v48 = vld [vmem:[#allocation13 + $0x264] sm:$0xf] }
 0x104   :  { %v4948_v61 = vor.u32 %v5811_v59, %v4947_v58  ;;  %v4437_v57 = vld [vmem:[#allocation13 + $0x10] sm:$0xf0]  ;;  %v5789_v58 = vld [vmem:[#allocation13 + $0x364] sm:$0xf] }
 0x105   :  { %2788 = vmatpush.bf16.msra.mxu1 %v5172_v52  ;;  %2766 = vmatpush.bf16.msrb.mxu3 %v4852_v9  ;;  %v5091_v52 = vld [vmem:[#allocation13 + $0x520] sm:$0xf]  ;;  %v4501_v9 = vld [vmem:[#allocation13 + $0x90] sm:$0xf0]  ;;  %v5781_v35 = vld [vmem:[#allocation13 + $0x324] sm:$0xf] }
 0x106   :  { %2777 = vmatpush.bf16.msra.mxu0 %v5012_v12  ;;  %v5092_v56 = vor.u32 %v5847_v53, %v5091_v52  ;;  %v6453_v12 = vpack.c.b16 %v1745_v7, %v1745_v7  ;;  %v4504_v19 = vor.u32 %v5697_v8, %v4501_v9  ;;  %v5681_v52 = vld [vmem:[#allocation13 + $0x4] sm:$0xf]  ;;  %v4869_v59 = vld [vmem:[#allocation13 + $0x370] sm:$0xf0] }
 0x107   :  { %v4725_v7 = vld [vmem:[#allocation13 + $0x250] sm:$0xf0]  ;;  %v4440_v8 = vor.u32 %v5681_v52, %v4437_v57  ;;  %v5744_v57 = vld [vmem:[#allocation13 + $0x1f4] sm:$0xf0] }
 0x108   :  { %v5013_v52 = vld [vmem:[#allocation13 + $0x490] sm:$0xf0] }
 0x109   :  { %2789 = vmatpush.bf16.msra.mxu1 %v5156_v4  ;;  %2767 = vmatpush.bf16.msrb.mxu3 %v4836_v24  ;;  %v5075_v4 = vld [vmem:[#allocation13 + $0x500] sm:$0xf]  ;;  %v352_v24 = vperm.slane %v6446_v6, 3 }
 0x10a   :  { %2778 = vmatpush.bf16.msra.mxu0 %v4996_v26  ;;  %v5076_v10 = vor.u32 %v5843_v5, %v5075_v4  ;;  %v4872_v4 = vor.u32 %v5789_v58, %v4869_v59  ;;  %v5753_v5 = vld [vmem:[#allocation13 + $0x244] sm:$0xf]  ;;  %v4539_v59 = vld [vmem:[#allocation13 + $0xc8] sm:$0xf] }
 0x10b   :  { %v4728_v9 = vor.u32 %v5753_v5, %v4725_v7  ;;  %v4667_v5 = vld [vmem:[#allocation13 + $0x1c8] sm:$0xf]  ;;  %v5725_v7 = vld [vmem:[#allocation13 + $0x164] sm:$0xf] }
 0x10d   :  { %2790 = vmatpush.bf16.msra.mxu1 %v5140_v17  ;;  %2768 = vmatpush.bf16.msrb.mxu3 %v4820_v36  ;;  %v5769_v17 = vld [vmem:[#allocation13 + $0x2c4] sm:$0xf] }
 0x10e   :  { %2779 = vmatpush.bf16.msra.mxu0 %v4980_v39 }
 0x10f   :  { %v1124_v62 = vpop.f32.mrf.mxu0 }
 0x110   :  { %v1125_v2 = vadd.f32 %v1124_v62, %v351_v49  ;;  %v1137_v3 = vpop.f32.mrf.mxu1  ;;  %v5773_v62 = vld [vmem:[#allocation13 + $0x2e4] sm:$0xf]  ;;  %2743 = vmatmul.bf16.vlgmr.msrb.gmra.mxu1 %v6453_v12 }
 0x111   :  { %2791 = vmatpush.bf16.msra.mxu1 %v5124_v33  ;;  %v5689_v33 = vld [vmem:[#allocation13 + $0x44] sm:$0xf] }
 0x112   :  { %v1138_v11 = vadd.f32 %v1137_v3, %v1125_v2  ;;  %2780 = vmatpush.bf16.msra.mxu0 %v4964_v50  ;;  %v6451_v2 = vpack.c.b16 %v1744_v60, %v1744_v60  ;;  %v4808_v3 = vor.u32 %v5773_v62, %v4805_v63  ;;  %v5837_v62 = vld [vmem:[#allocation13 + $0x4e4] sm:$0xf]  ;;  %v5061_v63 = vld [vmem:[#allocation13 + $0x4f0] sm:$0xf0] }
 0x114   :  { %2730 = vmatmul.bf16.vlgmr.msrb.gmra.mxu0 %v6451_v2 }
 0x115   :  { %2792 = vmatpush.bf16.msra.mxu1 %v5108_v45  ;;  %v5793_v45 = vld [vmem:[#allocation13 + $0x384] sm:$0xf] }
 0x116   :  { %2781 = vmatpush.bf16.msra.mxu0 %v4948_v61  ;;  %v5741_v61 = vld [vmem:[#allocation13 + $0x1e4] sm:$0xf] }
 0x117   :  { %v1150_v18 = vpop.f32.mrf.mxu2  ;;  %v1126_v30 = vpop.f32.mrf.mxu0 }
 0x118   :  { %v1151_v22 = vadd.f32 %v1150_v18, %v1138_v11  ;;  %v1163_v23 = vpop.f32.mrf.mxu3  ;;  %v1139_v34 = vpop.f32.mrf.mxu1  ;;  %v5805_v11 = vld [vmem:[#allocation13 + $0x3e4] sm:$0xf]  ;;  %v4789_v18 = vld [vmem:[#allocation13 + $0x2d0] sm:$0xf0]  ;;  %v4776_v30 = vor.u32 %v5765_v27, %v4773_v28 }
 0x119   :  { %2793 = vmatpush.bf16.msra.mxu1 %v5092_v56  ;;  %v4936_v16 = vor.u32 %v5805_v11, %v4933_v13  ;;  %v4792_v20 = vor.u32 %v5769_v17, %v4789_v18  ;;  %v4469_v34 = vld [vmem:[#allocation13 + $0x50] sm:$0xf0]  ;;  %v5064_v13 = vor.u32 %v5837_v62, %v5061_v63  ;;  %v5785_v17 = vld [vmem:[#allocation13 + $0x344] sm:$0xf] }
 0x11a   :  { %v1164_v29 = vadd.f32 %v1163_v23, %v1151_v22  ;;  %2826 = vmatpush.bf16.msrb.mxu0 %v4808_v3  ;;  %v4485_v22 = vld [vmem:[#allocation13 + $0x70] sm:$0xf0]  ;;  %v5801_v23 = vld [vmem:[#allocation13 + $0x3c4] sm:$0xf]  ;;  %v4472_v39 = vor.u32 %v5689_v33, %v4469_v34 }
 0x11b   :  { %v4920_v26 = vor.u32 %v5801_v23, %v4917_v25  ;;  %v4677_v3 = vld [vmem:[#allocation13 + $0x1f0] sm:$0xf0]  ;;  %v5749_v28 = vld [vmem:[#allocation13 + $0x224] sm:$0xf] }
 0x11c   :  { %v1221_v15 = vmax.f32 %v1164_v29, 0.0  ;;  %v4488_v29 = vor.u32 %v5693_v21, %v4485_v22  ;;  %v4853_v18 = vld [vmem:[#allocation13 + $0x350] sm:$0xf0]  ;;  %v5737_v21 = vld [vmem:[#allocation13 + $0x1c4] sm:$0xf] }
 0x11d   :  { %2794 = vmatpush.bf16.msra.mxu1 %v5076_v10  ;;  %v218_v10 = vld [vmem:[#allocation5 + $0x10] sm:$0xff]  ;;  %v5833_v22 = vld [vmem:[#allocation13 + $0x4c4] sm:$0xf]  ;;  %v4856_v27 = vor.u32 %v5785_v17, %v4853_v18 }
 0x11e   :  { %v1225_v42 = vpack.c.bf16 %v1221_v15, %v1221_v15  ;;  %2827 = vmatpush.bf16.msrb.mxu0 %v4792_v20  ;;  %v4901_v15 = vld [vmem:[#allocation13 + $0x3b0] sm:$0xf0]  ;;  %v4680_v20 = vor.u32 %v5741_v61, %v4677_v3  ;;  %v1747_v61 = vunpack.c.h.b16 %v6458_v31  ;;  %v5821_v3 = vld [vmem:[#allocation13 + $0x464] sm:$0xf] }
 0x11f   :  { %v1152_v46 = vpop.f32.mrf.mxu2  ;;  %v4904_v36 = vor.u32 %v5797_v14, %v4901_v15  ;;  %v5045_v23 = vld [vmem:[#allocation13 + $0x4d0] sm:$0xf0]  ;;  %v5733_v15 = vld [vmem:[#allocation13 + $0x1a4] sm:$0xf] }
 0x120   :  { %1521 = vmatmul.bf16.vlgmr.msra.gmra.mxu2 %v1225_v42  ;;  %v1165_v49 = vpop.f32.mrf.mxu3  ;;  %v4885_v46 = vld [vmem:[#allocation13 + $0x390] sm:$0xf0]  ;;  %v5048_v14 = vor.u32 %v5833_v22, %v5045_v23  ;;  %v5817_v18 = vld [vmem:[#allocation13 + $0x444] sm:$0xf] }
 0x121   :  { %2800 = vmatpush.bf16.msra.mxu2 %v4552_v38  ;;  %2839 = vmatpush.bf16.msrb.mxu1 %v4936_v16  ;;  %v5761_v38 = vld [vmem:[#allocation13 + $0x284] sm:$0xf]  ;;  %v4888_v47 = vor.u32 %v5793_v45, %v4885_v46  ;;  %v4741_v49 = vld [vmem:[#allocation13 + $0x270] sm:$0xf0]  ;;  %v1748_v16 = vunpack.c.l.b16 %v218_v10  ;;  %v5712_v45 = vld [vmem:[#allocation13 + $0xf4] sm:$0xf0] }
 0x122   :  { %2828 = vmatpush.bf16.msrb.mxu0 %v4776_v30  ;;  %v4760_v44 = vor.u32 %v5761_v38, %v4757_v41  ;;  %v4744_v53 = vor.u32 %v5757_v48, %v4741_v49  ;;  %v4661_v25 = vld [vmem:[#allocation13 + $0x1d0] sm:$0xf0]  ;;  %v5745_v41 = vld [vmem:[#allocation13 + $0x204] sm:$0xf] }
 0x123   :  { %v5029_v38 = vld [vmem:[#allocation13 + $0x4b0] sm:$0xf0]  ;;  %v5777_v48 = vld [vmem:[#allocation13 + $0x304] sm:$0xf] }
 0x124   :  { %v4821_v49 = vld [vmem:[#allocation13 + $0x310] sm:$0xf0]  ;;  %v5721_v22 = vld [vmem:[#allocation13 + $0x144] sm:$0xf] }
 0x125   :  { %2801 = vmatpush.bf16.msra.mxu2 %v4536_v51  ;;  %2840 = vmatpush.bf16.msrb.mxu1 %v4920_v26  ;;  %v4456_v51 = vor.u32 %v5685_v40, %v4453_v43  ;;  %v6464_v26 = vpack.c.b16 %v1748_v16, %v1748_v16  ;;  %v6472_v16 = vpack.c.b16 %v1747_v61, %v1747_v61  ;;  %v4597_v23 = vld [vmem:[#allocation13 + $0x150] sm:$0xf0] }
 0x126   :  { %2829 = vmatpush.bf16.msrb.mxu0 %v4760_v44  ;;  %v4555_v44 = vld [vmem:[#allocation13 + $0xe8] sm:$0xf] }
 0x127   :  { %2782 = vmatmul.bf16.vlgmr.msra.gmra.mxu0 %v6464_v26 }
 0x129   :  { %2802 = vmatpush.bf16.msra.mxu2 %v4520_v0  ;;  %2841 = vmatpush.bf16.msrb.mxu1 %v4904_v36  ;;  %v5829_v36 = vld [vmem:[#allocation13 + $0x4a4] sm:$0xf] }
 0x12a   :  { %2830 = vmatpush.bf16.msrb.mxu0 %v4744_v53  ;;  %v5032_v46 = vor.u32 %v5829_v36, %v5029_v38  ;;  %v4683_v53 = vld [vmem:[#allocation13 + $0x1e8] sm:$0xf] }
 0x12b   :  { %v4684_v58 = vor.u32 %v5744_v57, %v4683_v53  ;;  %v4491_v38 = vld [vmem:[#allocation13 + $0x68] sm:$0xf] }
 0x12d   :  { %2803 = vmatpush.bf16.msra.mxu2 %v4504_v19  ;;  %2842 = vmatpush.bf16.msrb.mxu1 %v4888_v47  ;;  %v1749_v19 = vunpack.c.h.b16 %v218_v10  ;;  %v4556_v47 = vor.u32 %v5712_v45, %v4555_v44  ;;  %v4949_v44 = vld [vmem:[#allocation13 + $0x410] sm:$0xf0] }
 0x12e   :  { %2831 = vmatpush.bf16.msrb.mxu0 %v4728_v9  ;;  %v5740_v9 = vld [vmem:[#allocation13 + $0x1d4] sm:$0xf0] }
 0x12f   :  { %v1176_v32 = vpop.f32.mrf.mxu0  ;;  %v4668_v10 = vor.u32 %v5740_v9, %v4667_v5 }
 0x130   :  { %v1177_v6 = vadd.f32 %v1176_v32, %v352_v24  ;;  %v1189_v1 = vpop.f32.mrf.mxu1  ;;  %2756 = vmatmul.bf16.vlgmr.msrb.gmra.mxu2 %v6461_v37  ;;  %v6466_v32 = vpack.c.b16 %v1749_v19, %v1749_v19  ;;  %v4981_v19 = vld [vmem:[#allocation13 + $0x450] sm:$0xf0] }
 0x131   :  { %2804 = vmatpush.bf16.msra.mxu2 %v4488_v29  ;;  %2843 = vmatpush.bf16.msrb.mxu1 %v4872_v4  ;;  %v4709_v29 = vld [vmem:[#allocation13 + $0x230] sm:$0xf0] }
 0x132   :  { %v1190_v42 = vadd.f32 %v1189_v1, %v1177_v6  ;;  %v4712_v33 = vor.u32 %v5749_v28, %v4709_v29  ;;  %v4837_v6 = vld [vmem:[#allocation13 + $0x330] sm:$0xf0]  ;;  %v4664_v1 = vor.u32 %v5737_v21, %v4661_v25  ;;  %2795 = vmatmul.bf16.vlgmr.msra.gmra.mxu1 %v6466_v32  ;;  %v4651_v21 = vld [vmem:[#allocation13 + $0x1a8] sm:$0xf]  ;;  %v4984_v28 = vor.u32 %v5817_v18, %v4981_v19  ;;  %v5813_v29 = vld [vmem:[#allocation13 + $0x424] sm:$0xf] }
 0x133   :  { %v4840_v40 = vor.u32 %v5781_v35, %v4837_v6  ;;  %v4997_v4 = vld [vmem:[#allocation13 + $0x470] sm:$0xf0]  ;;  %v4635_v35 = vld [vmem:[#allocation13 + $0x188] sm:$0xf]  ;;  %v5732_v6 = vld [vmem:[#allocation13 + $0x194] sm:$0xf0] }
 0x134   :  { %2832 = vmatpush.bf16.msrb.mxu0 %v4712_v33  ;;  %v5000_v31 = vor.u32 %v5821_v3, %v4997_v4  ;;  %v4600_v33 = vor.u32 %v5721_v22, %v4597_v23  ;;  %v4636_v36 = vor.u32 %v5732_v6, %v4635_v35  ;;  %v5173_v4 = vld [vmem:[#allocation13 + $0x5d0] sm:$0xf0]  ;;  %v5768_v18 = vld [vmem:[#allocation13 + $0x2b4] sm:$0xf0]  ;;  %v4443_v22 = vld [vmem:[#allocation13 + $0x8] sm:$0xf] }
 0x135   :  { %2805 = vmatpush.bf16.msra.mxu2 %v4472_v39  ;;  %v4645_v39 = vld [vmem:[#allocation13 + $0x1b0] sm:$0xf0]  ;;  %2844 = vmatpush.bf16.msrb.mxu1 %v4856_v27  ;;  %v4507_v27 = vld [vmem:[#allocation13 + $0x88] sm:$0xf]  ;;  %v5684_v23 = vld [vmem:[#allocation13 + $0x14] sm:$0xf0] }
 0x136   :  { %v5195_v35 = vld [vmem:[#allocation13 + $0x5e8] sm:$0xf]  ;;  %v5857_v6 = vld [vmem:[#allocation13 + $0x584] sm:$0xf] }
 0x137   :  { %v1202_v50 = vpop.f32.mrf.mxu2  ;;  %v1178_v56 = vpop.f32.mrf.mxu0 }
 0x138   :  { %v1203_v54 = vadd.f32 %v1202_v50, %v1190_v42  ;;  %v1215_v55 = vpop.f32.mrf.mxu3  ;;  %v1191_v60 = vpop.f32.mrf.mxu1  ;;  %v4693_v42 = vld [vmem:[#allocation13 + $0x210] sm:$0xf0]  ;;  %v4648_v50 = vor.u32 %v5733_v15, %v4645_v39  ;;  %v4824_v56 = vor.u32 %v5777_v48, %v4821_v49  ;;  %v5696_v39 = vld [vmem:[#allocation13 + $0x74] sm:$0xf0]  ;;  %v4811_v49 = vld [vmem:[#allocation13 + $0x2e8] sm:$0xf] }
 0x139   :  { %2806 = vmatpush.bf16.msra.mxu2 %v4456_v51  ;;  %v4696_v43 = vor.u32 %v5745_v41, %v4693_v42  ;;  %v5825_v51 = vld [vmem:[#allocation13 + $0x484] sm:$0xf]  ;;  %2845 = vmatpush.bf16.msrb.mxu1 %v4840_v40  ;;  %v5708_v60 = vld [vmem:[#allocation13 + $0xd4] sm:$0xf0]  ;;  %v4581_v15 = vld [vmem:[#allocation13 + $0x130] sm:$0xf0]  ;;  %v4492_v45 = vor.u32 %v5696_v39, %v4491_v38 }
 0x13a   :  { %v1216_v0 = vadd.f32 %v1215_v55, %v1203_v54  ;;  %v5729_v54 = vld [vmem:[#allocation13 + $0x184] sm:$0xf]  ;;  %v4629_v55 = vld [vmem:[#allocation13 + $0x190] sm:$0xf0]  ;;  %v5016_v62 = vor.u32 %v5825_v51, %v5013_v52  ;;  %v4540_v63 = vor.u32 %v5708_v60, %v4539_v59  ;;  %v4603_v59 = vld [vmem:[#allocation13 + $0x148] sm:$0xf] }
 0x13b   :  { %2833 = vmatpush.bf16.msrb.mxu0 %v4696_v43  ;;  %v5713_v40 = vld [vmem:[#allocation13 + $0x104] sm:$0xf]  ;;  %v4565_v48 = vld [vmem:[#allocation13 + $0x110] sm:$0xf0]  ;;  %v5724_v60 = vld [vmem:[#allocation13 + $0x154] sm:$0xf0] }
 0x13c   :  { %v1222_v11 = vmax.f32 %v1216_v0, 0.0  ;;  %v4632_v0 = vor.u32 %v5729_v54, %v4629_v55  ;;  %v5809_v42 = vld [vmem:[#allocation13 + $0x404] sm:$0xf]  ;;  %v5189_v52 = vld [vmem:[#allocation13 + $0x5f0] sm:$0xf0]  ;;  %v4568_v57 = vor.u32 %v5713_v40, %v4565_v48  ;;  %v4604_v5 = vor.u32 %v5724_v60, %v4603_v59 }
 0x13d   :  { %2807 = vmatpush.bf16.msra.mxu2 %v4440_v8  ;;  %v4613_v8 = vld [vmem:[#allocation13 + $0x170] sm:$0xf0]  ;;  %2846 = vmatpush.bf16.msrb.mxu1 %v4824_v56  ;;  %v5869_v51 = vld [vmem:[#allocation13 + $0x5e4] sm:$0xf]  ;;  %v4475_v54 = vld [vmem:[#allocation13 + $0x48] sm:$0xf]  ;;  %v4952_v55 = vor.u32 %v5809_v42, %v4949_v44 }
 0x13e   :  { %v1226_v24 = vpack.c.bf16 %v1222_v11, %v1222_v11  ;;  %v4523_v11 = vld [vmem:[#allocation13 + $0xa8] sm:$0xf]  ;;  %v4616_v17 = vor.u32 %v5725_v7, %v4613_v8  ;;  %2834 = vmatmul.bf16.vlgmr.msrb.gmra.mxu0 %v6461_v37  ;;  %v5692_v56 = vld [vmem:[#allocation13 + $0x54] sm:$0xf0]  ;;  %v5192_v61 = vor.u32 %v5869_v51, %v5189_v52  ;;  %v5853_v48 = vld [vmem:[#allocation13 + $0x564] sm:$0xf] }
 0x13f   :  { %v1204_v30 = vpop.f32.mrf.mxu2  ;;  %2878 = vmatpush.bf16.msra.mxu0 %v4556_v47  ;;  %v5728_v47 = vld [vmem:[#allocation13 + $0x174] sm:$0xf0]  ;;  %v4476_v3 = vor.u32 %v5692_v56, %v4475_v54  ;;  %v4459_v7 = vld [vmem:[#allocation13 + $0x28] sm:$0xf]  ;;  %v5849_v60 = vld [vmem:[#allocation13 + $0x544] sm:$0xf] }
 0x140   :  { %v1217_v34 = vpop.f32.mrf.mxu3  ;;  %1534 = vmatmul.bf16.vlgmr.msra.gmra.mxu3 %v1226_v24  ;;  %2808 = vmatmul.bf16.vlgmr.msra.gmra.mxu2 %v6451_v2  ;;  %v5736_v24 = vld [vmem:[#allocation13 + $0x1b4] sm:$0xf0]  ;;  %v5051_v40 = vld [vmem:[#allocation13 + $0x4c8] sm:$0xf] }
 0x141   :  { %2852 = vmatpush.bf16.msrb.mxu2 %v5064_v13  ;;  %2813 = vmatpush.bf16.msra.mxu3 %v4680_v20  ;;  %v5704_v13 = vld [vmem:[#allocation13 + $0xb4] sm:$0xf0]  ;;  %v4652_v25 = vor.u32 %v5736_v24, %v4651_v21  ;;  %v4965_v34 = vld [vmem:[#allocation13 + $0x430] sm:$0xf0]  ;;  %v5067_v24 = vld [vmem:[#allocation13 + $0x4e8] sm:$0xf] }
 0x142   :  { %2891 = vmatpush.bf16.msra.mxu1 %v4684_v58  ;;  %v4524_v20 = vor.u32 %v5704_v13, %v4523_v11  ;;  %v5700_v30 = vld [vmem:[#allocation13 + $0x94] sm:$0xf0]  ;;  %v4968_v41 = vor.u32 %v5813_v29, %v4965_v34  ;;  %v5163_v59 = vld [vmem:[#allocation13 + $0x5a8] sm:$0xf] }
 0x143   :  { %2879 = vmatpush.bf16.msra.mxu0 %v4540_v63  ;;  %2847 = vmatmul.bf16.vlgmr.msrb.gmra.mxu1 %v6472_v16  ;;  %v4795_v63 = vld [vmem:[#allocation13 + $0x2c8] sm:$0xf]  ;;  %v5688_v8 = vld [vmem:[#allocation13 + $0x34] sm:$0xf0] }
 0x144   :  { %v5720_v11 = vld [vmem:[#allocation13 + $0x134] sm:$0xf0]  ;;  %v4460_v19 = vor.u32 %v5688_v8, %v4459_v7 }
 0x145   :  { %2853 = vmatpush.bf16.msrb.mxu2 %v5048_v14  ;;  %2814 = vmatpush.bf16.msra.mxu3 %v4664_v1  ;;  %v4508_v14 = vor.u32 %v5700_v30, %v4507_v27  ;;  %v5717_v1 = vld [vmem:[#allocation13 + $0x124] sm:$0xf]  ;;  %v5716_v29 = vld [vmem:[#allocation13 + $0x114] sm:$0xf0] }
 0x146   :  { %2892 = vmatpush.bf16.msra.mxu1 %v4668_v10  ;;  %v4584_v43 = vor.u32 %v5717_v1, %v4581_v15  ;;  %v4587_v10 = vld [vmem:[#allocation13 + $0x128] sm:$0xf]  ;;  %v5764_v34 = vld [vmem:[#allocation13 + $0x294] sm:$0xf0]  ;;  %v5141_v1 = vld [vmem:[#allocation13 + $0x590] sm:$0xf0] }
 0x147   :  { %2880 = vmatpush.bf16.msra.mxu0 %v4524_v20  ;;  %v5157_v20 = vld [vmem:[#allocation13 + $0x5b0] sm:$0xf0]  ;;  %v4588_v21 = vor.u32 %v5720_v11, %v4587_v10  ;;  %v5872_v38 = vld [vmem:[#allocation13 + $0x5f4] sm:$0xf0]  ;;  %v5147_v11 = vld [vmem:[#allocation13 + $0x588] sm:$0xf] }
 0x148   :  { %v5196_v39 = vor.u32 %v5872_v38, %v5195_v35  ;;  %v5868_v51 = vld [vmem:[#allocation13 + $0x5d4] sm:$0xf0] }
 0x149   :  { %2854 = vmatpush.bf16.msrb.mxu2 %v5032_v46  ;;  %2815 = vmatpush.bf16.msra.mxu3 %v4648_v50  ;;  %v4619_v46 = vld [vmem:[#allocation13 + $0x168] sm:$0xf]  ;;  %v5776_v50 = vld [vmem:[#allocation13 + $0x2f4] sm:$0xf0] }
 0x14a   :  { %2893 = vmatpush.bf16.msra.mxu1 %v4652_v25  ;;  %v4620_v53 = vor.u32 %v5728_v47, %v4619_v46  ;;  %v4812_v58 = vor.u32 %v5776_v50, %v4811_v49  ;;  %v5840_v25 = vld [vmem:[#allocation13 + $0x4f4] sm:$0xf0]  ;;  %v5179_v47 = vld [vmem:[#allocation13 + $0x5c8] sm:$0xf]  ;;  %v5125_v49 = vld [vmem:[#allocation13 + $0x570] sm:$0xf0] }
 0x14b   :  { %2881 = vmatpush.bf16.msra.mxu0 %v4508_v14  ;;  %v4444_v14 = vor.u32 %v5684_v23, %v4443_v22  ;;  %v5068_v15 = vor.u32 %v5840_v25, %v5067_v24  ;;  %v5760_v46 = vld [vmem:[#allocation13 + $0x274] sm:$0xf0]  ;;  %v5180_v52 = vor.u32 %v5868_v51, %v5179_v47  ;;  %v5128_v56 = vor.u32 %v5853_v48, %v5125_v49  ;;  %v5841_v22 = vld [vmem:[#allocation13 + $0x504] sm:$0xf]  ;;  %v5077_v23 = vld [vmem:[#allocation13 + $0x510] sm:$0xf0] }
 0x14c   :  { %v5832_v54 = vld [vmem:[#allocation13 + $0x4b4] sm:$0xf0]  ;;  %v4699_v25 = vld [vmem:[#allocation13 + $0x208] sm:$0xf]  ;;  %v4541_v47 = vld [vmem:[#allocation13 + $0xd8] sm:$0xf0] }
 0x14d   :  { %2855 = vmatpush.bf16.msrb.mxu2 %v5016_v62  ;;  %2816 = vmatpush.bf16.msra.mxu3 %v4632_v0  ;;  %v5865_v62 = vld [vmem:[#allocation13 + $0x5c4] sm:$0xf]  ;;  %v5772_v0 = vld [vmem:[#allocation13 + $0x2d4] sm:$0xf0]  ;;  %v4971_v51 = vld [vmem:[#allocation13 + $0x428] sm:$0xf] }
 0x14e   :  { %2894 = vmatpush.bf16.msra.mxu1 %v4636_v36  ;;  %v4796_v9 = vor.u32 %v5772_v0, %v4795_v63  ;;  %v5176_v13 = vor.u32 %v5865_v62, %v5173_v4  ;;  %v5864_v63 = vld [vmem:[#allocation13 + $0x5b4] sm:$0xf0] }
 0x14f   :  { %2882 = vmatpush.bf16.msra.mxu0 %v4492_v45  ;;  %v4747_v45 = vld [vmem:[#allocation13 + $0x268] sm:$0xf]  ;;  %v5164_v0 = vor.u32 %v5864_v63, %v5163_v59  ;;  %v5828_v7 = vld [vmem:[#allocation13 + $0x494] sm:$0xf0]  ;;  %v5702_v59 = vld [vmem:[#allocation13 + $0xac] sm:$0xf] }
 0x150   :  { %2769 = vmatmul.bf16.vlgmr.msrb.gmra.mxu3 %v6472_v16  ;;  %v5752_v10 = vld [vmem:[#allocation13 + $0x234] sm:$0xf0] }
 0x151   :  { %2856 = vmatpush.bf16.msrb.mxu2 %v5000_v31  ;;  %2817 = vmatpush.bf16.msra.mxu3 %v4616_v17  ;;  %v5861_v31 = vld [vmem:[#allocation13 + $0x5a4] sm:$0xf]  ;;  %v4779_v17 = vld [vmem:[#allocation13 + $0x2a8] sm:$0xf]  ;;  %v5804_v49 = vld [vmem:[#allocation13 + $0x3d4] sm:$0xf0] }
 0x152   :  { %2895 = vmatpush.bf16.msra.mxu1 %v4620_v53  ;;  %v4780_v27 = vor.u32 %v5768_v18, %v4779_v17  ;;  %v5160_v30 = vor.u32 %v5861_v31, %v5157_v20  ;;  %v5035_v53 = vld [vmem:[#allocation13 + $0x4a8] sm:$0xf]  ;;  %v5845_v31 = vld [vmem:[#allocation13 + $0x524] sm:$0xf]  ;;  %v5093_v17 = vld [vmem:[#allocation13 + $0x530] sm:$0xf0] }
 0x153   :  { %2883 = vmatpush.bf16.msra.mxu0 %v4476_v3  ;;  %v5036_v62 = vor.u32 %v5832_v54, %v5035_v53  ;;  %v5019_v3 = vld [vmem:[#allocation13 + $0x488] sm:$0xf]  ;;  %v5971_v53 = vld [vmem:[#allocation11] ss:$0 sm:$0xff] }
 0x154   :  { %v5020_v18 = vor.u32 %v5828_v7, %v5019_v3  ;;  %v5003_v20 = vld [vmem:[#allocation13 + $0x468] sm:$0xf]  ;;  %v5812_v3 = vld [vmem:[#allocation13 + $0x414] sm:$0xf0] }
 0x155   :  { %2857 = vmatpush.bf16.msrb.mxu2 %v4984_v28  ;;  %2818 = vmatpush.bf16.msra.mxu3 %v4600_v33  ;;  %v4571_v28 = vld [vmem:[#allocation13 + $0x108] sm:$0xf] }
 0x156   :  { %2896 = vmatpush.bf16.msra.mxu1 %v4604_v5  ;;  %v4763_v33 = vld [vmem:[#allocation13 + $0x288] sm:$0xf]  ;;  %v4572_v36 = vor.u32 %v5716_v29, %v4571_v28  ;;  %v5748_v28 = vld [vmem:[#allocation13 + $0x214] sm:$0xf0] }
 0x157   :  { %2884 = vmatpush.bf16.msra.mxu0 %v4460_v19  ;;  %v4764_v42 = vor.u32 %v5764_v34, %v4763_v33  ;;  %v4715_v5 = vld [vmem:[#allocation13 + $0x228] sm:$0xf]  ;;  %v5710_v34 = vld [vmem:[#allocation13 + $0xec] sm:$0xf]  ;;  %v4700_v38 = vor.u32 %v5748_v28, %v4699_v25  ;;  %v5792_v25 = vld [vmem:[#allocation13 + $0x374] sm:$0xf0] }
 0x158   :  { %v4716_v24 = vor.u32 %v5752_v10, %v4715_v5  ;;  %v5131_v29 = vld [vmem:[#allocation13 + $0x568] sm:$0xf]  ;;  %v5698_v10 = vld [vmem:[#allocation13 + $0x8c] sm:$0xf] }
 0x159   :  { %2858 = vmatpush.bf16.msrb.mxu2 %v4968_v41  ;;  %2819 = vmatpush.bf16.msra.mxu3 %v4584_v43  ;;  %v5836_v41 = vld [vmem:[#allocation13 + $0x4d4] sm:$0xf0]  ;;  %v5144_v43 = vor.u32 %v5857_v6, %v5141_v1  ;;  %v4939_v33 = vld [vmem:[#allocation13 + $0x3e8] sm:$0xf] }
 0x15a   :  { %2897 = vmatpush.bf16.msra.mxu1 %v4588_v21  ;;  %v5052_v50 = vor.u32 %v5836_v41, %v5051_v40  ;;  %v5824_v21 = vld [vmem:[#allocation13 + $0x474] sm:$0xf0]  ;;  %v5115_v41 = vld [vmem:[#allocation13 + $0x548] sm:$0xf] }
 0x15b   :  { %2885 = vmatpush.bf16.msra.mxu0 %v4444_v14  ;;  %v4557_v14 = vld [vmem:[#allocation13 + $0xf8] sm:$0xf0]  ;;  %v5004_v35 = vor.u32 %v5824_v21, %v5003_v20  ;;  %v5808_v6 = vld [vmem:[#allocation13 + $0x3f4] sm:$0xf0]  ;;  %v5083_v7 = vld [vmem:[#allocation13 + $0x508] sm:$0xf] }
 0x15c   :  { %v4560_v40 = vor.u32 %v5710_v34, %v4557_v14  ;;  %v4477_v34 = vld [vmem:[#allocation13 + $0x58] sm:$0xf0] }
 0x15d   :  { %2859 = vmatpush.bf16.msrb.mxu2 %v4952_v55  ;;  %2820 = vmatpush.bf16.msra.mxu3 %v4568_v57  ;;  %v4748_v55 = vor.u32 %v5760_v46, %v4747_v45  ;;  %v4731_v57 = vld [vmem:[#allocation13 + $0x248] sm:$0xf]  ;;  %v5706_v46 = vld [vmem:[#allocation13 + $0xcc] sm:$0xf] }
 0x15e   :  { %2898 = vmatpush.bf16.msra.mxu1 %v4572_v36  ;;  %2886 = vmatmul.bf16.vlgmr.msra.gmra.mxu0 %v6451_v2  ;;  %v5820_v36 = vld [vmem:[#allocation13 + $0x454] sm:$0xf0]  ;;  %v4923_v45 = vld [vmem:[#allocation13 + $0x3c8] sm:$0xf]  ;;  %v4544_v54 = vor.u32 %v5706_v46, %v4541_v47  ;;  %v5806_v46 = vld [vmem:[#allocation13 + $0x3ec] sm:$0xf] }
 0x15f   :  { %v6479_v44 = vpop.f32.mrf.mxu0  ;;  %2930 = vmatpush.bf16.msrb.mxu0 %v5068_v15  ;;  %v4987_v15 = vld [vmem:[#allocation13 + $0x448] sm:$0xf]  ;;  %v4941_v47 = vld [vmem:[#allocation13 + $0x3f8] sm:$0xf0] }
 0x160   :  { %2860 = vmatmul.bf16.vlgmr.msrb.gmra.mxu2 %v6464_v26  ;;  %2821 = vmatmul.bf16.vlgmr.msra.gmra.mxu3 %v6453_v12  ;;  %v4988_v48 = vor.u32 %v5820_v36, %v4987_v15  ;;  %v5770_v15 = vld [vmem:[#allocation13 + $0x2cc] sm:$0xf]  ;;  %v4797_v36 = vld [vmem:[#allocation13 + $0x2d8] sm:$0xf0] }
 0x161   :  { %2904 = vmatpush.bf16.msra.mxu2 %v4812_v58  ;;  %2865 = vmatpush.bf16.msrb.mxu3 %v5192_v61  ;;  %v5756_v58 = vld [vmem:[#allocation13 + $0x254] sm:$0xf0]  ;;  %v5109_v61 = vld [vmem:[#allocation13 + $0x550] sm:$0xf0] }
 0x162   :  { %2943 = vmatpush.bf16.msrb.mxu1 %v5196_v39  ;;  %v4732_v4 = vor.u32 %v5756_v58, %v4731_v57  ;;  %v5112_v8 = vor.u32 %v5849_v60, %v5109_v61  ;;  %v5080_v39 = vor.u32 %v5841_v22, %v5077_v23  ;;  %v4924_v57 = vor.u32 %v5804_v49, %v4923_v45  ;;  %v4907_v58 = vld [vmem:[#allocation13 + $0x3a8] sm:$0xf]  ;;  %v4525_v60 = vld [vmem:[#allocation13 + $0xb8] sm:$0xf0]  ;;  %v5694_v22 = vld [vmem:[#allocation13 + $0x6c] sm:$0xf] }
 0x163   :  { %2899 = vmatmul.bf16.vlgmr.msra.gmra.mxu1 %v6453_v12  ;;  %2931 = vmatpush.bf16.msrb.mxu0 %v5052_v50  ;;  %v4528_v5 = vor.u32 %v5702_v59, %v4525_v60  ;;  %v4493_v23 = vld [vmem:[#allocation13 + $0x78] sm:$0xf0]  ;;  %v5784_v45 = vld [vmem:[#allocation13 + $0x334] sm:$0xf0]  ;;  %v4827_v49 = vld [vmem:[#allocation13 + $0x308] sm:$0xf] }
 0x164   :  { %v4496_v28 = vor.u32 %v5694_v22, %v4493_v23  ;;  %v5069_v59 = vld [vmem:[#allocation13 + $0x4f8] sm:$0xf0]  ;;  %v5802_v60 = vld [vmem:[#allocation13 + $0x3cc] sm:$0xf] }
 0x165   :  { %2905 = vmatpush.bf16.msra.mxu2 %v4796_v9  ;;  %2866 = vmatpush.bf16.msrb.mxu3 %v5176_v13  ;;  %v5860_v13 = vld [vmem:[#allocation13 + $0x594] sm:$0xf0]  ;;  %v4749_v22 = vld [vmem:[#allocation13 + $0x278] sm:$0xf0] }
 0x166   :  { %2944 = vmatpush.bf16.msrb.mxu1 %v5180_v52  ;;  %v5148_v19 = vor.u32 %v5860_v13, %v5147_v11  ;;  %v5816_v52 = vld [vmem:[#allocation13 + $0x434] sm:$0xf0]  ;;  %v4509_v11 = vld [vmem:[#allocation13 + $0x98] sm:$0xf0] }
 0x167   :  { %v1498_v9 = vpop.f32.mrf.mxu0  ;;  %2932 = vmatpush.bf16.msrb.mxu0 %v5036_v62  ;;  %v4972_v61 = vor.u32 %v5816_v52, %v4971_v51  ;;  %v5800_v62 = vld [vmem:[#allocation13 + $0x3b4] sm:$0xf0]  ;;  %v4512_v21 = vor.u32 %v5698_v10, %v4509_v11  ;;  %v5766_v52 = vld [vmem:[#allocation13 + $0x2ac] sm:$0xf] }
 0x168   :  { %v4908_v9 = vor.u32 %v5800_v62, %v4907_v58  ;;  %v5742_v62 = vld [vmem:[#allocation13 + $0x1ec] sm:$0xf] }
 0x169   :  { %2906 = vmatpush.bf16.msra.mxu2 %v4780_v27  ;;  %2867 = vmatpush.bf16.msrb.mxu3 %v5160_v30  ;;  %v5096_v27 = vor.u32 %v5845_v31, %v5093_v17  ;;  %v5856_v30 = vld [vmem:[#allocation13 + $0x574] sm:$0xf0]  ;;  %v4891_v31 = vld [vmem:[#allocation13 + $0x388] sm:$0xf]  ;;  %v5834_v10 = vld [vmem:[#allocation13 + $0x4cc] sm:$0xf] }
 0x16a   :  { %2945 = vmatpush.bf16.msrb.mxu1 %v5164_v0  ;;  %v5132_v1 = vor.u32 %v5856_v30, %v5131_v29  ;;  %v4955_v0 = vld [vmem:[#allocation13 + $0x408] sm:$0xf]  ;;  %v5796_v17 = vld [vmem:[#allocation13 + $0x394] sm:$0xf0]  ;;  %v4813_v29 = vld [vmem:[#allocation13 + $0x2f8] sm:$0xf0] }
 0x16b   :  { %2933 = vmatpush.bf16.msrb.mxu0 %v5020_v18  ;;  %v4956_v13 = vor.u32 %v5812_v3, %v4955_v0 }
 0x16d   :  { %2907 = vmatpush.bf16.msra.mxu2 %v4764_v42  ;;  %2868 = vmatpush.bf16.msrb.mxu3 %v5144_v43  ;;  %v5852_v42 = vld [vmem:[#allocation13 + $0x554] sm:$0xf0]  ;;  %v4940_v43 = vor.u32 %v5808_v6, %v4939_v33  ;;  %v5690_v33 = vld [vmem:[#allocation13 + $0x4c] sm:$0xf] }
 0x16e   :  { %2946 = vmatpush.bf16.msrb.mxu1 %v5148_v19  ;;  %v5116_v50 = vor.u32 %v5852_v42, %v5115_v41  ;;  %v5788_v6 = vld [vmem:[#allocation13 + $0x354] sm:$0xf0]  ;;  %v4843_v41 = vld [vmem:[#allocation13 + $0x328] sm:$0xf]  ;;  %v5686_v42 = vld [vmem:[#allocation13 + $0x2c] sm:$0xf] }
 0x16f   :  { %2934 = vmatpush.bf16.msrb.mxu0 %v5004_v35  ;;  %v4859_v35 = vld [vmem:[#allocation13 + $0x348] sm:$0xf] }
 0x171   :  { %2908 = vmatpush.bf16.msra.mxu2 %v4748_v55  ;;  %2869 = vmatpush.bf16.msrb.mxu3 %v5128_v56  ;;  %v5099_v55 = vld [vmem:[#allocation13 + $0x528] sm:$0xf]  ;;  %v5848_v56 = vld [vmem:[#allocation13 + $0x534] sm:$0xf0] }
 0x172   :  { %2947 = vmatpush.bf16.msrb.mxu1 %v5132_v1  ;;  %v5100_v63 = vor.u32 %v5848_v56, %v5099_v55  ;;  %v5682_v55 = vld [vmem:[#allocation13 + $0xc] sm:$0xf]  ;;  %v4445_v56 = vld [vmem:[#allocation13 + $0x18] sm:$0xf0] }
 0x173   :  { %2935 = vmatpush.bf16.msrb.mxu0 %v4988_v48  ;;  %v4944_v48 = vor.u32 %v5806_v46, %v4941_v47  ;;  %v4448_v3 = vor.u32 %v5682_v55, %v4445_v56  ;;  %v4717_v46 = vld [vmem:[#allocation13 + $0x238] sm:$0xf0] }
 0x174   :  { %v4621_v55 = vld [vmem:[#allocation13 + $0x178] sm:$0xf0] }
 0x175   :  { %2909 = vmatpush.bf16.msra.mxu2 %v4732_v4  ;;  %2870 = vmatpush.bf16.msrb.mxu3 %v5112_v8  ;;  %v1497_v4 = vadd.f32 %v5971_v53, %v6479_v44  ;;  %v5844_v8 = vld [vmem:[#allocation13 + $0x514] sm:$0xf0]  ;;  %v4892_v44 = vor.u32 %v5796_v17, %v4891_v31  ;;  %v4781_v53 = vld [vmem:[#allocation13 + $0x2b8] sm:$0xf0]  ;;  %v5798_v17 = vld [vmem:[#allocation13 + $0x3ac] sm:$0xf] }
 0x176   :  { %2948 = vmatpush.bf16.msrb.mxu1 %v5116_v50  ;;  %v5084_v18 = vor.u32 %v5844_v8, %v5083_v7  ;;  %v5780_v50 = vld [vmem:[#allocation13 + $0x314] sm:$0xf0]  ;;  %v4784_v58 = vor.u32 %v5766_v52, %v4781_v53  ;;  %v5738_v8 = vld [vmem:[#allocation13 + $0x1cc] sm:$0xf]  ;;  %v5053_v31 = vld [vmem:[#allocation13 + $0x4d8] sm:$0xf0] }
 0x177   :  { %2936 = vmatpush.bf16.msrb.mxu0 %v4972_v61  ;;  %v4925_v61 = vld [vmem:[#allocation13 + $0x3d8] sm:$0xf0]  ;;  %v4828_v7 = vor.u32 %v5780_v50, %v4827_v49  ;;  %v5822_v50 = vld [vmem:[#allocation13 + $0x46c] sm:$0xf] }
 0x178   :  { %v4928_v0 = vor.u32 %v5802_v60, %v4925_v61  ;;  %v5005_v52 = vld [vmem:[#allocation13 + $0x478] sm:$0xf0]  ;;  %v5786_v53 = vld [vmem:[#allocation13 + $0x34c] sm:$0xf] }
 0x179   :  { %2910 = vmatpush.bf16.msra.mxu2 %v4716_v24  ;;  %2871 = vmatpush.bf16.msrb.mxu3 %v5096_v27  ;;  %v4875_v24 = vld [vmem:[#allocation13 + $0x368] sm:$0xf]  ;;  %v5774_v27 = vld [vmem:[#allocation13 + $0x2ec] sm:$0xf]  ;;  %v5008_v60 = vor.u32 %v5822_v50, %v5005_v52 }
 0x17a   :  { %2949 = vmatpush.bf16.msrb.mxu1 %v5100_v63  ;;  %v4876_v30 = vor.u32 %v5792_v25, %v4875_v24  ;;  %v4816_v14 = vor.u32 %v5774_v27, %v4813_v29  ;;  %v4685_v63 = vld [vmem:[#allocation13 + $0x1f8] sm:$0xf0]  ;;  %v5734_v24 = vld [vmem:[#allocation13 + $0x1ac] sm:$0xf]  ;;  %v5056_v25 = vor.u32 %v5834_v10, %v5053_v31  ;;  %v5879_v31 = vld [vmem:[#allocation14 + $0x30] sm:$0xff] }
 0x17b   :  { %2937 = vmatpush.bf16.msrb.mxu0 %v4956_v13  ;;  %v4688_v13 = vor.u32 %v5742_v62, %v4685_v63  ;;  %v5830_v27 = vld [vmem:[#allocation13 + $0x4ac] sm:$0xf]  ;;  %v5037_v29 = vld [vmem:[#allocation13 + $0x4b8] sm:$0xf0] }
 0x17c   :  { %v5818_v61 = vld [vmem:[#allocation13 + $0x44c] sm:$0xf]  ;;  %v5880_v62 = vld [vmem:[#allocation14 + $0x38] sm:$0xff] }
 0x17d   :  { %2911 = vmatpush.bf16.msra.mxu2 %v4700_v38  ;;  %2872 = vmatpush.bf16.msrb.mxu3 %v5080_v39  ;;  %v1509_v19 = vpop.f32.mrf.mxu1  ;;  %v4480_v38 = vor.u32 %v5690_v33, %v4477_v34  ;;  %v4800_v39 = vor.u32 %v5770_v15, %v4797_v36  ;;  %v4893_v33 = vld [vmem:[#allocation13 + $0x398] sm:$0xf0]  ;;  %v5730_v15 = vld [vmem:[#allocation13 + $0x18c] sm:$0xf]  ;;  %v5040_v36 = vor.u32 %v5830_v27, %v5037_v29 }
 0x17e   :  { %v6486_v20 = vadd.f32 %v1509_v19, %v1497_v4  ;;  %2950 = vmatpush.bf16.msrb.mxu1 %v5084_v18  ;;  %2938 = vmatmul.bf16.vlgmr.msrb.gmra.mxu0 %v6464_v26  ;;  %v5762_v4 = vld [vmem:[#allocation13 + $0x28c] sm:$0xf]  ;;  %v4909_v18 = vld [vmem:[#allocation13 + $0x3b8] sm:$0xf0] }
 0x17f   :  { %2982 = vmatpush.bf16.msra.mxu0 %v4816_v14  ;;  %v4669_v19 = vld [vmem:[#allocation13 + $0x1d8] sm:$0xf0]  ;;  %v5878_v27 = vld [vmem:[#allocation14 + $0x28] sm:$0xff] }
 0x180   :  { %2912 = vmatmul.bf16.vlgmr.msra.gmra.mxu2 %v6461_v37  ;;  %2873 = vmatmul.bf16.vlgmr.msrb.gmra.mxu3 %v6466_v32  ;;  %v4653_v34 = vld [vmem:[#allocation13 + $0x1b8] sm:$0xf0]  ;;  %v5810_v29 = vld [vmem:[#allocation13 + $0x40c] sm:$0xf] }
 0x181   :  { %2956 = vmatpush.bf16.msrb.mxu2 %v4560_v40  ;;  %2917 = vmatpush.bf16.msra.mxu3 %v4940_v43  ;;  %v4860_v40 = vor.u32 %v5788_v6, %v4859_v35  ;;  %v4461_v43 = vld [vmem:[#allocation13 + $0x38] sm:$0xf0]  ;;  %v5754_v35 = vld [vmem:[#allocation13 + $0x24c] sm:$0xf] }
 0x182   :  { %2951 = vmatmul.bf16.vlgmr.msrb.gmra.mxu1 %v6466_v32  ;;  %v4464_v51 = vor.u32 %v5686_v42, %v4461_v43  ;;  %v4733_v6 = vld [vmem:[#allocation13 + $0x258] sm:$0xf0]  ;;  %v5874_v50 = vld [vmem:[#allocation14 + $0x8] sm:$0xff] }
 0x183   :  { %2983 = vmatpush.bf16.msra.mxu0 %v4800_v39  ;;  %2995 = vmatpush.bf16.msra.mxu1 %v4944_v48  ;;  %v4656_v39 = vor.u32 %v5734_v24, %v4653_v34  ;;  %v4877_v42 = vld [vmem:[#allocation13 + $0x378] sm:$0xf0]  ;;  %v5726_v48 = vld [vmem:[#allocation13 + $0x16c] sm:$0xf] }
 0x184   :  { %v4637_v43 = vld [vmem:[#allocation13 + $0x198] sm:$0xf0]  ;;  %v4624_v63 = vor.u32 %v5726_v48, %v4621_v55  ;;  %v5714_v34 = vld [vmem:[#allocation13 + $0x10c] sm:$0xf]  ;;  %v5873_v55 = vld [vmem:[#allocation14] sm:$0xff] }
 0x185   :  { %2957 = vmatpush.bf16.msrb.mxu2 %v4544_v54  ;;  %2918 = vmatpush.bf16.msra.mxu3 %v4924_v57  ;;  %v1511_v1 = vpop.f32.mrf.mxu1  ;;  %v4844_v54 = vor.u32 %v5784_v45, %v4843_v41  ;;  %v5838_v57 = vld [vmem:[#allocation13 + $0x4ec] sm:$0xf] }
 0x186   :  { %v4736_v1 = vor.u32 %v5754_v35, %v4733_v6  ;;  %v5790_v41 = vld [vmem:[#allocation13 + $0x36c] sm:$0xf]  ;;  %v5197_v6 = vld [vmem:[#allocation13 + $0x5f8] sm:$0xf0] }
 0x187   :  { %2984 = vmatpush.bf16.msra.mxu0 %v4784_v58  ;;  %2996 = vmatpush.bf16.msra.mxu1 %v4928_v0  ;;  %v4880_v45 = vor.u32 %v5790_v41, %v4877_v42  ;;  %v4701_v58 = vld [vmem:[#allocation13 + $0x218] sm:$0xf0]  ;;  %v5870_v35 = vld [vmem:[#allocation13 + $0x5ec] sm:$0xf] }
 0x188   :  { %v4989_v0 = vld [vmem:[#allocation13 + $0x458] sm:$0xf0]  ;;  %v5858_v48 = vld [vmem:[#allocation13 + $0x58c] sm:$0xf] }
 0x189   :  { %2958 = vmatpush.bf16.msrb.mxu2 %v4528_v5  ;;  %2919 = vmatpush.bf16.msra.mxu3 %v4908_v9  ;;  %v4765_v5 = vld [vmem:[#allocation13 + $0x298] sm:$0xf0]  ;;  %v5072_v9 = vor.u32 %v5838_v57, %v5069_v59  ;;  %v5746_v57 = vld [vmem:[#allocation13 + $0x20c] sm:$0xf] }
 0x18a   :  { %v4768_v11 = vor.u32 %v5762_v4, %v4765_v5  ;;  %v4704_v59 = vor.u32 %v5746_v57, %v4701_v58  ;;  %v4845_v4 = vld [vmem:[#allocation13 + $0x338] sm:$0xf0]  ;;  %v5854_v52 = vld [vmem:[#allocation13 + $0x56c] sm:$0xf]  ;;  %v5887_v58 = vld [vmem:[#allocation14 + $0x70] sm:$0xff] }
 0x18b   :  { %v5876_v42 = vld [vmem:[#allocation14 + $0x18] sm:$0xff] }
 0x18c   :  { %2985 = vmatpush.bf16.msra.mxu0 %v4768_v11  ;;  %v4992_v11 = vor.u32 %v5818_v61, %v4989_v0  ;;  %v5117_v61 = vld [vmem:[#allocation13 + $0x558] sm:$0xf0] }
 0x18d   :  { %2959 = vmatpush.bf16.msrb.mxu2 %v4512_v21  ;;  %2920 = vmatpush.bf16.msra.mxu3 %v4892_v44  ;;  %v4912_v21 = vor.u32 %v5798_v17, %v4909_v18  ;;  %v5758_v44 = vld [vmem:[#allocation13 + $0x26c] sm:$0xf]  ;;  %v4973_v18 = vld [vmem:[#allocation13 + $0x438] sm:$0xf0] }
 0x18e   :  { %v4752_v23 = vor.u32 %v5758_v44, %v4749_v22  ;;  %v5718_v44 = vld [vmem:[#allocation13 + $0x12c] sm:$0xf]  ;;  %v4589_v22 = vld [vmem:[#allocation13 + $0x138] sm:$0xf0] }
 0x18f   :  { %2997 = vmatpush.bf16.msra.mxu1 %v4912_v21  ;;  %v4829_v21 = vld [vmem:[#allocation13 + $0x318] sm:$0xf0] }
 0x190   :  { %2986 = vmatpush.bf16.msra.mxu0 %v4752_v23 }
 0x191   :  { %2960 = vmatpush.bf16.msrb.mxu2 %v4496_v28  ;;  %2921 = vmatpush.bf16.msra.mxu3 %v4876_v30  ;;  %v4672_v28 = vor.u32 %v5738_v8, %v4669_v19  ;;  %v5794_v30 = vld [vmem:[#allocation13 + $0x38c] sm:$0xf]  ;;  %v4605_v8 = vld [vmem:[#allocation13 + $0x158] sm:$0xf0]  ;;  %v6495_v23 = vpop.f32.mrf.mxu0 }
 0x192   :  { %v4896_v14 = vor.u32 %v5794_v30, %v4893_v33  ;;  %v5778_v19 = vld [vmem:[#allocation13 + $0x30c] sm:$0xf]  ;;  %v4957_v30 = vld [vmem:[#allocation13 + $0x418] sm:$0xf0] }
 0x193   :  { %v4832_v24 = vor.u32 %v5778_v19, %v4829_v21  ;;  %v5896_v21 = vld [vmem:[#allocation14 + $0xb8] sm:$0xff] }
 0x194   :  { %2998 = vmatpush.bf16.msra.mxu1 %v4896_v14  ;;  %2987 = vmatpush.bf16.msra.mxu0 %v4736_v1  ;;  %v4573_v14 = vld [vmem:[#allocation13 + $0x118] sm:$0xf0]  ;;  %v4960_v1 = vor.u32 %v5810_v29, %v4957_v30 }
 0x195   :  { %2961 = vmatpush.bf16.msrb.mxu2 %v4480_v38  ;;  %2922 = vmatpush.bf16.msra.mxu3 %v4860_v40  ;;  %v5826_v38 = vld [vmem:[#allocation13 + $0x48c] sm:$0xf]  ;;  %v5021_v40 = vld [vmem:[#allocation13 + $0x498] sm:$0xf0] }
 0x196   :  { %v5024_v49 = vor.u32 %v5826_v38, %v5021_v40  ;;  %v5181_v40 = vld [vmem:[#allocation13 + $0x5d8] sm:$0xf0] }
 0x198   :  { %2999 = vmatpush.bf16.msra.mxu1 %v4880_v45  ;;  %v5862_v45 = vld [vmem:[#allocation13 + $0x5ac] sm:$0xf] }
 0x199   :  { %2962 = vmatpush.bf16.msrb.mxu2 %v4464_v51  ;;  %2923 = vmatpush.bf16.msra.mxu3 %v4844_v54  ;;  %v4640_v51 = vor.u32 %v5730_v15, %v4637_v43  ;;  %v4861_v54 = vld [vmem:[#allocation13 + $0x358] sm:$0xf0]  ;;  %v4576_v15 = vor.u32 %v5714_v34, %v4573_v14  ;;  %v2733_v38 = vpop.f32.mrf.mxu0 }
 0x19a   :  { %v4864_v56 = vor.u32 %v5786_v53, %v4861_v54  ;;  %v5133_v53 = vld [vmem:[#allocation13 + $0x578] sm:$0xf0] }
 0x19c   :  { %3000 = vmatpush.bf16.msra.mxu1 %v4864_v56  ;;  %v5888_v56 = vld [vmem:[#allocation14 + $0x78] sm:$0xff] }
 0x19d   :  { %2963 = vmatpush.bf16.msrb.mxu2 %v4448_v3  ;;  %2924 = vmatpush.bf16.msra.mxu3 %v4828_v7  ;;  %v5782_v3 = vld [vmem:[#allocation13 + $0x32c] sm:$0xf] }
 0x19e   :  { %v5722_v7 = vld [vmem:[#allocation13 + $0x14c] sm:$0xf] }
 0x19f   :  { %v4608_v17 = vor.u32 %v5722_v7, %v4605_v8  ;;  %v5101_v7 = vld [vmem:[#allocation13 + $0x538] sm:$0xf0] }
 0x1a0   :  { %2964 = vmatmul.bf16.vlgmr.msrb.gmra.mxu2 %v6451_v2  ;;  %2925 = vmatmul.bf16.vlgmr.msra.gmra.mxu3 %v6472_v16  ;;  %v5750_v2 = vld [vmem:[#allocation13 + $0x22c] sm:$0xf] }
 0x1a1   :  { %3008 = vmatpush.bf16.msra.mxu2 %v5072_v9  ;;  %2969 = vmatpush.bf16.msrb.mxu3 %v4688_v13  ;;  %v4720_v47 = vor.u32 %v5750_v2, %v4717_v46  ;;  %v4848_v9 = vor.u32 %v5782_v3, %v4845_v4  ;;  %v5814_v13 = vld [vmem:[#allocation13 + $0x42c] sm:$0xf]  ;;  %v5165_v2 = vld [vmem:[#allocation13 + $0x5b8] sm:$0xf0] }
 0x1a2   :  { %v5886_v3 = vld [vmem:[#allocation14 + $0x68] sm:$0xff] }
 0x1a3   :  { %2988 = vmatpush.bf16.msra.mxu0 %v4720_v47  ;;  %v1522_v5 = vpop.f32.mrf.mxu2  ;;  %3001 = vmatpush.bf16.msra.mxu1 %v4848_v9  ;;  %v5168_v47 = vor.u32 %v5862_v45, %v5165_v2  ;;  %v5892_v45 = vld [vmem:[#allocation14 + $0x98] sm:$0xff] }
 0x1a4   :  { %v6493_v10 = vadd.f32 %v1522_v5, %v6486_v20  ;;  %v4976_v20 = vor.u32 %v5814_v13, %v4973_v18  ;;  %v2783_v54 = vpop.f32.mrf.mxu0  ;;  %v5846_v5 = vld [vmem:[#allocation13 + $0x52c] sm:$0xf] }
 0x1a5   :  { %3009 = vmatpush.bf16.msra.mxu2 %v5056_v25  ;;  %2970 = vmatpush.bf16.msrb.mxu3 %v4672_v28  ;;  %v6498_v25 = vpop.f32.mrf.mxu1  ;;  %v4592_v28 = vor.u32 %v5718_v44, %v4589_v22  ;;  %v5842_v18 = vld [vmem:[#allocation13 + $0x50c] sm:$0xf]  ;;  %v5884_v22 = vld [vmem:[#allocation14 + $0x58] sm:$0xff] }
 0x1a7   :  { %2989 = vmatpush.bf16.msra.mxu0 %v4704_v59  ;;  %3002 = vmatpush.bf16.msra.mxu1 %v4832_v24  ;;  %v6506_v59 = vld [vmem:[%s6548_s7] sm:$0xf] }
 0x1a8   :  { %v1733_v0 = vperm.slane %v6506_v59, 0  ;;  %v1734_v2 = vperm.slane %v6506_v59, 1 }
 0x1a9   :  { %3010 = vmatpush.bf16.msra.mxu2 %v5040_v36  ;;  %2971 = vmatpush.bf16.msrb.mxu3 %v4656_v39  ;;  %v5200_v36 = vor.u32 %v5870_v35, %v5197_v6  ;;  %v5866_v39 = vld [vmem:[#allocation13 + $0x5cc] sm:$0xf] }
 0x1aa   :  { %2990 = vmatmul.bf16.vlgmr.msra.gmra.mxu0 %v6461_v37  ;;  %3003 = vmatmul.bf16.vlgmr.msra.gmra.mxu1 %v6472_v16  ;;  %v5877_v37 = vld [vmem:[#allocation14 + $0x20] sm:$0xff]  ;;  %v5184_v43 = vor.u32 %v5866_v39, %v5181_v40  ;;  %v5875_v16 = vld [vmem:[#allocation14 + $0x10] sm:$0xff]  ;;  %v2732_v9 = vadd.f32 %v6495_v23, %v1733_v0  ;;  %v5894_v40 = vld [vmem:[#allocation14 + $0xa8] sm:$0xff] }
 0x1ab   :  { %3302 = vmatpush.bf16.msrb.mxu0 %v5880_v62  ;;  %v1524_v33 = vpop.f32.mrf.mxu2  ;;  %3315 = vmatpush.bf16.msrb.mxu1 %v5888_v56  ;;  %v5881_v39 = vld [vmem:[#allocation14 + $0x40] sm:$0xff]  ;;  %v5916_v0 = vld [vmem:[#allocation16 + $0x54] sm:$0xf0] }
 0x1ac   :  { %v2785_v8 = vpop.f32.mrf.mxu0  ;;  %v2745_v44 = vadd.f32 %v6498_v25, %v2732_v9  ;;  %v5914_v9 = vld [vmem:[#allocation16 + $0x44] sm:$0xf0] }
 0x1ad   :  { %3011 = vmatpush.bf16.msra.mxu2 %v5024_v49  ;;  %2972 = vmatpush.bf16.msrb.mxu3 %v4640_v51  ;;  %v2746_v41 = vpop.f32.mrf.mxu1  ;;  %v5149_v49 = vld [vmem:[#allocation13 + $0x598] sm:$0xf0]  ;;  %v5427_v8 = vld [vmem:[#allocation16 + $0x40] sm:$0xf] }
 0x1ae   :  { %v5152_v51 = vor.u32 %v5858_v48, %v5149_v49 }
 0x1af   :  { %3303 = vmatpush.bf16.msrb.mxu0 %v5879_v31  ;;  %3316 = vmatpush.bf16.msrb.mxu1 %v5887_v58  ;;  %v5885_v31 = vld [vmem:[#allocation14 + $0x60] sm:$0xff] }
 0x1b0   :  { %v5443_v58 = vld [vmem:[#allocation16 + $0x60] sm:$0xf] }
 0x1b1   :  { %3012 = vmatpush.bf16.msra.mxu2 %v5008_v60  ;;  %2973 = vmatpush.bf16.msrb.mxu3 %v4624_v63  ;;  %v5850_v60 = vld [vmem:[#allocation13 + $0x54c] sm:$0xf] }
 0x1b2   :  { %v5120_v4 = vor.u32 %v5850_v60, %v5117_v61 }
 0x1b3   :  { %3304 = vmatpush.bf16.msrb.mxu0 %v5878_v27  ;;  %v2757_v46 = vpop.f32.mrf.mxu2  ;;  %3317 = vmatpush.bf16.msrb.mxu1 %v5886_v3 }
 0x1b4   :  { %v2758_v27 = vadd.f32 %v2757_v46, %v2745_v44 }
 0x1b5   :  { %3013 = vmatpush.bf16.msra.mxu2 %v4992_v11  ;;  %2974 = vmatpush.bf16.msrb.mxu3 %v4608_v17  ;;  %v2796_v57 = vpop.f32.mrf.mxu1  ;;  %v5104_v17 = vor.u32 %v5846_v5, %v5101_v7 }
 0x1b7   :  { %3305 = vmatpush.bf16.msrb.mxu0 %v5877_v37  ;;  %3318 = vmatpush.bf16.msrb.mxu1 %v5885_v31  ;;  %v5428_v31 = vor.u32 %v5914_v9, %v5427_v8  ;;  %v5911_v9 = vld [vmem:[#allocation16 + $0x34] sm:$0xf] }
 0x1b9   :  { %3014 = vmatpush.bf16.msra.mxu2 %v4976_v20  ;;  %2975 = vmatpush.bf16.msrb.mxu3 %v4592_v28  ;;  %v5883_v28 = vld [vmem:[#allocation14 + $0x50] sm:$0xff] }
 0x1bb   :  { %3306 = vmatpush.bf16.msrb.mxu0 %v5876_v42  ;;  %v2835_v20 = vpop.f32.mrf.mxu0  ;;  %3319 = vmatpush.bf16.msrb.mxu1 %v5884_v22 }
 0x1bd   :  { %3015 = vmatpush.bf16.msra.mxu2 %v4960_v1  ;;  %2976 = vmatpush.bf16.msrb.mxu3 %v4576_v15  ;;  %v2798_v13 = vpop.f32.mrf.mxu1  ;;  %v5882_v15 = vld [vmem:[#allocation14 + $0x48] sm:$0xff] }
 0x1bf   :  { %3307 = vmatpush.bf16.msrb.mxu0 %v5875_v16  ;;  %3320 = vmatpush.bf16.msrb.mxu1 %v5883_v28  ;;  %v5403_v28 = vld [vmem:[#allocation16 + $0x10] sm:$0xf] }
 0x1c0   :  { %3016 = vmatmul.bf16.vlgmr.msra.gmra.mxu2 %v6464_v26  ;;  %2977 = vmatmul.bf16.vlgmr.msrb.gmra.mxu3 %v6453_v12  ;;  %v2759_v26 = vpop.f32.mrf.mxu2  ;;  %v5136_v12 = vor.u32 %v5854_v52, %v5133_v53  ;;  %v5451_v53 = vld [vmem:[#allocation16 + $0x70] sm:$0xf] }
 0x1c1   :  { %3021 = vmatpush.bf16.msra.mxu3 %v5200_v36  ;;  %3328 = vmatpush.bf16.msrb.mxu2 %v5896_v21  ;;  %v5895_v36 = vld [vmem:[#allocation14 + $0xb0] sm:$0xff] }
 0x1c3   :  { %3308 = vmatpush.bf16.msrb.mxu0 %v5874_v50  ;;  %v1535_v62 = vpop.f32.mrf.mxu3  ;;  %v2837_v14 = vpop.f32.mrf.mxu0  ;;  %3321 = vmatpush.bf16.msrb.mxu1 %v5882_v15 }
 0x1c4   :  { %v6509_v63 = vadd.f32 %v1535_v62, %v6493_v10  ;;  %v5085_v10 = vld [vmem:[#allocation13 + $0x518] sm:$0xf0]  ;;  %v5435_v62 = vld [vmem:[#allocation16 + $0x50] sm:$0xf] }
 0x1c5   :  { %3022 = vmatpush.bf16.msra.mxu3 %v5184_v43  ;;  %v5088_v24 = vor.u32 %v5842_v18, %v5085_v10  ;;  %v2848_v29 = vpop.f32.mrf.mxu1  ;;  %3329 = vmatpush.bf16.msrb.mxu2 %v5895_v36  ;;  %v5419_v10 = vld [vmem:[#allocation16 + $0x30] sm:$0xf]  ;;  %v5902_v36 = vld [vmem:[#allocation14 + $0xe8] sm:$0xff] }
 0x1c7   :  { %3309 = vmatpush.bf16.msrb.mxu0 %v5873_v55  ;;  %3322 = vmatpush.bf16.msrb.mxu1 %v5881_v39  ;;  %v5889_v55 = vld [vmem:[#allocation14 + $0x80] sm:$0xff] }
 0x1c8   :  { %v2809_v11 = vpop.f32.mrf.mxu2  ;;  %v5901_v39 = vld [vmem:[#allocation14 + $0xe0] sm:$0xff] }
 0x1c9   :  { %3023 = vmatpush.bf16.msra.mxu3 %v5168_v47  ;;  %3330 = vmatpush.bf16.msrb.mxu2 %v5894_v40  ;;  %v5891_v47 = vld [vmem:[#allocation14 + $0x90] sm:$0xff]  ;;  %v2810_v48 = vadd.f32 %v2809_v11, %v1734_v2 }
 0x1cb   :  { %v1537_v19 = vpop.f32.mrf.mxu3 }
 0x1cc   :  { %v5912_v19 = vld [vmem:[#allocation16 + $0x34] sm:$0xf0] }
 0x1cd   :  { %3024 = vmatpush.bf16.msra.mxu3 %v5152_v51  ;;  %v2850_v35 = vpop.f32.mrf.mxu1  ;;  %v5890_v51 = vld [vmem:[#allocation14 + $0x88] sm:$0xff]  ;;  %v5420_v21 = vor.u32 %v5912_v19, %v5419_v10  ;;  %v5907_v10 = vld [vmem:[#allocation16 + $0x14] sm:$0xf]  ;;  %v5405_v19 = vld [vmem:[#allocation16 + $0x18] sm:$0xf0] }
 0x1ce   :  { %v5395_v35 = vld [vmem:[#allocation16] sm:$0xf] }
 0x1d0   :  { %v2811_v23 = vpop.f32.mrf.mxu2 }
 0x1d1   :  { %3025 = vmatpush.bf16.msra.mxu3 %v5136_v12  ;;  %v5918_v12 = vld [vmem:[#allocation16 + $0x64] sm:$0xf0]  ;;  %v5904_v23 = vld [vmem:[#allocation14 + $0xf8] sm:$0xff] }
 0x1d2   :  { %v5444_v60 = vor.u32 %v5918_v12, %v5443_v58 }
 0x1d3   :  { %v2770_v30 = vpop.f32.mrf.mxu3 }
 0x1d4   :  { %v2771_v33 = vadd.f32 %v2770_v30, %v2758_v27  ;;  %v5903_v30 = vld [vmem:[#allocation14 + $0xf0] sm:$0xff] }
 0x1d5   :  { %3026 = vmatpush.bf16.msra.mxu3 %v5120_v4  ;;  %v5436_v4 = vor.u32 %v5916_v0, %v5435_v62  ;;  %v3354_v0 = vpack.c.bf16 %v6509_v63, %v6509_v63  ;;  %v1736_v63 = vperm.slane %v6506_v59, 3 }
 0x1d6   :  { %v2784_v34 = vadd.f32 %v2783_v54, %v2771_v33  ;;  %v5920_v54 = vld [vmem:[#allocation16 + $0x74] sm:$0xf0] }
 0x1d7   :  { %v5452_v26 = vor.u32 %v5920_v54, %v5451_v53  ;;  %v5897_v53 = vld [vmem:[#allocation14 + $0xc0] sm:$0xff] }
 0x1d8   :  { %v2797_v25 = vadd.f32 %v2796_v57, %v2784_v34 }
 0x1d9   :  { %3027 = vmatpush.bf16.msra.mxu3 %v5104_v17 }
 0x1da   :  { %v3034_v6 = vmax.f32 %v2797_v25, 0.0  ;;  %v1735_v25 = vperm.slane %v6506_v59, 2 }
 0x1db   :  { %v2772_v1 = vpop.f32.mrf.mxu3  ;;  %v6515_v42 = vpop.f32.mrf.mxu0 }
 0x1dc   :  { %v3038_v37 = vpack.c.bf16 %v3034_v6, %v3034_v6  ;;  %v5906_v6 = vld [vmem:[#allocation16 + $0x4] sm:$0xf0] }
 0x1dd   :  { %3028 = vmatpush.bf16.msra.mxu3 %v5088_v24  ;;  %v5411_v24 = vld [vmem:[#allocation16 + $0x20] sm:$0xf]  ;;  %v5396_v1 = vor.u32 %v5906_v6, %v5395_v35 }
 0x1de   :  { %3310 = vmatmul.bf16.vlgmr.msrb.gmra.mxu0 %v3038_v37  ;;  %v2888_v37 = vadd.f32 %v6515_v42, %v1735_v25 }
 0x1e0   :  { %3029 = vmatmul.bf16.vlgmr.msra.gmra.mxu3 %v6466_v32  ;;  %v5893_v32 = vld [vmem:[#allocation14 + $0xa0] sm:$0xff]  ;;  %v6517_v43 = vpop.f32.mrf.mxu1 }
 0x1e1   :  { %3331 = vmatpush.bf16.msrb.mxu2 %v5893_v32  ;;  %3341 = vmatpush.bf16.msrb.mxu3 %v5904_v23  ;;  %v2901_v15 = vadd.f32 %v6517_v43, %v2888_v37  ;;  %v5898_v43 = vld [vmem:[#allocation14 + $0xc8] sm:$0xff]  ;;  %v5972_v37 = vld [vmem:[%s6550_s9] ss:$0 sm:$0xff] }
 0x1e3   :  { %v2861_v38 = vpop.f32.mrf.mxu2  ;;  %v2822_v41 = vpop.f32.mrf.mxu3 }
 0x1e4   :  { %v2889_v49 = vpop.f32.mrf.mxu0  ;;  %v2823_v52 = vadd.f32 %v2822_v41, %v2810_v48 }
 0x1e5   :  { %3332 = vmatpush.bf16.msrb.mxu2 %v5892_v45  ;;  %3342 = vmatpush.bf16.msrb.mxu3 %v5903_v30  ;;  %v5900_v45 = vld [vmem:[#allocation14 + $0xd8] sm:$0xff] }
 0x1e6   :  { %v2836_v56 = vadd.f32 %v2835_v20, %v2823_v52  ;;  %v5910_v20 = vld [vmem:[#allocation16 + $0x24] sm:$0xf0]  ;;  %v5453_v52 = vld [vmem:[#allocation16 + $0x78] sm:$0xf0] }
 0x1e7   :  { %v5412_v27 = vor.u32 %v5910_v20, %v5411_v24  ;;  %v5905_v24 = vld [vmem:[#allocation16 + $0x4] sm:$0xf]  ;;  %v5397_v20 = vld [vmem:[#allocation16 + $0x8] sm:$0xf0] }
 0x1e8   :  { %v2902_v50 = vpop.f32.mrf.mxu1  ;;  %v2849_v57 = vadd.f32 %v2848_v29, %v2836_v56  ;;  %v5908_v29 = vld [vmem:[#allocation16 + $0x14] sm:$0xf0]  ;;  %v5917_v56 = vld [vmem:[#allocation16 + $0x64] sm:$0xf]  ;;  %v5400_v23 = vor.u32 %v5905_v24, %v5397_v20  ;;  %v5331_v20 = vld [vmem:[#allocation17] sm:$0xf] }
 0x1e9   :  { %3333 = vmatpush.bf16.msrb.mxu2 %v5891_v47  ;;  %v5404_v14 = vor.u32 %v5908_v29, %v5403_v28  ;;  %3343 = vmatpush.bf16.msrb.mxu3 %v5902_v36 }
 0x1ea   :  { %v2862_v61 = vadd.f32 %v2861_v38, %v2849_v57 }
 0x1eb   :  { %v2863_v16 = vpop.f32.mrf.mxu2  ;;  %v2824_v46 = vpop.f32.mrf.mxu3 }
 0x1ec   :  { %v5899_v46 = vld [vmem:[#allocation14 + $0xd0] sm:$0xff] }
 0x1ed   :  { %3334 = vmatpush.bf16.msrb.mxu2 %v5890_v51  ;;  %3344 = vmatpush.bf16.msrb.mxu3 %v5901_v39  ;;  %v5919_v51 = vld [vmem:[#allocation16 + $0x74] sm:$0xf] }
 0x1ee   :  { %v5456_v54 = vor.u32 %v5919_v51, %v5453_v52  ;;  %v5932_v51 = vld [vmem:[#allocation17 + $0x54] sm:$0xf0]  ;;  %v5931_v52 = vld [vmem:[#allocation17 + $0x54] sm:$0xf] }
 0x1f1   :  { %3335 = vmatpush.bf16.msrb.mxu2 %v5889_v55  ;;  %3345 = vmatpush.bf16.msrb.mxu3 %v5900_v45 }
 0x1f5   :  { %3574 = vmatpush.bf16.msra.mxu2 %v5452_v26  ;;  %3346 = vmatpush.bf16.msrb.mxu3 %v5899_v46  ;;  %v5445_v26 = vld [vmem:[#allocation16 + $0x68] sm:$0xf0]  ;;  %v5934_v46 = vld [vmem:[#allocation17 + $0x64] sm:$0xf0] }
 0x1f6   :  { %v5448_v58 = vor.u32 %v5917_v56, %v5445_v26  ;;  %v5363_v26 = vld [vmem:[#allocation17 + $0x40] sm:$0xf] }
 0x1f9   :  { %3575 = vmatpush.bf16.msra.mxu2 %v5444_v60  ;;  %3347 = vmatpush.bf16.msrb.mxu3 %v5898_v43  ;;  %v5915_v60 = vld [vmem:[#allocation16 + $0x54] sm:$0xf]  ;;  %v5371_v43 = vld [vmem:[#allocation17 + $0x50] sm:$0xf] }
 0x1fb   :  { %v2939_v13 = vpop.f32.mrf.mxu0 }
 0x1fd   :  { %3576 = vmatpush.bf16.msra.mxu2 %v5436_v4  ;;  %3348 = vmatpush.bf16.msrb.mxu3 %v5897_v53  ;;  %v5429_v4 = vld [vmem:[#allocation16 + $0x48] sm:$0xf0]  ;;  %v5373_v53 = vld [vmem:[#allocation17 + $0x58] sm:$0xf0] }
 0x1fe   :  { %v5376_v56 = vor.u32 %v5931_v52, %v5373_v53 }
 0x1ff   :  { %v2952_v17 = vpop.f32.mrf.mxu1 }
 0x201   :  { %3577 = vmatpush.bf16.msra.mxu2 %v5428_v31  ;;  %3587 = vmatpush.bf16.msra.mxu3 %v5456_v54  ;;  %v5909_v31 = vld [vmem:[#allocation16 + $0x24] sm:$0xf]  ;;  %v5372_v54 = vor.u32 %v5932_v51, %v5371_v43 }
 0x203   :  { %v2913_v3 = vpop.f32.mrf.mxu2  ;;  %v2874_v5 = vpop.f32.mrf.mxu3 }
 0x204   :  { %v2875_v7 = vadd.f32 %v2874_v5, %v2862_v61  ;;  %v2941_v33 = vpop.f32.mrf.mxu0  ;;  %v2914_v38 = vadd.f32 %v2913_v3, %v2901_v15  ;;  %v5437_v61 = vld [vmem:[#allocation16 + $0x58] sm:$0xf0]  ;;  %v5913_v3 = vld [vmem:[#allocation16 + $0x44] sm:$0xf] }
 0x205   :  { %3578 = vmatpush.bf16.msra.mxu2 %v5420_v21  ;;  %3588 = vmatpush.bf16.msra.mxu3 %v5448_v58  ;;  %v5440_v62 = vor.u32 %v5915_v60, %v5437_v61  ;;  %v5929_v58 = vld [vmem:[#allocation17 + $0x44] sm:$0xf] }
 0x206   :  { %v3035_v11 = vmax.f32 %v2875_v7, 0.0  ;;  %v5432_v7 = vor.u32 %v5913_v3, %v5429_v4  ;;  %v5927_v3 = vld [vmem:[#allocation17 + $0x34] sm:$0xf]  ;;  %v5357_v4 = vld [vmem:[#allocation17 + $0x38] sm:$0xf0] }
 0x207   :  { %v2954_v34 = vpop.f32.mrf.mxu1 }
 0x208   :  { %v3039_v18 = vpack.c.bf16 %v3035_v11, %v3035_v11  ;;  %v5421_v11 = vld [vmem:[#allocation16 + $0x38] sm:$0xf0] }
 0x209   :  { %3579 = vmatpush.bf16.msra.mxu2 %v5412_v27  ;;  %3589 = vmatpush.bf16.msra.mxu3 %v5440_v62  ;;  %v5355_v62 = vld [vmem:[#allocation17 + $0x30] sm:$0xf] }
 0x20a   :  { %3323 = vmatmul.bf16.vlgmr.msrb.gmra.mxu1 %v3039_v18 }
 0x20b   :  { %v2915_v44 = vpop.f32.mrf.mxu2  ;;  %v2876_v22 = vpop.f32.mrf.mxu3 }
 0x20c   :  { %v5408_v22 = vor.u32 %v5907_v10, %v5405_v19  ;;  %v5339_v10 = vld [vmem:[#allocation17 + $0x10] sm:$0xf]  ;;  %v5924_v19 = vld [vmem:[#allocation17 + $0x14] sm:$0xf0] }
 0x20d   :  { %3580 = vmatpush.bf16.msra.mxu2 %v5404_v14  ;;  %3590 = vmatpush.bf16.msra.mxu3 %v5432_v7 }
 0x211   :  { %3581 = vmatpush.bf16.msra.mxu2 %v5396_v1 }
 0x223   :  { %v2965_v40 = vpop.f32.mrf.mxu2  ;;  %v2926_v41 = vpop.f32.mrf.mxu3 }
 0x224   :  { %v2927_v32 = vadd.f32 %v2926_v41, %v2914_v38  ;;  %v2966_v27 = vadd.f32 %v2965_v40, %v1736_v63  ;;  %v5387_v40 = vld [vmem:[#allocation17 + $0x70] sm:$0xf]  ;;  %v5936_v41 = vld [vmem:[#allocation17 + $0x74] sm:$0xf0]  ;;  %v5341_v63 = vld [vmem:[#allocation17 + $0x18] sm:$0xf0] }
 0x225   :  { %v5388_v45 = vor.u32 %v5936_v41, %v5387_v40  ;;  %v5940_v41 = vld [vmem:[#allocation19 + $0x18] sm:$0xff] }
 0x226   :  { %v2940_v2 = vadd.f32 %v2939_v13, %v2927_v32  ;;  %v5424_v13 = vor.u32 %v5911_v9, %v5421_v11  ;;  %v5935_v32 = vld [vmem:[#allocation17 + $0x74] sm:$0xf]  ;;  %v5347_v9 = vld [vmem:[#allocation17 + $0x20] sm:$0xf]  ;;  %v5926_v11 = vld [vmem:[#allocation17 + $0x24] sm:$0xf0] }
 0x227   :  { %v2991_v50 = vpop.f32.mrf.mxu0  ;;  %v3004_v55 = vpop.f32.mrf.mxu1  ;;  %3468 = vmatpush.bf16.msra.mxu0 %v5388_v45 }
 0x228   :  { %v2953_v16 = vadd.f32 %v2952_v17, %v2940_v2  ;;  %3591 = vmatpush.bf16.msra.mxu3 %v5424_v13  ;;  %v5413_v17 = vld [vmem:[#allocation16 + $0x28] sm:$0xf0]  ;;  %v5389_v2 = vld [vmem:[#allocation17 + $0x78] sm:$0xf0]  ;;  %v5925_v13 = vld [vmem:[#allocation17 + $0x24] sm:$0xf] }
 0x229   :  { %v5416_v18 = vor.u32 %v5909_v31, %v5413_v17  ;;  %v5349_v31 = vld [vmem:[#allocation17 + $0x28] sm:$0xf0]  ;;  %v5348_v17 = vor.u32 %v5926_v11, %v5347_v9 }
 0x22a   :  { %v3036_v47 = vmax.f32 %v2953_v16, 0.0  ;;  %v5379_v16 = vld [vmem:[#allocation17 + $0x60] sm:$0xf] }
 0x22b   :  { %v2967_v48 = vpop.f32.mrf.mxu2  ;;  %v2928_v49 = vpop.f32.mrf.mxu3 }
 0x22c   :  { %v3040_v42 = vpack.c.bf16 %v3036_v47, %v3036_v47  ;;  %3592 = vmatpush.bf16.msra.mxu3 %v5416_v18  ;;  %v5392_v47 = vor.u32 %v5935_v32, %v5389_v2  ;;  %v5933_v48 = vld [vmem:[#allocation17 + $0x64] sm:$0xf]  ;;  %v5381_v49 = vld [vmem:[#allocation17 + $0x68] sm:$0xf0]  ;;  %v5352_v18 = vor.u32 %v5925_v13, %v5349_v31  ;;  %v5948_v32 = vld [vmem:[#allocation19 + $0x58] sm:$0xff] }
 0x22d   :  { %v5939_v2 = vld [vmem:[#allocation19 + $0x10] sm:$0xff] }
 0x22e   :  { %3336 = vmatmul.bf16.vlgmr.msrb.gmra.mxu2 %v3040_v42  ;;  %v5380_v42 = vor.u32 %v5934_v46, %v5379_v16  ;;  %3481 = vmatpush.bf16.msra.mxu1 %v5392_v47  ;;  %v5947_v16 = vld [vmem:[#allocation19 + $0x50] sm:$0xff]  ;;  %v5938_v47 = vld [vmem:[#allocation19 + $0x8] sm:$0xff] }
 0x22f   :  { %v2993_v57 = vpop.f32.mrf.mxu0  ;;  %v3006_v12 = vpop.f32.mrf.mxu1 }
 0x230   :  { %3593 = vmatpush.bf16.msra.mxu3 %v5408_v22  ;;  %3469 = vmatpush.bf16.msra.mxu0 %v5380_v42  ;;  %v5930_v57 = vld [vmem:[#allocation17 + $0x44] sm:$0xf0]  ;;  %v5365_v12 = vld [vmem:[#allocation17 + $0x48] sm:$0xf0]  ;;  %v5945_v42 = vld [vmem:[#allocation19 + $0x40] sm:$0xff] }
 0x231   :  { %v5364_v60 = vor.u32 %v5930_v57, %v5363_v26  ;;  %v5368_v61 = vor.u32 %v5929_v58, %v5365_v12 }
 0x234   :  { %3594 = vmatpush.bf16.msra.mxu3 %v5400_v23  ;;  %3470 = vmatpush.bf16.msra.mxu0 %v5372_v54  ;;  %v5921_v23 = vld [vmem:[#allocation17 + $0x4] sm:$0xf] }
 0x238   :  { %3471 = vmatpush.bf16.msra.mxu0 %v5364_v60 }
 0x23e   :  { %3582 = vmatmul.bf16.vlgmr.msra.gmra.mxu2 %v3354_v0 }
 0x243   :  { %v3017_v5 = vpop.f32.mrf.mxu2  ;;  %v2978_v8 = vpop.f32.mrf.mxu3 }
 0x244   :  { %v2979_v28 = vadd.f32 %v2978_v8, %v2966_v27  ;;  %v5360_v8 = vor.u32 %v5927_v3, %v5357_v4  ;;  %v5922_v27 = vld [vmem:[#allocation17 + $0x4] sm:$0xf0] }
 0x246   :  { %v2992_v29 = vadd.f32 %v2991_v50, %v2979_v28  ;;  %v5384_v50 = vor.u32 %v5933_v48, %v5381_v49  ;;  %v5332_v28 = vor.u32 %v5922_v27, %v5331_v20  ;;  %v5946_v48 = vld [vmem:[#allocation19 + $0x48] sm:$0xff]  ;;  %v5937_v49 = vld [vmem:[#allocation19] sm:$0xff] }
 0x248   :  { %v3005_v30 = vadd.f32 %v3004_v55, %v2992_v29  ;;  %3482 = vmatpush.bf16.msra.mxu1 %v5384_v50  ;;  %v5333_v29 = vld [vmem:[#allocation17 + $0x8] sm:$0xf0]  ;;  %v3600_v50 = vld [vmem:[%s6553_s12] sm:$0x3]  ;;  %s6293_s12 = smov [#allocation20]  }
 0x249   :  { %v3602_v43 = vperm.slane %v3600_v50, 0  ;;  %v3603_v51 = vperm.slane %v3600_v50, 1  ;;  %s3776_s5 = sshll.u32 %s6293_s12, 4  ;;  %s3777_s5 = int_to_ptr.vmem [resolvable:$true] %s3776_s5 }
 0x24a   :  { %v3018_v33 = vadd.f32 %v3017_v5, %v3005_v30  ;;  %v5336_v30 = vor.u32 %v5921_v23, %v5333_v29 }
 0x24b   :  { %v3019_v21 = vpop.f32.mrf.mxu2  ;;  %v2980_v44 = vpop.f32.mrf.mxu3 }
 0x24c   :  { %3483 = vmatpush.bf16.msra.mxu1 %v5376_v56  ;;  %v5923_v21 = vld [vmem:[#allocation17 + $0x14] sm:$0xf]  ;;  %v5340_v44 = vor.u32 %v5924_v19, %v5339_v10 }
 0x24d   :  { %v5344_v24 = vor.u32 %v5923_v21, %v5341_v63 }
 0x250   :  { %3484 = vmatpush.bf16.msra.mxu1 %v5368_v61 }
 0x254   :  { %3485 = vmatpush.bf16.msra.mxu1 %v5360_v8 }
 0x258   :  { %3486 = vmatpush.bf16.msra.mxu1 %v5352_v18 }
 0x25b   :  { %v3311_v35 = vpop.f32.mrf.mxu0 }
 0x25c   :  { %v3312_v15 = vadd.f32 %v5972_v37, %v3311_v35  ;;  %3487 = vmatpush.bf16.msra.mxu1 %v5344_v24  ;;  %v5951_v35 = vld [vmem:[#allocation19 + $0x70] sm:$0xff] }
 0x260   :  { %3488 = vmatpush.bf16.msra.mxu1 %v5336_v30 }
 0x263   :  { %v3030_v34 = vpop.f32.mrf.mxu3  ;;  %v3313_v1 = vpop.f32.mrf.mxu0 }
 0x264   :  { %v3031_v14 = vadd.f32 %v3030_v34, %v3018_v33  ;;  %v5944_v34 = vld [vmem:[#allocation19 + $0x38] sm:$0xff] }
 0x266   :  { %v3037_v25 = vmax.f32 %v3031_v14, 0.0  ;;  %v5952_v14 = vld [vmem:[#allocation19 + $0x78] sm:$0xff] }
 0x267   :  { %3757 = vmatpush.bf16.msrb.mxu1 %v5952_v14 }
 0x268   :  { %v3041_v6 = vpack.c.bf16 %v3037_v25, %v3037_v25  ;;  %v5943_v25 = vld [vmem:[#allocation19 + $0x30] sm:$0xff] }
 0x26a   :  { %3349 = vmatmul.bf16.vlgmr.msrb.gmra.mxu3 %v3041_v6  ;;  %v5942_v6 = vld [vmem:[#allocation19 + $0x28] sm:$0xff] }
 0x26b   :  { %v3032_v59 = vpop.f32.mrf.mxu3  ;;  %3758 = vmatpush.bf16.msrb.mxu1 %v5951_v35 }
 0x26c   :  { %v5950_v59 = vld [vmem:[#allocation19 + $0x68] sm:$0xff] }
 0x26f   :  { %3759 = vmatpush.bf16.msrb.mxu1 %v5950_v59 }
 0x27a   :  { %3595 = vmatmul.bf16.vlgmr.msra.gmra.mxu3 %v3354_v0  ;;  %v5928_v0 = vld [vmem:[#allocation17 + $0x34] sm:$0xf0] }
 0x27b   :  { %v5356_v5 = vor.u32 %v5928_v0, %v5355_v62  ;;  %v5973_v0 = vld [vmem:[%s6555_s14] ss:$0 sm:$0xff] }
 0x27d   :  { %3472 = vmatpush.bf16.msra.mxu0 %v5356_v5 }
 0x281   :  { %3473 = vmatpush.bf16.msra.mxu0 %v5348_v17 }
 0x285   :  { %3474 = vmatpush.bf16.msra.mxu0 %v5340_v44 }
 0x287   :  { %v3324_v36 = vpop.f32.mrf.mxu1 }
 0x288   :  { %v6529_v38 = vadd.f32 %v3324_v36, %v3312_v15  ;;  %v5941_v36 = vld [vmem:[#allocation19 + $0x20] sm:$0xff] }
 0x289   :  { %3475 = vmatpush.bf16.msra.mxu0 %v5332_v28 }
 0x28d   :  { %3744 = vmatpush.bf16.msrb.mxu0 %v5944_v34 }
 0x28f   :  { %v3326_v39 = vpop.f32.mrf.mxu1 }
 0x290   :  { %v5949_v39 = vld [vmem:[#allocation19 + $0x60] sm:$0xff] }
 0x291   :  { %3745 = vmatpush.bf16.msrb.mxu0 %v5943_v25  ;;  %3760 = vmatpush.bf16.msrb.mxu1 %v5949_v39 }
 0x295   :  { %3746 = vmatpush.bf16.msrb.mxu0 %v5942_v6  ;;  %3761 = vmatpush.bf16.msrb.mxu1 %v5948_v32 }
 0x299   :  { %3747 = vmatpush.bf16.msrb.mxu0 %v5941_v36  ;;  %3762 = vmatpush.bf16.msrb.mxu1 %v5947_v16 }
 0x29d   :  { %3748 = vmatpush.bf16.msrb.mxu0 %v5940_v41  ;;  %3763 = vmatpush.bf16.msrb.mxu1 %v5946_v48 }
 0x2a1   :  { %3749 = vmatpush.bf16.msrb.mxu0 %v5939_v2  ;;  %3764 = vmatpush.bf16.msrb.mxu1 %v5945_v42 }
 0x2a5   :  { %3750 = vmatpush.bf16.msrb.mxu0 %v5938_v47 }
 0x2a9   :  { %3751 = vmatpush.bf16.msrb.mxu0 %v5937_v49 }
 0x2b1   :  { %v3337_v55 = vpop.f32.mrf.mxu2 }
 0x2b2   :  { %v3338_v1 = vadd.f32 %v3337_v55, %v6529_v38 }
 0x2b9   :  { %v3339_v7 = vpop.f32.mrf.mxu2 }
 0x2c1   :  { %v3583_v22 = vpop.f32.mrf.mxu2 }
 0x2c9   :  { %v3585_v33 = vpop.f32.mrf.mxu2 }
 0x2ed   :  { %v3350_v37 = vpop.f32.mrf.mxu3 }
 0x2ee   :  { %v3351_v15 = vadd.f32 %v3350_v37, %v3338_v1 }
 0x2f0   :  { %v3371_v40 = vpack.c.bf16 %v3351_v15, %v3351_v15 }
 0x2f2   :  { %3476 = vmatmul.bf16.vlgmr.msra.gmra.mxu0 %v3371_v40  ;;  %3489 = vmatmul.bf16.vlgmr.msra.gmra.mxu1 %v3371_v40 }
 0x2f5   :  { %v3352_v45 = vpop.f32.mrf.mxu3 }
 0x2fd   :  { %v3596_v38 = vpop.f32.mrf.mxu3 }
 0x305   :  { %v3598_v46 = vpop.f32.mrf.mxu3 }
 0x36f   :  { %v3477_v52 = vpop.f32.mrf.mxu0  ;;  %v3490_v53 = vpop.f32.mrf.mxu1 }
 0x370   :  { %v3584_v54 = vadd.f32 %v3583_v22, %v3477_v52  ;;  %v3597_v55 = vadd.f32 %v3596_v38, %v3490_v53 }
 0x372   :  { %v3606_v56 = vadd.f32 %v3602_v43, %v3584_v54  ;;  %v3607_v26 = vadd.f32 %v3603_v51, %v3597_v55 }
 0x374   :  { %v3608_v57 = vmax.f32 %v3606_v56, 0.0  ;;  %v3609_v58 = vmax.f32 %v3607_v26, 0.0 }
 0x376   :  { %v3610_v12 = vpack.c.bf16 %v3608_v57, %v3608_v57  ;;  %v3611_v60 = vpack.c.bf16 %v3609_v58, %v3609_v58 }
 0x377   :  { %v3479_v61 = vpop.f32.mrf.mxu0  ;;  %v3492_v62 = vpop.f32.mrf.mxu1 }
 0x378   :  { %3752 = vmatmul.bf16.vlgmr.msrb.gmra.mxu0 %v3610_v12  ;;  %3765 = vmatmul.bf16.vlgmr.msrb.gmra.mxu1 %v3611_v60 }
 0x3f5   :  { %v3753_v3 = vpop.f32.mrf.mxu0  ;;  %v3766_v4 = vpop.f32.mrf.mxu1 }
 0x3f6   :  { %v3754_v5 = vadd.f32 %v5973_v0, %v3753_v3 }
 0x3f8   :  { %v3767_v7 = vadd.f32 %v3766_v4, %v3754_v5 }
 0x3fa   :  { %3770 = vst [vmem:[#allocation20] sm:$0xff] %v3767_v7 }
 0x3fb   :  { %3781 = dma.vmem_to_hbm [thread:$0]  %s3777_s5, 128, %s3779_s24, [#allocation4]  }
 0x3fd   :  { %v3755_v8 = vpop.f32.mrf.mxu0  ;;  %v3768_v9 = vpop.f32.mrf.mxu1 }
 0x3fe   :  { %6274 = dma.done.wait [#allocation4], 128  }
 0x3ff   :  { %6275 = vsyncadd [#allocation4], 4294967168 }
 0x400   :  { %3786 = vsyncpa [#allocation3], 1 }
 0x401   :  { %3787 = vsyncpa [#allocation6], 1 }
 0x402   :  { %3788 = vsyncpa [#allocation9], 1 }
 0x403   :  { %3789 = vsyncpa [#allocation12], 1 }
 0x404   :  { %3790 = vsyncpa [#allocation15], 1 }
 0x405   :  { %3791 = vsyncpa [#allocation18], 1 }
 0x406   :  { %3792 = vsyncpa [#allocation4], 1 }

</bundles_post_ra>
